<compile_context>
chip_gen: v7x
topology: tpu7x:2x2x1
jax: 0.10.0
libtpu: 0.0.40
codegen_flags: <defaults>
</compile_context>

<pallas_src>
import functools

import jax
import jax.numpy as jnp
from jax import lax
from jax.experimental import pallas as pl
from jax.experimental.pallas import tpu as pltpu

BN_EPS = 1e-5

_DC_NP = 6    # params per DoubleConv block: w1, s1, b1, w2, s2, b2
_UP_NP = 9    # params per Up block: wt, bt, w1s, w1u, s1, b1, w2, s2, b2
_OUT_NP = 2   # OutConv: w, b


# ----------------------------------------------------------------------------
# In-kernel building blocks
# ----------------------------------------------------------------------------
def _conv3_acc(x_f32, w_ref):
    """Conv1d(k=3, pad=1, zeros, no bias): x (L, Cin) f32 -> (L, Cout) f32 (pre-BN).

    Three bf16 matmuls (one per tap); the +-1 spatial shift is applied to the f32
    results along the sublane axis (no lane-axis slab concat, no 3*Cin packing).
    w_ref: (3, Cin, Cout) bf16 with w_ref[k, ci, co] = torch_w[co, ci, k].
    """
    L = x_f32.shape[0]
    xb = x_f32.astype(jnp.bfloat16)
    z0 = jnp.dot(xb, w_ref[0], preferred_element_type=jnp.float32)
    z1 = jnp.dot(xb, w_ref[1], preferred_element_type=jnp.float32)
    z2 = jnp.dot(xb, w_ref[2], preferred_element_type=jnp.float32)
    cout = z1.shape[1]
    zrow = jnp.zeros((1, cout), jnp.float32)
    tap0 = jnp.concatenate([zrow, z0[:L - 1]], axis=0)   # contribution of x[l-1]
    tap2 = jnp.concatenate([z2[1:], zrow], axis=0)       # contribution of x[l+1]
    return tap0 + z1 + tap2


def _bn_relu(y, s_ref, b_ref):
    # Folded eval-mode BatchNorm + ReLU, all f32 on the VPU.
    return jnp.maximum(y * s_ref[...] + b_ref[...], 0.0)


def _double_conv(x, p):
    w1, s1, b1, w2, s2, b2 = p
    h = _bn_relu(_conv3_acc(x, w1), s1, b1)
    # Dropout(0.2): identity in eval mode.
    return _bn_relu(_conv3_acc(h, w2), s2, b2)


def _maxpool2(sc_ref, l_half):
    # MaxPool1d(2): even/odd rows via strided VMEM loads, max on the VPU.
    a = sc_ref[pl.ds(0, l_half, stride=2), :]
    b = sc_ref[pl.ds(1, l_half, stride=2), :]
    return jnp.maximum(a, b)


def _up_block(x_coarse, skip_sc, u_sc, p):
    """ConvTranspose1d(k=2, s=2) + skip 'concat' (split weights) + DoubleConv."""
    wt, bt, w1s, w1u, s1, b1, w2, s2, b2 = p
    l1 = x_coarse.shape[0]
    xb = x_coarse.astype(jnp.bfloat16)
    t0 = jnp.dot(xb, wt[0], preferred_element_type=jnp.float32) + bt[...]
    t1 = jnp.dot(xb, wt[1], preferred_element_type=jnp.float32) + bt[...]
    # Interleave the two stride-2 taps into (2*l1, Cu) via strided VMEM stores.
    u_sc[pl.ds(0, l1, stride=2), :] = t0
    u_sc[pl.ds(1, l1, stride=2), :] = t1
    # conv(cat([skip, up], channels)) == conv(skip; W_skip) + conv(up; W_up):
    # additive over the contraction, so no channel concat / doubled buffer.
    acc = _conv3_acc(skip_sc[...], w1s) + _conv3_acc(u_sc[...], w1u)
    h = _bn_relu(acc, s1, b1)
    # Dropout(0.2): identity in eval mode.
    return _bn_relu(_conv3_acc(h, w2), s2, b2)


# ----------------------------------------------------------------------------
# The single fused kernel (one grid step == one batch element)
# ----------------------------------------------------------------------------
def _unet_kernel(*refs, num_weights):
    x_ref = refs[0]                                   # (1, L, Cin) f32
    w = refs[1:1 + num_weights]
    o_ref = refs[1 + num_weights]                     # (1, n_classes, L) f32
    x1_sc, x2_sc, x3_sc, u2_sc, u3_sc, u4_sc = refs[2 + num_weights:]

    it = iter(w)
    take = lambda n: [next(it) for _ in range(n)]
    inc_p = take(_DC_NP)
    d1_p = take(_DC_NP)
    d2_p = take(_DC_NP)
    d3_p = take(_DC_NP)
    u2_p = take(_UP_NP)
    u3_p = take(_UP_NP)
    u4_p = take(_UP_NP)
    wo_ref, bo_ref = take(_OUT_NP)

    L = x_ref.shape[1]

    # ---------------- encoder ----------------
    x1 = _double_conv(x_ref[0], inc_p)                         # (L,   F)
    x1_sc[...] = x1
    x2 = _double_conv(_maxpool2(x1_sc, L // 2), d1_p)          # (L/2, 2F)
    x2_sc[...] = x2
    x3 = _double_conv(_maxpool2(x2_sc, L // 4), d2_p)          # (L/4, 4F)
    x3_sc[...] = x3
    x4 = _double_conv(_maxpool2(x3_sc, L // 8), d3_p)          # (L/8, 8F)

    # ---------------- decoder ----------------
    h = _up_block(x4, x3_sc, u2_sc, u2_p)                      # (L/4, 4F)
    h = _up_block(h, x2_sc, u3_sc, u3_p)                       # (L/2, 2F)
    h = _up_block(h, x1_sc, u4_sc, u4_p)                       # (L,   F)

    # OutConv (1x1 conv + bias), written directly in (n_classes, L) NCL layout
    # via an A @ B^T contraction (no in-kernel / wrapper transpose).
    out = lax.dot_general(wo_ref[...], h.astype(jnp.bfloat16),
                          (((1,), (1,)), ((), ())),
                          preferred_element_type=jnp.float32)  # (n_classes, L)
    o_ref[0] = (out + bo_ref[...]).astype(o_ref.dtype)


# ----------------------------------------------------------------------------
# Wrapper
# ----------------------------------------------------------------------------
def _const_spec(a):
    zeros = (0,) * a.ndim
    return pl.BlockSpec(a.shape, lambda n: zeros)


def unet_forward(params, x_ncl):
    N, Cin, L = x_ncl.shape
    assert L % 8 == 0, "4-scale UNet needs L divisible by 8"
    nfeat = params['inc'][3].shape[2]          # w2: (3, mid, nfeat)
    n_classes = params['outc'][0].shape[0]     # wo: (n_classes, nfeat)

    # NCL -> NLC for the (tiny) input; the output path emits NCL directly.
    x = jnp.transpose(x_ncl, (0, 2, 1))

    flat_w = (params['inc'] + params['down1'] + params['down2'] + params['down3']
              + params['up2'] + params['up3'] + params['up4'] + params['outc'])
    num_w = len(flat_w)
    kernel = functools.partial(_unet_kernel, num_weights=num_w)
    f32 = jnp.float32

    return pl.pallas_call(
        kernel,
        out_shape=jax.ShapeDtypeStruct((N, n_classes, L), f32),
        grid=(N,),
        in_specs=[pl.BlockSpec((1, L, Cin), lambda n: (n, 0, 0))]
                + [_const_spec(a) for a in flat_w],
        out_specs=pl.BlockSpec((1, n_classes, L), lambda n: (n, 0, 0)),
        scratch_shapes=[
            pltpu.VMEM((L, nfeat), f32),            # x1 skip
            pltpu.VMEM((L // 2, 2 * nfeat), f32),   # x2 skip
            pltpu.VMEM((L // 4, 4 * nfeat), f32),   # x3 skip
            pltpu.VMEM((L // 4, 4 * nfeat), f32),   # up2 interleave
            pltpu.VMEM((L // 2, 2 * nfeat), f32),   # up3 interleave
            pltpu.VMEM((L, nfeat), f32),            # up4 interleave
        ],
        compiler_params=pltpu.CompilerParams(dimension_semantics=("parallel",)),
    )(x, *flat_w)


# ----------------------------------------------------------------------------
# Parameter init (deterministic, in-script; matches PyTorch module shapes)
# ----------------------------------------------------------------------------
def init_doubleconv(key, cin, cout, mid=None):
    mid = mid or cout
    k = jax.random.split(key, 6)
    w1 = jax.random.normal(k[0], (3, cin, mid), jnp.float32) / jnp.sqrt(3.0 * cin)
    g1 = 1.0 + 0.1 * jax.random.normal(k[1], (mid,), jnp.float32)
    b1 = 0.1 * jax.random.normal(k[2], (mid,), jnp.float32)
    w2 = jax.random.normal(k[3], (3, mid, cout), jnp.float32) / jnp.sqrt(3.0 * mid)
    g2 = 1.0 + 0.1 * jax.random.normal(k[4], (cout,), jnp.float32)
    b2 = 0.1 * jax.random.normal(k[5], (cout,), jnp.float32)
    # Fold eval-mode BatchNorm (running_mean=0, running_var=1) into scale/bias.
    s1 = g1 / jnp.sqrt(1.0 + BN_EPS)
    s2 = g2 / jnp.sqrt(1.0 + BN_EPS)
    return [w1.astype(jnp.bfloat16), s1.reshape(1, mid), b1.reshape(1, mid),
            w2.astype(jnp.bfloat16), s2.reshape(1, cout), b2.reshape(1, cout)]


def init_up(key, cin, cu):
    k = jax.random.split(key, 3)
    # ConvTranspose1d weight (cin, cu, 2) stored as (2, cin, cu); bias (cu,).
    wt = jax.random.normal(k[0], (2, cin, cu), jnp.float32) / jnp.sqrt(2.0 * cin)
    bt = 0.1 * jax.random.normal(k[1], (cu,), jnp.float32)
    dc = init_doubleconv(k[2], 2 * cu, cu)     # conv over cat([skip, upsampled])
    w1 = dc[0]                                 # (3, 2*cu, cu) bf16
    w1s, w1u = w1[:, :cu, :], w1[:, cu:, :]    # skip-channel half / upsample half
    return [wt.astype(jnp.bfloat16), bt.reshape(1, cu), w1s, w1u,
            dc[1], dc[2], dc[3], dc[4], dc[5]]


def init_out(key, cin, n_classes):
    k1, k2 = jax.random.split(key)
    # PyTorch Conv1d(k=1) weight (n_classes, cin, 1) stored as (n_classes, cin).
    w = jax.random.normal(k1, (n_classes, cin), jnp.float32) / jnp.sqrt(float(cin))
    b = 0.1 * jax.random.normal(k2, (n_classes,), jnp.float32)
    return [w.astype(jnp.bfloat16), b.reshape(n_classes, 1)]


def init_unet(key, n_channels, n_classes, nfeat):
    ks = jax.random.split(key, 8)
    return dict(
        inc=init_doubleconv(ks[0], n_channels, nfeat),
        down1=init_doubleconv(ks[1], nfeat, 2 * nfeat),
        down2=init_doubleconv(ks[2], 2 * nfeat, 4 * nfeat),
        down3=init_doubleconv(ks[3], 4 * nfeat, 8 * nfeat),
        up2=init_up(ks[4], 8 * nfeat, 4 * nfeat),
        up3=init_up(ks[5], 4 * nfeat, 2 * nfeat),
        up4=init_up(ks[6], 2 * nfeat, nfeat),
        outc=init_out(ks[7], nfeat, n_classes),
    )


if __name__ == "__main__":
    key = jax.random.PRNGKey(0)
    kp, kx = jax.random.split(key)

    n_channels, n_classes, nfeat = 4, 3, 8
    N, L = 2, 16                              # L divisible by 8 (4 scales)

    params = init_unet(kp, n_channels, n_classes, nfeat)
    x = jax.random.normal(kx, (N, n_channels, L), jnp.float32)

    fwd = jax.jit(unet_forward)
    out = jax.block_until_ready(fwd(params, x))

    assert out.shape == (N, n_classes, L), out.shape
    assert bool(jnp.all(jnp.isfinite(out)))
    print("KERNEL_OK")
</pallas_src>

<mosaic_0001>
module attributes {stable_mosaic.version = 11 : i64} {
  func.func @_unet_kernel(%arg0: i32, %arg1: memref<1x16x4xf32, #tpu.memory_space<vmem>>, %arg2: memref<3x4x8xbf16, #tpu.memory_space<vmem>>, %arg3: memref<1x8xf32, #tpu.memory_space<vmem>>, %arg4: memref<1x8xf32, #tpu.memory_space<vmem>>, %arg5: memref<3x8x8xbf16, #tpu.memory_space<vmem>>, %arg6: memref<1x8xf32, #tpu.memory_space<vmem>>, %arg7: memref<1x8xf32, #tpu.memory_space<vmem>>, %arg8: memref<3x8x16xbf16, #tpu.memory_space<vmem>>, %arg9: memref<1x16xf32, #tpu.memory_space<vmem>>, %arg10: memref<1x16xf32, #tpu.memory_space<vmem>>, %arg11: memref<3x16x16xbf16, #tpu.memory_space<vmem>>, %arg12: memref<1x16xf32, #tpu.memory_space<vmem>>, %arg13: memref<1x16xf32, #tpu.memory_space<vmem>>, %arg14: memref<3x16x32xbf16, #tpu.memory_space<vmem>>, %arg15: memref<1x32xf32, #tpu.memory_space<vmem>>, %arg16: memref<1x32xf32, #tpu.memory_space<vmem>>, %arg17: memref<3x32x32xbf16, #tpu.memory_space<vmem>>, %arg18: memref<1x32xf32, #tpu.memory_space<vmem>>, %arg19: memref<1x32xf32, #tpu.memory_space<vmem>>, %arg20: memref<3x32x64xbf16, #tpu.memory_space<vmem>>, %arg21: memref<1x64xf32, #tpu.memory_space<vmem>>, %arg22: memref<1x64xf32, #tpu.memory_space<vmem>>, %arg23: memref<3x64x64xbf16, #tpu.memory_space<vmem>>, %arg24: memref<1x64xf32, #tpu.memory_space<vmem>>, %arg25: memref<1x64xf32, #tpu.memory_space<vmem>>, %arg26: memref<2x64x32xbf16, #tpu.memory_space<vmem>>, %arg27: memref<1x32xf32, #tpu.memory_space<vmem>>, %arg28: memref<3x32x32xbf16, #tpu.memory_space<vmem>>, %arg29: memref<3x32x32xbf16, #tpu.memory_space<vmem>>, %arg30: memref<1x32xf32, #tpu.memory_space<vmem>>, %arg31: memref<1x32xf32, #tpu.memory_space<vmem>>, %arg32: memref<3x32x32xbf16, #tpu.memory_space<vmem>>, %arg33: memref<1x32xf32, #tpu.memory_space<vmem>>, %arg34: memref<1x32xf32, #tpu.memory_space<vmem>>, %arg35: memref<2x32x16xbf16, #tpu.memory_space<vmem>>, %arg36: memref<1x16xf32, #tpu.memory_space<vmem>>, %arg37: memref<3x16x16xbf16, #tpu.memory_space<vmem>>, %arg38: memref<3x16x16xbf16, #tpu.memory_space<vmem>>, %arg39: memref<1x16xf32, #tpu.memory_space<vmem>>, %arg40: memref<1x16xf32, #tpu.memory_space<vmem>>, %arg41: memref<3x16x16xbf16, #tpu.memory_space<vmem>>, %arg42: memref<1x16xf32, #tpu.memory_space<vmem>>, %arg43: memref<1x16xf32, #tpu.memory_space<vmem>>, %arg44: memref<2x16x8xbf16, #tpu.memory_space<vmem>>, %arg45: memref<1x8xf32, #tpu.memory_space<vmem>>, %arg46: memref<3x8x8xbf16, #tpu.memory_space<vmem>>, %arg47: memref<3x8x8xbf16, #tpu.memory_space<vmem>>, %arg48: memref<1x8xf32, #tpu.memory_space<vmem>>, %arg49: memref<1x8xf32, #tpu.memory_space<vmem>>, %arg50: memref<3x8x8xbf16, #tpu.memory_space<vmem>>, %arg51: memref<1x8xf32, #tpu.memory_space<vmem>>, %arg52: memref<1x8xf32, #tpu.memory_space<vmem>>, %arg53: memref<3x8xbf16, #tpu.memory_space<vmem>>, %arg54: memref<3x1xf32, #tpu.memory_space<vmem>>, %arg55: memref<1x3x16xf32, #tpu.memory_space<vmem>>, %arg56: memref<16x8xf32, #tpu.memory_space<vmem>>, %arg57: memref<8x16xf32, #tpu.memory_space<vmem>>, %arg58: memref<4x32xf32, #tpu.memory_space<vmem>>, %arg59: memref<4x32xf32, #tpu.memory_space<vmem>>, %arg60: memref<8x16xf32, #tpu.memory_space<vmem>>, %arg61: memref<16x8xf32, #tpu.memory_space<vmem>>) attributes {dimension_semantics = [#tpu.dimension_semantics<parallel>], iteration_bounds = array<i64: 2>, scalar_prefetch = 0 : i64, scratch_operands = 6 : i64, tpu.core_type = #tpu.core_type<tc>, window_params = [{transform_indices = @transform_0, window_bounds = array<i64: 1, 16, 4>}, {pipeline_mode = #tpu.pipeline_mode<synchronous>, transform_indices = @transform_1, window_bounds = array<i64: 3, 4, 8>}, {pipeline_mode = #tpu.pipeline_mode<synchronous>, transform_indices = @transform_2, window_bounds = array<i64: 1, 8>}, {pipeline_mode = #tpu.pipeline_mode<synchronous>, transform_indices = @transform_3, window_bounds = array<i64: 1, 8>}, {pipeline_mode = #tpu.pipeline_mode<synchronous>, transform_indices = @transform_4, window_bounds = array<i64: 3, 8, 8>}, {pipeline_mode = #tpu.pipeline_mode<synchronous>, transform_indices = @transform_5, window_bounds = array<i64: 1, 8>}, {pipeline_mode = #tpu.pipeline_mode<synchronous>, transform_indices = @transform_6, window_bounds = array<i64: 1, 8>}, {pipeline_mode = #tpu.pipeline_mode<synchronous>, transform_indices = @transform_7, window_bounds = array<i64: 3, 8, 16>}, {pipeline_mode = #tpu.pipeline_mode<synchronous>, transform_indices = @transform_8, window_bounds = array<i64: 1, 16>}, {pipeline_mode = #tpu.pipeline_mode<synchronous>, transform_indices = @transform_9, window_bounds = array<i64: 1, 16>}, {pipeline_mode = #tpu.pipeline_mode<synchronous>, transform_indices = @transform_10, window_bounds = array<i64: 3, 16, 16>}, {pipeline_mode = #tpu.pipeline_mode<synchronous>, transform_indices = @transform_11, window_bounds = array<i64: 1, 16>}, {pipeline_mode = #tpu.pipeline_mode<synchronous>, transform_indices = @transform_12, window_bounds = array<i64: 1, 16>}, {pipeline_mode = #tpu.pipeline_mode<synchronous>, transform_indices = @transform_13, window_bounds = array<i64: 3, 16, 32>}, {pipeline_mode = #tpu.pipeline_mode<synchronous>, transform_indices = @transform_14, window_bounds = array<i64: 1, 32>}, {pipeline_mode = #tpu.pipeline_mode<synchronous>, transform_indices = @transform_15, window_bounds = array<i64: 1, 32>}, {pipeline_mode = #tpu.pipeline_mode<synchronous>, transform_indices = @transform_16, window_bounds = array<i64: 3, 32, 32>}, {pipeline_mode = #tpu.pipeline_mode<synchronous>, transform_indices = @transform_17, window_bounds = array<i64: 1, 32>}, {pipeline_mode = #tpu.pipeline_mode<synchronous>, transform_indices = @transform_18, window_bounds = array<i64: 1, 32>}, {pipeline_mode = #tpu.pipeline_mode<synchronous>, transform_indices = @transform_19, window_bounds = array<i64: 3, 32, 64>}, {pipeline_mode = #tpu.pipeline_mode<synchronous>, transform_indices = @transform_20, window_bounds = array<i64: 1, 64>}, {pipeline_mode = #tpu.pipeline_mode<synchronous>, transform_indices = @transform_21, window_bounds = array<i64: 1, 64>}, {pipeline_mode = #tpu.pipeline_mode<synchronous>, transform_indices = @transform_22, window_bounds = array<i64: 3, 64, 64>}, {pipeline_mode = #tpu.pipeline_mode<synchronous>, transform_indices = @transform_23, window_bounds = array<i64: 1, 64>}, {pipeline_mode = #tpu.pipeline_mode<synchronous>, transform_indices = @transform_24, window_bounds = array<i64: 1, 64>}, {pipeline_mode = #tpu.pipeline_mode<synchronous>, transform_indices = @transform_25, window_bounds = array<i64: 2, 64, 32>}, {pipeline_mode = #tpu.pipeline_mode<synchronous>, transform_indices = @transform_26, window_bounds = array<i64: 1, 32>}, {pipeline_mode = #tpu.pipeline_mode<synchronous>, transform_indices = @transform_27, window_bounds = array<i64: 3, 32, 32>}, {pipeline_mode = #tpu.pipeline_mode<synchronous>, transform_indices = @transform_28, window_bounds = array<i64: 3, 32, 32>}, {pipeline_mode = #tpu.pipeline_mode<synchronous>, transform_indices = @transform_29, window_bounds = array<i64: 1, 32>}, {pipeline_mode = #tpu.pipeline_mode<synchronous>, transform_indices = @transform_30, window_bounds = array<i64: 1, 32>}, {pipeline_mode = #tpu.pipeline_mode<synchronous>, transform_indices = @transform_31, window_bounds = array<i64: 3, 32, 32>}, {pipeline_mode = #tpu.pipeline_mode<synchronous>, transform_indices = @transform_32, window_bounds = array<i64: 1, 32>}, {pipeline_mode = #tpu.pipeline_mode<synchronous>, transform_indices = @transform_33, window_bounds = array<i64: 1, 32>}, {pipeline_mode = #tpu.pipeline_mode<synchronous>, transform_indices = @transform_34, window_bounds = array<i64: 2, 32, 16>}, {pipeline_mode = #tpu.pipeline_mode<synchronous>, transform_indices = @transform_35, window_bounds = array<i64: 1, 16>}, {pipeline_mode = #tpu.pipeline_mode<synchronous>, transform_indices = @transform_36, window_bounds = array<i64: 3, 16, 16>}, {pipeline_mode = #tpu.pipeline_mode<synchronous>, transform_indices = @transform_37, window_bounds = array<i64: 3, 16, 16>}, {pipeline_mode = #tpu.pipeline_mode<synchronous>, transform_indices = @transform_38, window_bounds = array<i64: 1, 16>}, {pipeline_mode = #tpu.pipeline_mode<synchronous>, transform_indices = @transform_39, window_bounds = array<i64: 1, 16>}, {pipeline_mode = #tpu.pipeline_mode<synchronous>, transform_indices = @transform_40, window_bounds = array<i64: 3, 16, 16>}, {pipeline_mode = #tpu.pipeline_mode<synchronous>, transform_indices = @transform_41, window_bounds = array<i64: 1, 16>}, {pipeline_mode = #tpu.pipeline_mode<synchronous>, transform_indices = @transform_42, window_bounds = array<i64: 1, 16>}, {pipeline_mode = #tpu.pipeline_mode<synchronous>, transform_indices = @transform_43, window_bounds = array<i64: 2, 16, 8>}, {pipeline_mode = #tpu.pipeline_mode<synchronous>, transform_indices = @transform_44, window_bounds = array<i64: 1, 8>}, {pipeline_mode = #tpu.pipeline_mode<synchronous>, transform_indices = @transform_45, window_bounds = array<i64: 3, 8, 8>}, {pipeline_mode = #tpu.pipeline_mode<synchronous>, transform_indices = @transform_46, window_bounds = array<i64: 3, 8, 8>}, {pipeline_mode = #tpu.pipeline_mode<synchronous>, transform_indices = @transform_47, window_bounds = array<i64: 1, 8>}, {pipeline_mode = #tpu.pipeline_mode<synchronous>, transform_indices = @transform_48, window_bounds = array<i64: 1, 8>}, {pipeline_mode = #tpu.pipeline_mode<synchronous>, transform_indices = @transform_49, window_bounds = array<i64: 3, 8, 8>}, {pipeline_mode = #tpu.pipeline_mode<synchronous>, transform_indices = @transform_50, window_bounds = array<i64: 1, 8>}, {pipeline_mode = #tpu.pipeline_mode<synchronous>, transform_indices = @transform_51, window_bounds = array<i64: 1, 8>}, {pipeline_mode = #tpu.pipeline_mode<synchronous>, transform_indices = @transform_52, window_bounds = array<i64: 3, 8>}, {pipeline_mode = #tpu.pipeline_mode<synchronous>, transform_indices = @transform_53, window_bounds = array<i64: 3, 1>}, {transform_indices = @transform_54, window_bounds = array<i64: 1, 3, 16>}]} {
    %c0 = arith.constant 0 : index
    %c0_0 = arith.constant 0 : index
    %c0_1 = arith.constant 0 : index
    %0 = vector.load %arg1[%c0, %c0_0, %c0_1] : memref<1x16x4xf32, #tpu.memory_space<vmem>>, vector<1x16x4xf32>
    %1 = vector.shape_cast %0 : vector<1x16x4xf32> to vector<16x4xf32>
    %2 = arith.truncf %1 : vector<16x4xf32> to vector<16x4xbf16>
    %c0_2 = arith.constant 0 : index
    %c0_3 = arith.constant 0 : index
    %c0_4 = arith.constant 0 : index
    %3 = vector.load %arg2[%c0_2, %c0_3, %c0_4] : memref<3x4x8xbf16, #tpu.memory_space<vmem>>, vector<1x4x8xbf16>
    %4 = vector.shape_cast %3 : vector<1x4x8xbf16> to vector<4x8xbf16>
    %cst = arith.constant dense<0.000000e+00> : vector<16x8xf32>
    %5 = tpu.matmul %2, %4, %cst {dimension_numbers = #tpu.dot_dimension_numbers<[1], [0], [0], [1], [0, 0, 1, 1], [], []>} : vector<16x4xbf16>, vector<4x8xbf16>, vector<16x8xf32> -> vector<16x8xf32>
    %c1 = arith.constant 1 : index
    %c0_5 = arith.constant 0 : index
    %c0_6 = arith.constant 0 : index
    %6 = vector.load %arg2[%c1, %c0_5, %c0_6] : memref<3x4x8xbf16, #tpu.memory_space<vmem>>, vector<1x4x8xbf16>
    %7 = vector.shape_cast %6 : vector<1x4x8xbf16> to vector<4x8xbf16>
    %cst_7 = arith.constant dense<0.000000e+00> : vector<16x8xf32>
    %8 = tpu.matmul %2, %7, %cst_7 {dimension_numbers = #tpu.dot_dimension_numbers<[1], [0], [0], [1], [0, 0, 1, 1], [], []>} : vector<16x4xbf16>, vector<4x8xbf16>, vector<16x8xf32> -> vector<16x8xf32>
    %c2 = arith.constant 2 : index
    %c0_8 = arith.constant 0 : index
    %c0_9 = arith.constant 0 : index
    %9 = vector.load %arg2[%c2, %c0_8, %c0_9] : memref<3x4x8xbf16, #tpu.memory_space<vmem>>, vector<1x4x8xbf16>
    %10 = vector.shape_cast %9 : vector<1x4x8xbf16> to vector<4x8xbf16>
    %cst_10 = arith.constant dense<0.000000e+00> : vector<16x8xf32>
    %11 = tpu.matmul %2, %10, %cst_10 {dimension_numbers = #tpu.dot_dimension_numbers<[1], [0], [0], [1], [0, 0, 1, 1], [], []>} : vector<16x4xbf16>, vector<4x8xbf16>, vector<16x8xf32> -> vector<16x8xf32>
    %cst_11 = arith.constant 0.000000e+00 : f32
    %12 = vector.broadcast %cst_11 : f32 to vector<1x8xf32>
    %13 = vector.extract_strided_slice %5 {offsets = [0, 0], sizes = [15, 8], strides = [1, 1]} : vector<16x8xf32> to vector<15x8xf32>
    %14 = tpu.concatenate %12, %13 in 0 : vector<1x8xf32>, vector<15x8xf32> -> vector<16x8xf32>
    %15 = vector.extract_strided_slice %11 {offsets = [1, 0], sizes = [15, 8], strides = [1, 1]} : vector<16x8xf32> to vector<15x8xf32>
    %16 = tpu.concatenate %15, %12 in 0 : vector<15x8xf32>, vector<1x8xf32> -> vector<16x8xf32>
    %17 = arith.addf %14, %8 : vector<16x8xf32>
    %18 = arith.addf %17, %16 : vector<16x8xf32>
    %c0_12 = arith.constant 0 : index
    %c0_13 = arith.constant 0 : index
    %19 = vector.load %arg3[%c0_12, %c0_13] : memref<1x8xf32, #tpu.memory_space<vmem>>, vector<1x8xf32>
    %20 = vector.broadcast %19 : vector<1x8xf32> to vector<16x8xf32>
    %21 = arith.mulf %18, %20 : vector<16x8xf32>
    %c0_14 = arith.constant 0 : index
    %c0_15 = arith.constant 0 : index
    %22 = vector.load %arg4[%c0_14, %c0_15] : memref<1x8xf32, #tpu.memory_space<vmem>>, vector<1x8xf32>
    %23 = vector.broadcast %22 : vector<1x8xf32> to vector<16x8xf32>
    %24 = arith.addf %21, %23 : vector<16x8xf32>
    %cst_16 = arith.constant 0.000000e+00 : f32
    %25 = vector.broadcast %cst_16 : f32 to vector<16x8xf32>
    %26 = arith.maximumf %24, %25 : vector<16x8xf32>
    %27 = arith.truncf %26 : vector<16x8xf32> to vector<16x8xbf16>
    %c0_17 = arith.constant 0 : index
    %c0_18 = arith.constant 0 : index
    %c0_19 = arith.constant 0 : index
    %28 = vector.load %arg5[%c0_17, %c0_18, %c0_19] : memref<3x8x8xbf16, #tpu.memory_space<vmem>>, vector<1x8x8xbf16>
    %29 = vector.shape_cast %28 : vector<1x8x8xbf16> to vector<8x8xbf16>
    %cst_20 = arith.constant dense<0.000000e+00> : vector<16x8xf32>
    %30 = tpu.matmul %27, %29, %cst_20 {dimension_numbers = #tpu.dot_dimension_numbers<[1], [0], [0], [1], [0, 0, 1, 1], [], []>} : vector<16x8xbf16>, vector<8x8xbf16>, vector<16x8xf32> -> vector<16x8xf32>
    %c1_21 = arith.constant 1 : index
    %c0_22 = arith.constant 0 : index
    %c0_23 = arith.constant 0 : index
    %31 = vector.load %arg5[%c1_21, %c0_22, %c0_23] : memref<3x8x8xbf16, #tpu.memory_space<vmem>>, vector<1x8x8xbf16>
    %32 = vector.shape_cast %31 : vector<1x8x8xbf16> to vector<8x8xbf16>
    %cst_24 = arith.constant dense<0.000000e+00> : vector<16x8xf32>
    %33 = tpu.matmul %27, %32, %cst_24 {dimension_numbers = #tpu.dot_dimension_numbers<[1], [0], [0], [1], [0, 0, 1, 1], [], []>} : vector<16x8xbf16>, vector<8x8xbf16>, vector<16x8xf32> -> vector<16x8xf32>
    %c2_25 = arith.constant 2 : index
    %c0_26 = arith.constant 0 : index
    %c0_27 = arith.constant 0 : index
    %34 = vector.load %arg5[%c2_25, %c0_26, %c0_27] : memref<3x8x8xbf16, #tpu.memory_space<vmem>>, vector<1x8x8xbf16>
    %35 = vector.shape_cast %34 : vector<1x8x8xbf16> to vector<8x8xbf16>
    %cst_28 = arith.constant dense<0.000000e+00> : vector<16x8xf32>
    %36 = tpu.matmul %27, %35, %cst_28 {dimension_numbers = #tpu.dot_dimension_numbers<[1], [0], [0], [1], [0, 0, 1, 1], [], []>} : vector<16x8xbf16>, vector<8x8xbf16>, vector<16x8xf32> -> vector<16x8xf32>
    %cst_29 = arith.constant 0.000000e+00 : f32
    %37 = vector.broadcast %cst_29 : f32 to vector<1x8xf32>
    %38 = vector.extract_strided_slice %30 {offsets = [0, 0], sizes = [15, 8], strides = [1, 1]} : vector<16x8xf32> to vector<15x8xf32>
    %39 = tpu.concatenate %37, %38 in 0 : vector<1x8xf32>, vector<15x8xf32> -> vector<16x8xf32>
    %40 = vector.extract_strided_slice %36 {offsets = [1, 0], sizes = [15, 8], strides = [1, 1]} : vector<16x8xf32> to vector<15x8xf32>
    %41 = tpu.concatenate %40, %37 in 0 : vector<15x8xf32>, vector<1x8xf32> -> vector<16x8xf32>
    %42 = arith.addf %39, %33 : vector<16x8xf32>
    %43 = arith.addf %42, %41 : vector<16x8xf32>
    %c0_30 = arith.constant 0 : index
    %c0_31 = arith.constant 0 : index
    %44 = vector.load %arg6[%c0_30, %c0_31] : memref<1x8xf32, #tpu.memory_space<vmem>>, vector<1x8xf32>
    %45 = vector.broadcast %44 : vector<1x8xf32> to vector<16x8xf32>
    %46 = arith.mulf %43, %45 : vector<16x8xf32>
    %c0_32 = arith.constant 0 : index
    %c0_33 = arith.constant 0 : index
    %47 = vector.load %arg7[%c0_32, %c0_33] : memref<1x8xf32, #tpu.memory_space<vmem>>, vector<1x8xf32>
    %48 = vector.broadcast %47 : vector<1x8xf32> to vector<16x8xf32>
    %49 = arith.addf %46, %48 : vector<16x8xf32>
    %cst_34 = arith.constant 0.000000e+00 : f32
    %50 = vector.broadcast %cst_34 : f32 to vector<16x8xf32>
    %51 = arith.maximumf %49, %50 : vector<16x8xf32>
    %c0_35 = arith.constant 0 : index
    %c0_36 = arith.constant 0 : index
    %52 = vector.load %arg56[%c0_35, %c0_36] : memref<16x8xf32, #tpu.memory_space<vmem>>, vector<16x8xf32>
    tpu.vector_store %arg56[%c0_35, %c0_36], %51 {strides = array<i32>} : memref<16x8xf32, #tpu.memory_space<vmem>>, vector<16x8xf32>,
    %c0_37 = arith.constant 0 : index
    %c0_38 = arith.constant 0 : index
    %53 = tpu.strided_load %arg56[%c0_37, %c0_38] {strides = array<i32: 2, 1>} : memref<16x8xf32, #tpu.memory_space<vmem>>, vector<8x8xf32>
    %c1_39 = arith.constant 1 : index
    %c0_40 = arith.constant 0 : index
    %54 = tpu.strided_load %arg56[%c1_39, %c0_40] {strides = array<i32: 2, 1>} : memref<16x8xf32, #tpu.memory_space<vmem>>, vector<8x8xf32>
    %55 = arith.maximumf %53, %54 : vector<8x8xf32>
    %56 = arith.truncf %55 : vector<8x8xf32> to vector<8x8xbf16>
    %c0_41 = arith.constant 0 : index
    %c0_42 = arith.constant 0 : index
    %c0_43 = arith.constant 0 : index
    %57 = vector.load %arg8[%c0_41, %c0_42, %c0_43] : memref<3x8x16xbf16, #tpu.memory_space<vmem>>, vector<1x8x16xbf16>
    %58 = vector.shape_cast %57 : vector<1x8x16xbf16> to vector<8x16xbf16>
    %cst_44 = arith.constant dense<0.000000e+00> : vector<8x16xf32>
    %59 = tpu.matmul %56, %58, %cst_44 {dimension_numbers = #tpu.dot_dimension_numbers<[1], [0], [0], [1], [0, 0, 1, 1], [], []>} : vector<8x8xbf16>, vector<8x16xbf16>, vector<8x16xf32> -> vector<8x16xf32>
    %c1_45 = arith.constant 1 : index
    %c0_46 = arith.constant 0 : index
    %c0_47 = arith.constant 0 : index
    %60 = vector.load %arg8[%c1_45, %c0_46, %c0_47] : memref<3x8x16xbf16, #tpu.memory_space<vmem>>, vector<1x8x16xbf16>
    %61 = vector.shape_cast %60 : vector<1x8x16xbf16> to vector<8x16xbf16>
    %cst_48 = arith.constant dense<0.000000e+00> : vector<8x16xf32>
    %62 = tpu.matmul %56, %61, %cst_48 {dimension_numbers = #tpu.dot_dimension_numbers<[1], [0], [0], [1], [0, 0, 1, 1], [], []>} : vector<8x8xbf16>, vector<8x16xbf16>, vector<8x16xf32> -> vector<8x16xf32>
    %c2_49 = arith.constant 2 : index
    %c0_50 = arith.constant 0 : index
    %c0_51 = arith.constant 0 : index
    %63 = vector.load %arg8[%c2_49, %c0_50, %c0_51] : memref<3x8x16xbf16, #tpu.memory_space<vmem>>, vector<1x8x16xbf16>
    %64 = vector.shape_cast %63 : vector<1x8x16xbf16> to vector<8x16xbf16>
    %cst_52 = arith.constant dense<0.000000e+00> : vector<8x16xf32>
    %65 = tpu.matmul %56, %64, %cst_52 {dimension_numbers = #tpu.dot_dimension_numbers<[1], [0], [0], [1], [0, 0, 1, 1], [], []>} : vector<8x8xbf16>, vector<8x16xbf16>, vector<8x16xf32> -> vector<8x16xf32>
    %cst_53 = arith.constant 0.000000e+00 : f32
    %66 = vector.broadcast %cst_53 : f32 to vector<1x16xf32>
    %67 = vector.extract_strided_slice %59 {offsets = [0, 0], sizes = [7, 16], strides = [1, 1]} : vector<8x16xf32> to vector<7x16xf32>
    %68 = tpu.concatenate %66, %67 in 0 : vector<1x16xf32>, vector<7x16xf32> -> vector<8x16xf32>
    %69 = vector.extract_strided_slice %65 {offsets = [1, 0], sizes = [7, 16], strides = [1, 1]} : vector<8x16xf32> to vector<7x16xf32>
    %70 = tpu.concatenate %69, %66 in 0 : vector<7x16xf32>, vector<1x16xf32> -> vector<8x16xf32>
    %71 = arith.addf %68, %62 : vector<8x16xf32>
    %72 = arith.addf %71, %70 : vector<8x16xf32>
    %c0_54 = arith.constant 0 : index
    %c0_55 = arith.constant 0 : index
    %73 = vector.load %arg9[%c0_54, %c0_55] : memref<1x16xf32, #tpu.memory_space<vmem>>, vector<1x16xf32>
    %74 = vector.broadcast %73 : vector<1x16xf32> to vector<8x16xf32>
    %75 = arith.mulf %72, %74 : vector<8x16xf32>
    %c0_56 = arith.constant 0 : index
    %c0_57 = arith.constant 0 : index
    %76 = vector.load %arg10[%c0_56, %c0_57] : memref<1x16xf32, #tpu.memory_space<vmem>>, vector<1x16xf32>
    %77 = vector.broadcast %76 : vector<1x16xf32> to vector<8x16xf32>
    %78 = arith.addf %75, %77 : vector<8x16xf32>
    %cst_58 = arith.constant 0.000000e+00 : f32
    %79 = vector.broadcast %cst_58 : f32 to vector<8x16xf32>
    %80 = arith.maximumf %78, %79 : vector<8x16xf32>
    %81 = arith.truncf %80 : vector<8x16xf32> to vector<8x16xbf16>
    %c0_59 = arith.constant 0 : index
    %c0_60 = arith.constant 0 : index
    %c0_61 = arith.constant 0 : index
    %82 = vector.load %arg11[%c0_59, %c0_60, %c0_61] : memref<3x16x16xbf16, #tpu.memory_space<vmem>>, vector<1x16x16xbf16>
    %83 = vector.shape_cast %82 : vector<1x16x16xbf16> to vector<16x16xbf16>
    %cst_62 = arith.constant dense<0.000000e+00> : vector<8x16xf32>
    %84 = tpu.matmul %81, %83, %cst_62 {dimension_numbers = #tpu.dot_dimension_numbers<[1], [0], [0], [1], [0, 0, 1, 1], [], []>} : vector<8x16xbf16>, vector<16x16xbf16>, vector<8x16xf32> -> vector<8x16xf32>
    %c1_63 = arith.constant 1 : index
    %c0_64 = arith.constant 0 : index
    %c0_65 = arith.constant 0 : index
    %85 = vector.load %arg11[%c1_63, %c0_64, %c0_65] : memref<3x16x16xbf16, #tpu.memory_space<vmem>>, vector<1x16x16xbf16>
    %86 = vector.shape_cast %85 : vector<1x16x16xbf16> to vector<16x16xbf16>
    %cst_66 = arith.constant dense<0.000000e+00> : vector<8x16xf32>
    %87 = tpu.matmul %81, %86, %cst_66 {dimension_numbers = #tpu.dot_dimension_numbers<[1], [0], [0], [1], [0, 0, 1, 1], [], []>} : vector<8x16xbf16>, vector<16x16xbf16>, vector<8x16xf32> -> vector<8x16xf32>
    %c2_67 = arith.constant 2 : index
    %c0_68 = arith.constant 0 : index
    %c0_69 = arith.constant 0 : index
    %88 = vector.load %arg11[%c2_67, %c0_68, %c0_69] : memref<3x16x16xbf16, #tpu.memory_space<vmem>>, vector<1x16x16xbf16>
    %89 = vector.shape_cast %88 : vector<1x16x16xbf16> to vector<16x16xbf16>
    %cst_70 = arith.constant dense<0.000000e+00> : vector<8x16xf32>
    %90 = tpu.matmul %81, %89, %cst_70 {dimension_numbers = #tpu.dot_dimension_numbers<[1], [0], [0], [1], [0, 0, 1, 1], [], []>} : vector<8x16xbf16>, vector<16x16xbf16>, vector<8x16xf32> -> vector<8x16xf32>
    %cst_71 = arith.constant 0.000000e+00 : f32
    %91 = vector.broadcast %cst_71 : f32 to vector<1x16xf32>
    %92 = vector.extract_strided_slice %84 {offsets = [0, 0], sizes = [7, 16], strides = [1, 1]} : vector<8x16xf32> to vector<7x16xf32>
    %93 = tpu.concatenate %91, %92 in 0 : vector<1x16xf32>, vector<7x16xf32> -> vector<8x16xf32>
    %94 = vector.extract_strided_slice %90 {offsets = [1, 0], sizes = [7, 16], strides = [1, 1]} : vector<8x16xf32> to vector<7x16xf32>
    %95 = tpu.concatenate %94, %91 in 0 : vector<7x16xf32>, vector<1x16xf32> -> vector<8x16xf32>
    %96 = arith.addf %93, %87 : vector<8x16xf32>
    %97 = arith.addf %96, %95 : vector<8x16xf32>
    %c0_72 = arith.constant 0 : index
    %c0_73 = arith.constant 0 : index
    %98 = vector.load %arg12[%c0_72, %c0_73] : memref<1x16xf32, #tpu.memory_space<vmem>>, vector<1x16xf32>
    %99 = vector.broadcast %98 : vector<1x16xf32> to vector<8x16xf32>
    %100 = arith.mulf %97, %99 : vector<8x16xf32>
    %c0_74 = arith.constant 0 : index
    %c0_75 = arith.constant 0 : index
    %101 = vector.load %arg13[%c0_74, %c0_75] : memref<1x16xf32, #tpu.memory_space<vmem>>, vector<1x16xf32>
    %102 = vector.broadcast %101 : vector<1x16xf32> to vector<8x16xf32>
    %103 = arith.addf %100, %102 : vector<8x16xf32>
    %cst_76 = arith.constant 0.000000e+00 : f32
    %104 = vector.broadcast %cst_76 : f32 to vector<8x16xf32>
    %105 = arith.maximumf %103, %104 : vector<8x16xf32>
    %c0_77 = arith.constant 0 : index
    %c0_78 = arith.constant 0 : index
    %106 = vector.load %arg57[%c0_77, %c0_78] : memref<8x16xf32, #tpu.memory_space<vmem>>, vector<8x16xf32>
    tpu.vector_store %arg57[%c0_77, %c0_78], %105 {strides = array<i32>} : memref<8x16xf32, #tpu.memory_space<vmem>>, vector<8x16xf32>,
    %c0_79 = arith.constant 0 : index
    %c0_80 = arith.constant 0 : index
    %107 = tpu.strided_load %arg57[%c0_79, %c0_80] {strides = array<i32: 2, 1>} : memref<8x16xf32, #tpu.memory_space<vmem>>, vector<4x16xf32>
    %c1_81 = arith.constant 1 : index
    %c0_82 = arith.constant 0 : index
    %108 = tpu.strided_load %arg57[%c1_81, %c0_82] {strides = array<i32: 2, 1>} : memref<8x16xf32, #tpu.memory_space<vmem>>, vector<4x16xf32>
    %109 = arith.maximumf %107, %108 : vector<4x16xf32>
    %110 = arith.truncf %109 : vector<4x16xf32> to vector<4x16xbf16>
    %c0_83 = arith.constant 0 : index
    %c0_84 = arith.constant 0 : index
    %c0_85 = arith.constant 0 : index
    %111 = vector.load %arg14[%c0_83, %c0_84, %c0_85] : memref<3x16x32xbf16, #tpu.memory_space<vmem>>, vector<1x16x32xbf16>
    %112 = vector.shape_cast %111 : vector<1x16x32xbf16> to vector<16x32xbf16>
    %cst_86 = arith.constant dense<0.000000e+00> : vector<4x32xf32>
    %113 = tpu.matmul %110, %112, %cst_86 {dimension_numbers = #tpu.dot_dimension_numbers<[1], [0], [0], [1], [0, 0, 1, 1], [], []>} : vector<4x16xbf16>, vector<16x32xbf16>, vector<4x32xf32> -> vector<4x32xf32>
    %c1_87 = arith.constant 1 : index
    %c0_88 = arith.constant 0 : index
    %c0_89 = arith.constant 0 : index
    %114 = vector.load %arg14[%c1_87, %c0_88, %c0_89] : memref<3x16x32xbf16, #tpu.memory_space<vmem>>, vector<1x16x32xbf16>
    %115 = vector.shape_cast %114 : vector<1x16x32xbf16> to vector<16x32xbf16>
    %cst_90 = arith.constant dense<0.000000e+00> : vector<4x32xf32>
    %116 = tpu.matmul %110, %115, %cst_90 {dimension_numbers = #tpu.dot_dimension_numbers<[1], [0], [0], [1], [0, 0, 1, 1], [], []>} : vector<4x16xbf16>, vector<16x32xbf16>, vector<4x32xf32> -> vector<4x32xf32>
    %c2_91 = arith.constant 2 : index
    %c0_92 = arith.constant 0 : index
    %c0_93 = arith.constant 0 : index
    %117 = vector.load %arg14[%c2_91, %c0_92, %c0_93] : memref<3x16x32xbf16, #tpu.memory_space<vmem>>, vector<1x16x32xbf16>
    %118 = vector.shape_cast %117 : vector<1x16x32xbf16> to vector<16x32xbf16>
    %cst_94 = arith.constant dense<0.000000e+00> : vector<4x32xf32>
    %119 = tpu.matmul %110, %118, %cst_94 {dimension_numbers = #tpu.dot_dimension_numbers<[1], [0], [0], [1], [0, 0, 1, 1], [], []>} : vector<4x16xbf16>, vector<16x32xbf16>, vector<4x32xf32> -> vector<4x32xf32>
    %cst_95 = arith.constant 0.000000e+00 : f32
    %120 = vector.broadcast %cst_95 : f32 to vector<1x32xf32>
    %121 = vector.extract_strided_slice %113 {offsets = [0, 0], sizes = [3, 32], strides = [1, 1]} : vector<4x32xf32> to vector<3x32xf32>
    %122 = tpu.concatenate %120, %121 in 0 : vector<1x32xf32>, vector<3x32xf32> -> vector<4x32xf32>
    %123 = vector.extract_strided_slice %119 {offsets = [1, 0], sizes = [3, 32], strides = [1, 1]} : vector<4x32xf32> to vector<3x32xf32>
    %124 = tpu.concatenate %123, %120 in 0 : vector<3x32xf32>, vector<1x32xf32> -> vector<4x32xf32>
    %125 = arith.addf %122, %116 : vector<4x32xf32>
    %126 = arith.addf %125, %124 : vector<4x32xf32>
    %c0_96 = arith.constant 0 : index
    %c0_97 = arith.constant 0 : index
    %127 = vector.load %arg15[%c0_96, %c0_97] : memref<1x32xf32, #tpu.memory_space<vmem>>, vector<1x32xf32>
    %128 = vector.broadcast %127 : vector<1x32xf32> to vector<4x32xf32>
    %129 = arith.mulf %126, %128 : vector<4x32xf32>
    %c0_98 = arith.constant 0 : index
    %c0_99 = arith.constant 0 : index
    %130 = vector.load %arg16[%c0_98, %c0_99] : memref<1x32xf32, #tpu.memory_space<vmem>>, vector<1x32xf32>
    %131 = vector.broadcast %130 : vector<1x32xf32> to vector<4x32xf32>
    %132 = arith.addf %129, %131 : vector<4x32xf32>
    %cst_100 = arith.constant 0.000000e+00 : f32
    %133 = vector.broadcast %cst_100 : f32 to vector<4x32xf32>
    %134 = arith.maximumf %132, %133 : vector<4x32xf32>
    %135 = arith.truncf %134 : vector<4x32xf32> to vector<4x32xbf16>
    %c0_101 = arith.constant 0 : index
    %c0_102 = arith.constant 0 : index
    %c0_103 = arith.constant 0 : index
    %136 = vector.load %arg17[%c0_101, %c0_102, %c0_103] : memref<3x32x32xbf16, #tpu.memory_space<vmem>>, vector<1x32x32xbf16>
    %137 = vector.shape_cast %136 : vector<1x32x32xbf16> to vector<32x32xbf16>
    %cst_104 = arith.constant dense<0.000000e+00> : vector<4x32xf32>
    %138 = tpu.matmul %135, %137, %cst_104 {dimension_numbers = #tpu.dot_dimension_numbers<[1], [0], [0], [1], [0, 0, 1, 1], [], []>} : vector<4x32xbf16>, vector<32x32xbf16>, vector<4x32xf32> -> vector<4x32xf32>
    %c1_105 = arith.constant 1 : index
    %c0_106 = arith.constant 0 : index
    %c0_107 = arith.constant 0 : index
    %139 = vector.load %arg17[%c1_105, %c0_106, %c0_107] : memref<3x32x32xbf16, #tpu.memory_space<vmem>>, vector<1x32x32xbf16>
    %140 = vector.shape_cast %139 : vector<1x32x32xbf16> to vector<32x32xbf16>
    %cst_108 = arith.constant dense<0.000000e+00> : vector<4x32xf32>
    %141 = tpu.matmul %135, %140, %cst_108 {dimension_numbers = #tpu.dot_dimension_numbers<[1], [0], [0], [1], [0, 0, 1, 1], [], []>} : vector<4x32xbf16>, vector<32x32xbf16>, vector<4x32xf32> -> vector<4x32xf32>
    %c2_109 = arith.constant 2 : index
    %c0_110 = arith.constant 0 : index
    %c0_111 = arith.constant 0 : index
    %142 = vector.load %arg17[%c2_109, %c0_110, %c0_111] : memref<3x32x32xbf16, #tpu.memory_space<vmem>>, vector<1x32x32xbf16>
    %143 = vector.shape_cast %142 : vector<1x32x32xbf16> to vector<32x32xbf16>
    %cst_112 = arith.constant dense<0.000000e+00> : vector<4x32xf32>
    %144 = tpu.matmul %135, %143, %cst_112 {dimension_numbers = #tpu.dot_dimension_numbers<[1], [0], [0], [1], [0, 0, 1, 1], [], []>} : vector<4x32xbf16>, vector<32x32xbf16>, vector<4x32xf32> -> vector<4x32xf32>
    %cst_113 = arith.constant 0.000000e+00 : f32
    %145 = vector.broadcast %cst_113 : f32 to vector<1x32xf32>
    %146 = vector.extract_strided_slice %138 {offsets = [0, 0], sizes = [3, 32], strides = [1, 1]} : vector<4x32xf32> to vector<3x32xf32>
    %147 = tpu.concatenate %145, %146 in 0 : vector<1x32xf32>, vector<3x32xf32> -> vector<4x32xf32>
    %148 = vector.extract_strided_slice %144 {offsets = [1, 0], sizes = [3, 32], strides = [1, 1]} : vector<4x32xf32> to vector<3x32xf32>
    %149 = tpu.concatenate %148, %145 in 0 : vector<3x32xf32>, vector<1x32xf32> -> vector<4x32xf32>
    %150 = arith.addf %147, %141 : vector<4x32xf32>
    %151 = arith.addf %150, %149 : vector<4x32xf32>
    %c0_114 = arith.constant 0 : index
    %c0_115 = arith.constant 0 : index
    %152 = vector.load %arg18[%c0_114, %c0_115] : memref<1x32xf32, #tpu.memory_space<vmem>>, vector<1x32xf32>
    %153 = vector.broadcast %152 : vector<1x32xf32> to vector<4x32xf32>
    %154 = arith.mulf %151, %153 : vector<4x32xf32>
    %c0_116 = arith.constant 0 : index
    %c0_117 = arith.constant 0 : index
    %155 = vector.load %arg19[%c0_116, %c0_117] : memref<1x32xf32, #tpu.memory_space<vmem>>, vector<1x32xf32>
    %156 = vector.broadcast %155 : vector<1x32xf32> to vector<4x32xf32>
    %157 = arith.addf %154, %156 : vector<4x32xf32>
    %cst_118 = arith.constant 0.000000e+00 : f32
    %158 = vector.broadcast %cst_118 : f32 to vector<4x32xf32>
    %159 = arith.maximumf %157, %158 : vector<4x32xf32>
    %c0_119 = arith.constant 0 : index
    %c0_120 = arith.constant 0 : index
    %160 = vector.load %arg58[%c0_119, %c0_120] : memref<4x32xf32, #tpu.memory_space<vmem>>, vector<4x32xf32>
    tpu.vector_store %arg58[%c0_119, %c0_120], %159 {strides = array<i32>} : memref<4x32xf32, #tpu.memory_space<vmem>>, vector<4x32xf32>,
    %c0_121 = arith.constant 0 : index
    %c0_122 = arith.constant 0 : index
    %161 = tpu.strided_load %arg58[%c0_121, %c0_122] {strides = array<i32: 2, 1>} : memref<4x32xf32, #tpu.memory_space<vmem>>, vector<2x32xf32>
    %c1_123 = arith.constant 1 : index
    %c0_124 = arith.constant 0 : index
    %162 = tpu.strided_load %arg58[%c1_123, %c0_124] {strides = array<i32: 2, 1>} : memref<4x32xf32, #tpu.memory_space<vmem>>, vector<2x32xf32>
    %163 = arith.maximumf %161, %162 : vector<2x32xf32>
    %164 = arith.truncf %163 : vector<2x32xf32> to vector<2x32xbf16>
    %c0_125 = arith.constant 0 : index
    %c0_126 = arith.constant 0 : index
    %c0_127 = arith.constant 0 : index
    %165 = vector.load %arg20[%c0_125, %c0_126, %c0_127] : memref<3x32x64xbf16, #tpu.memory_space<vmem>>, vector<1x32x64xbf16>
    %166 = vector.shape_cast %165 : vector<1x32x64xbf16> to vector<32x64xbf16>
    %cst_128 = arith.constant dense<0.000000e+00> : vector<2x64xf32>
    %167 = tpu.matmul %164, %166, %cst_128 {dimension_numbers = #tpu.dot_dimension_numbers<[1], [0], [0], [1], [0, 0, 1, 1], [], []>} : vector<2x32xbf16>, vector<32x64xbf16>, vector<2x64xf32> -> vector<2x64xf32>
    %c1_129 = arith.constant 1 : index
    %c0_130 = arith.constant 0 : index
    %c0_131 = arith.constant 0 : index
    %168 = vector.load %arg20[%c1_129, %c0_130, %c0_131] : memref<3x32x64xbf16, #tpu.memory_space<vmem>>, vector<1x32x64xbf16>
    %169 = vector.shape_cast %168 : vector<1x32x64xbf16> to vector<32x64xbf16>
    %cst_132 = arith.constant dense<0.000000e+00> : vector<2x64xf32>
    %170 = tpu.matmul %164, %169, %cst_132 {dimension_numbers = #tpu.dot_dimension_numbers<[1], [0], [0], [1], [0, 0, 1, 1], [], []>} : vector<2x32xbf16>, vector<32x64xbf16>, vector<2x64xf32> -> vector<2x64xf32>
    %c2_133 = arith.constant 2 : index
    %c0_134 = arith.constant 0 : index
    %c0_135 = arith.constant 0 : index
    %171 = vector.load %arg20[%c2_133, %c0_134, %c0_135] : memref<3x32x64xbf16, #tpu.memory_space<vmem>>, vector<1x32x64xbf16>
    %172 = vector.shape_cast %171 : vector<1x32x64xbf16> to vector<32x64xbf16>
    %cst_136 = arith.constant dense<0.000000e+00> : vector<2x64xf32>
    %173 = tpu.matmul %164, %172, %cst_136 {dimension_numbers = #tpu.dot_dimension_numbers<[1], [0], [0], [1], [0, 0, 1, 1], [], []>} : vector<2x32xbf16>, vector<32x64xbf16>, vector<2x64xf32> -> vector<2x64xf32>
    %cst_137 = arith.constant 0.000000e+00 : f32
    %174 = vector.broadcast %cst_137 : f32 to vector<1x64xf32>
    %175 = vector.extract_strided_slice %167 {offsets = [0, 0], sizes = [1, 64], strides = [1, 1]} : vector<2x64xf32> to vector<1x64xf32>
    %176 = tpu.concatenate %174, %175 in 0 : vector<1x64xf32>, vector<1x64xf32> -> vector<2x64xf32>
    %177 = vector.extract_strided_slice %173 {offsets = [1, 0], sizes = [1, 64], strides = [1, 1]} : vector<2x64xf32> to vector<1x64xf32>
    %178 = tpu.concatenate %177, %174 in 0 : vector<1x64xf32>, vector<1x64xf32> -> vector<2x64xf32>
    %179 = arith.addf %176, %170 : vector<2x64xf32>
    %180 = arith.addf %179, %178 : vector<2x64xf32>
    %c0_138 = arith.constant 0 : index
    %c0_139 = arith.constant 0 : index
    %181 = vector.load %arg21[%c0_138, %c0_139] : memref<1x64xf32, #tpu.memory_space<vmem>>, vector<1x64xf32>
    %182 = vector.broadcast %181 : vector<1x64xf32> to vector<2x64xf32>
    %183 = arith.mulf %180, %182 : vector<2x64xf32>
    %c0_140 = arith.constant 0 : index
    %c0_141 = arith.constant 0 : index
    %184 = vector.load %arg22[%c0_140, %c0_141] : memref<1x64xf32, #tpu.memory_space<vmem>>, vector<1x64xf32>
    %185 = vector.broadcast %184 : vector<1x64xf32> to vector<2x64xf32>
    %186 = arith.addf %183, %185 : vector<2x64xf32>
    %cst_142 = arith.constant 0.000000e+00 : f32
    %187 = vector.broadcast %cst_142 : f32 to vector<2x64xf32>
    %188 = arith.maximumf %186, %187 : vector<2x64xf32>
    %189 = arith.truncf %188 : vector<2x64xf32> to vector<2x64xbf16>
    %c0_143 = arith.constant 0 : index
    %c0_144 = arith.constant 0 : index
    %c0_145 = arith.constant 0 : index
    %190 = vector.load %arg23[%c0_143, %c0_144, %c0_145] : memref<3x64x64xbf16, #tpu.memory_space<vmem>>, vector<1x64x64xbf16>
    %191 = vector.shape_cast %190 : vector<1x64x64xbf16> to vector<64x64xbf16>
    %cst_146 = arith.constant dense<0.000000e+00> : vector<2x64xf32>
    %192 = tpu.matmul %189, %191, %cst_146 {dimension_numbers = #tpu.dot_dimension_numbers<[1], [0], [0], [1], [0, 0, 1, 1], [], []>} : vector<2x64xbf16>, vector<64x64xbf16>, vector<2x64xf32> -> vector<2x64xf32>
    %c1_147 = arith.constant 1 : index
    %c0_148 = arith.constant 0 : index
    %c0_149 = arith.constant 0 : index
    %193 = vector.load %arg23[%c1_147, %c0_148, %c0_149] : memref<3x64x64xbf16, #tpu.memory_space<vmem>>, vector<1x64x64xbf16>
    %194 = vector.shape_cast %193 : vector<1x64x64xbf16> to vector<64x64xbf16>
    %cst_150 = arith.constant dense<0.000000e+00> : vector<2x64xf32>
    %195 = tpu.matmul %189, %194, %cst_150 {dimension_numbers = #tpu.dot_dimension_numbers<[1], [0], [0], [1], [0, 0, 1, 1], [], []>} : vector<2x64xbf16>, vector<64x64xbf16>, vector<2x64xf32> -> vector<2x64xf32>
    %c2_151 = arith.constant 2 : index
    %c0_152 = arith.constant 0 : index
    %c0_153 = arith.constant 0 : index
    %196 = vector.load %arg23[%c2_151, %c0_152, %c0_153] : memref<3x64x64xbf16, #tpu.memory_space<vmem>>, vector<1x64x64xbf16>
    %197 = vector.shape_cast %196 : vector<1x64x64xbf16> to vector<64x64xbf16>
    %cst_154 = arith.constant dense<0.000000e+00> : vector<2x64xf32>
    %198 = tpu.matmul %189, %197, %cst_154 {dimension_numbers = #tpu.dot_dimension_numbers<[1], [0], [0], [1], [0, 0, 1, 1], [], []>} : vector<2x64xbf16>, vector<64x64xbf16>, vector<2x64xf32> -> vector<2x64xf32>
    %cst_155 = arith.constant 0.000000e+00 : f32
    %199 = vector.broadcast %cst_155 : f32 to vector<1x64xf32>
    %200 = vector.extract_strided_slice %192 {offsets = [0, 0], sizes = [1, 64], strides = [1, 1]} : vector<2x64xf32> to vector<1x64xf32>
    %201 = tpu.concatenate %199, %200 in 0 : vector<1x64xf32>, vector<1x64xf32> -> vector<2x64xf32>
    %202 = vector.extract_strided_slice %198 {offsets = [1, 0], sizes = [1, 64], strides = [1, 1]} : vector<2x64xf32> to vector<1x64xf32>
    %203 = tpu.concatenate %202, %199 in 0 : vector<1x64xf32>, vector<1x64xf32> -> vector<2x64xf32>
    %204 = arith.addf %201, %195 : vector<2x64xf32>
    %205 = arith.addf %204, %203 : vector<2x64xf32>
    %c0_156 = arith.constant 0 : index
    %c0_157 = arith.constant 0 : index
    %206 = vector.load %arg24[%c0_156, %c0_157] : memref<1x64xf32, #tpu.memory_space<vmem>>, vector<1x64xf32>
    %207 = vector.broadcast %206 : vector<1x64xf32> to vector<2x64xf32>
    %208 = arith.mulf %205, %207 : vector<2x64xf32>
    %c0_158 = arith.constant 0 : index
    %c0_159 = arith.constant 0 : index
    %209 = vector.load %arg25[%c0_158, %c0_159] : memref<1x64xf32, #tpu.memory_space<vmem>>, vector<1x64xf32>
    %210 = vector.broadcast %209 : vector<1x64xf32> to vector<2x64xf32>
    %211 = arith.addf %208, %210 : vector<2x64xf32>
    %cst_160 = arith.constant 0.000000e+00 : f32
    %212 = vector.broadcast %cst_160 : f32 to vector<2x64xf32>
    %213 = arith.maximumf %211, %212 : vector<2x64xf32>
    %214 = arith.truncf %213 : vector<2x64xf32> to vector<2x64xbf16>
    %c0_161 = arith.constant 0 : index
    %c0_162 = arith.constant 0 : index
    %c0_163 = arith.constant 0 : index
    %215 = vector.load %arg26[%c0_161, %c0_162, %c0_163] : memref<2x64x32xbf16, #tpu.memory_space<vmem>>, vector<1x64x32xbf16>
    %216 = vector.shape_cast %215 : vector<1x64x32xbf16> to vector<64x32xbf16>
    %cst_164 = arith.constant dense<0.000000e+00> : vector<2x32xf32>
    %217 = tpu.matmul %214, %216, %cst_164 {dimension_numbers = #tpu.dot_dimension_numbers<[1], [0], [0], [1], [0, 0, 1, 1], [], []>} : vector<2x64xbf16>, vector<64x32xbf16>, vector<2x32xf32> -> vector<2x32xf32>
    %c0_165 = arith.constant 0 : index
    %c0_166 = arith.constant 0 : index
    %218 = vector.load %arg27[%c0_165, %c0_166] : memref<1x32xf32, #tpu.memory_space<vmem>>, vector<1x32xf32>
    %219 = vector.broadcast %218 : vector<1x32xf32> to vector<2x32xf32>
    %220 = arith.addf %217, %219 : vector<2x32xf32>
    %c1_167 = arith.constant 1 : index
    %c0_168 = arith.constant 0 : index
    %c0_169 = arith.constant 0 : index
    %221 = vector.load %arg26[%c1_167, %c0_168, %c0_169] : memref<2x64x32xbf16, #tpu.memory_space<vmem>>, vector<1x64x32xbf16>
    %222 = vector.shape_cast %221 : vector<1x64x32xbf16> to vector<64x32xbf16>
    %cst_170 = arith.constant dense<0.000000e+00> : vector<2x32xf32>
    %223 = tpu.matmul %214, %222, %cst_170 {dimension_numbers = #tpu.dot_dimension_numbers<[1], [0], [0], [1], [0, 0, 1, 1], [], []>} : vector<2x64xbf16>, vector<64x32xbf16>, vector<2x32xf32> -> vector<2x32xf32>
    %c0_171 = arith.constant 0 : index
    %c0_172 = arith.constant 0 : index
    %224 = vector.load %arg27[%c0_171, %c0_172] : memref<1x32xf32, #tpu.memory_space<vmem>>, vector<1x32xf32>
    %225 = vector.broadcast %224 : vector<1x32xf32> to vector<2x32xf32>
    %226 = arith.addf %223, %225 : vector<2x32xf32>
    %c0_173 = arith.constant 0 : index
    %c0_174 = arith.constant 0 : index
    %227 = tpu.strided_load %arg59[%c0_173, %c0_174] {strides = array<i32: 2, 1>} : memref<4x32xf32, #tpu.memory_space<vmem>>, vector<2x32xf32>
    tpu.strided_store %arg59[%c0_173, %c0_174], %220 {strides = array<i32: 2, 1>} : memref<4x32xf32, #tpu.memory_space<vmem>>, vector<2x32xf32>
    %c1_175 = arith.constant 1 : index
    %c0_176 = arith.constant 0 : index
    %228 = tpu.strided_load %arg59[%c1_175, %c0_176] {strides = array<i32: 2, 1>} : memref<4x32xf32, #tpu.memory_space<vmem>>, vector<2x32xf32>
    tpu.strided_store %arg59[%c1_175, %c0_176], %226 {strides = array<i32: 2, 1>} : memref<4x32xf32, #tpu.memory_space<vmem>>, vector<2x32xf32>
    %c0_177 = arith.constant 0 : index
    %c0_178 = arith.constant 0 : index
    %229 = vector.load %arg58[%c0_177, %c0_178] : memref<4x32xf32, #tpu.memory_space<vmem>>, vector<4x32xf32>
    %230 = arith.truncf %229 : vector<4x32xf32> to vector<4x32xbf16>
    %c0_179 = arith.constant 0 : index
    %c0_180 = arith.constant 0 : index
    %c0_181 = arith.constant 0 : index
    %231 = vector.load %arg28[%c0_179, %c0_180, %c0_181] : memref<3x32x32xbf16, #tpu.memory_space<vmem>>, vector<1x32x32xbf16>
    %232 = vector.shape_cast %231 : vector<1x32x32xbf16> to vector<32x32xbf16>
    %cst_182 = arith.constant dense<0.000000e+00> : vector<4x32xf32>
    %233 = tpu.matmul %230, %232, %cst_182 {dimension_numbers = #tpu.dot_dimension_numbers<[1], [0], [0], [1], [0, 0, 1, 1], [], []>} : vector<4x32xbf16>, vector<32x32xbf16>, vector<4x32xf32> -> vector<4x32xf32>
    %c1_183 = arith.constant 1 : index
    %c0_184 = arith.constant 0 : index
    %c0_185 = arith.constant 0 : index
    %234 = vector.load %arg28[%c1_183, %c0_184, %c0_185] : memref<3x32x32xbf16, #tpu.memory_space<vmem>>, vector<1x32x32xbf16>
    %235 = vector.shape_cast %234 : vector<1x32x32xbf16> to vector<32x32xbf16>
    %cst_186 = arith.constant dense<0.000000e+00> : vector<4x32xf32>
    %236 = tpu.matmul %230, %235, %cst_186 {dimension_numbers = #tpu.dot_dimension_numbers<[1], [0], [0], [1], [0, 0, 1, 1], [], []>} : vector<4x32xbf16>, vector<32x32xbf16>, vector<4x32xf32> -> vector<4x32xf32>
    %c2_187 = arith.constant 2 : index
    %c0_188 = arith.constant 0 : index
    %c0_189 = arith.constant 0 : index
    %237 = vector.load %arg28[%c2_187, %c0_188, %c0_189] : memref<3x32x32xbf16, #tpu.memory_space<vmem>>, vector<1x32x32xbf16>
    %238 = vector.shape_cast %237 : vector<1x32x32xbf16> to vector<32x32xbf16>
    %cst_190 = arith.constant dense<0.000000e+00> : vector<4x32xf32>
    %239 = tpu.matmul %230, %238, %cst_190 {dimension_numbers = #tpu.dot_dimension_numbers<[1], [0], [0], [1], [0, 0, 1, 1], [], []>} : vector<4x32xbf16>, vector<32x32xbf16>, vector<4x32xf32> -> vector<4x32xf32>
    %cst_191 = arith.constant 0.000000e+00 : f32
    %240 = vector.broadcast %cst_191 : f32 to vector<1x32xf32>
    %241 = vector.extract_strided_slice %233 {offsets = [0, 0], sizes = [3, 32], strides = [1, 1]} : vector<4x32xf32> to vector<3x32xf32>
    %242 = tpu.concatenate %240, %241 in 0 : vector<1x32xf32>, vector<3x32xf32> -> vector<4x32xf32>
    %243 = vector.extract_strided_slice %239 {offsets = [1, 0], sizes = [3, 32], strides = [1, 1]} : vector<4x32xf32> to vector<3x32xf32>
    %244 = tpu.concatenate %243, %240 in 0 : vector<3x32xf32>, vector<1x32xf32> -> vector<4x32xf32>
    %245 = arith.addf %242, %236 : vector<4x32xf32>
    %246 = arith.addf %245, %244 : vector<4x32xf32>
    %c0_192 = arith.constant 0 : index
    %c0_193 = arith.constant 0 : index
    %247 = vector.load %arg59[%c0_192, %c0_193] : memref<4x32xf32, #tpu.memory_space<vmem>>, vector<4x32xf32>
    %248 = arith.truncf %247 : vector<4x32xf32> to vector<4x32xbf16>
    %c0_194 = arith.constant 0 : index
    %c0_195 = arith.constant 0 : index
    %c0_196 = arith.constant 0 : index
    %249 = vector.load %arg29[%c0_194, %c0_195, %c0_196] : memref<3x32x32xbf16, #tpu.memory_space<vmem>>, vector<1x32x32xbf16>
    %250 = vector.shape_cast %249 : vector<1x32x32xbf16> to vector<32x32xbf16>
    %cst_197 = arith.constant dense<0.000000e+00> : vector<4x32xf32>
    %251 = tpu.matmul %248, %250, %cst_197 {dimension_numbers = #tpu.dot_dimension_numbers<[1], [0], [0], [1], [0, 0, 1, 1], [], []>} : vector<4x32xbf16>, vector<32x32xbf16>, vector<4x32xf32> -> vector<4x32xf32>
    %c1_198 = arith.constant 1 : index
    %c0_199 = arith.constant 0 : index
    %c0_200 = arith.constant 0 : index
    %252 = vector.load %arg29[%c1_198, %c0_199, %c0_200] : memref<3x32x32xbf16, #tpu.memory_space<vmem>>, vector<1x32x32xbf16>
    %253 = vector.shape_cast %252 : vector<1x32x32xbf16> to vector<32x32xbf16>
    %cst_201 = arith.constant dense<0.000000e+00> : vector<4x32xf32>
    %254 = tpu.matmul %248, %253, %cst_201 {dimension_numbers = #tpu.dot_dimension_numbers<[1], [0], [0], [1], [0, 0, 1, 1], [], []>} : vector<4x32xbf16>, vector<32x32xbf16>, vector<4x32xf32> -> vector<4x32xf32>
    %c2_202 = arith.constant 2 : index
    %c0_203 = arith.constant 0 : index
    %c0_204 = arith.constant 0 : index
    %255 = vector.load %arg29[%c2_202, %c0_203, %c0_204] : memref<3x32x32xbf16, #tpu.memory_space<vmem>>, vector<1x32x32xbf16>
    %256 = vector.shape_cast %255 : vector<1x32x32xbf16> to vector<32x32xbf16>
    %cst_205 = arith.constant dense<0.000000e+00> : vector<4x32xf32>
    %257 = tpu.matmul %248, %256, %cst_205 {dimension_numbers = #tpu.dot_dimension_numbers<[1], [0], [0], [1], [0, 0, 1, 1], [], []>} : vector<4x32xbf16>, vector<32x32xbf16>, vector<4x32xf32> -> vector<4x32xf32>
    %cst_206 = arith.constant 0.000000e+00 : f32
    %258 = vector.broadcast %cst_206 : f32 to vector<1x32xf32>
    %259 = vector.extract_strided_slice %251 {offsets = [0, 0], sizes = [3, 32], strides = [1, 1]} : vector<4x32xf32> to vector<3x32xf32>
    %260 = tpu.concatenate %258, %259 in 0 : vector<1x32xf32>, vector<3x32xf32> -> vector<4x32xf32>
    %261 = vector.extract_strided_slice %257 {offsets = [1, 0], sizes = [3, 32], strides = [1, 1]} : vector<4x32xf32> to vector<3x32xf32>
    %262 = tpu.concatenate %261, %258 in 0 : vector<3x32xf32>, vector<1x32xf32> -> vector<4x32xf32>
    %263 = arith.addf %260, %254 : vector<4x32xf32>
    %264 = arith.addf %263, %262 : vector<4x32xf32>
    %265 = arith.addf %246, %264 : vector<4x32xf32>
    %c0_207 = arith.constant 0 : index
    %c0_208 = arith.constant 0 : index
    %266 = vector.load %arg30[%c0_207, %c0_208] : memref<1x32xf32, #tpu.memory_space<vmem>>, vector<1x32xf32>
    %267 = vector.broadcast %266 : vector<1x32xf32> to vector<4x32xf32>
    %268 = arith.mulf %265, %267 : vector<4x32xf32>
    %c0_209 = arith.constant 0 : index
    %c0_210 = arith.constant 0 : index
    %269 = vector.load %arg31[%c0_209, %c0_210] : memref<1x32xf32, #tpu.memory_space<vmem>>, vector<1x32xf32>
    %270 = vector.broadcast %269 : vector<1x32xf32> to vector<4x32xf32>
    %271 = arith.addf %268, %270 : vector<4x32xf32>
    %cst_211 = arith.constant 0.000000e+00 : f32
    %272 = vector.broadcast %cst_211 : f32 to vector<4x32xf32>
    %273 = arith.maximumf %271, %272 : vector<4x32xf32>
    %274 = arith.truncf %273 : vector<4x32xf32> to vector<4x32xbf16>
    %c0_212 = arith.constant 0 : index
    %c0_213 = arith.constant 0 : index
    %c0_214 = arith.constant 0 : index
    %275 = vector.load %arg32[%c0_212, %c0_213, %c0_214] : memref<3x32x32xbf16, #tpu.memory_space<vmem>>, vector<1x32x32xbf16>
    %276 = vector.shape_cast %275 : vector<1x32x32xbf16> to vector<32x32xbf16>
    %cst_215 = arith.constant dense<0.000000e+00> : vector<4x32xf32>
    %277 = tpu.matmul %274, %276, %cst_215 {dimension_numbers = #tpu.dot_dimension_numbers<[1], [0], [0], [1], [0, 0, 1, 1], [], []>} : vector<4x32xbf16>, vector<32x32xbf16>, vector<4x32xf32> -> vector<4x32xf32>
    %c1_216 = arith.constant 1 : index
    %c0_217 = arith.constant 0 : index
    %c0_218 = arith.constant 0 : index
    %278 = vector.load %arg32[%c1_216, %c0_217, %c0_218] : memref<3x32x32xbf16, #tpu.memory_space<vmem>>, vector<1x32x32xbf16>
    %279 = vector.shape_cast %278 : vector<1x32x32xbf16> to vector<32x32xbf16>
    %cst_219 = arith.constant dense<0.000000e+00> : vector<4x32xf32>
    %280 = tpu.matmul %274, %279, %cst_219 {dimension_numbers = #tpu.dot_dimension_numbers<[1], [0], [0], [1], [0, 0, 1, 1], [], []>} : vector<4x32xbf16>, vector<32x32xbf16>, vector<4x32xf32> -> vector<4x32xf32>
    %c2_220 = arith.constant 2 : index
    %c0_221 = arith.constant 0 : index
    %c0_222 = arith.constant 0 : index
    %281 = vector.load %arg32[%c2_220, %c0_221, %c0_222] : memref<3x32x32xbf16, #tpu.memory_space<vmem>>, vector<1x32x32xbf16>
    %282 = vector.shape_cast %281 : vector<1x32x32xbf16> to vector<32x32xbf16>
    %cst_223 = arith.constant dense<0.000000e+00> : vector<4x32xf32>
    %283 = tpu.matmul %274, %282, %cst_223 {dimension_numbers = #tpu.dot_dimension_numbers<[1], [0], [0], [1], [0, 0, 1, 1], [], []>} : vector<4x32xbf16>, vector<32x32xbf16>, vector<4x32xf32> -> vector<4x32xf32>
    %cst_224 = arith.constant 0.000000e+00 : f32
    %284 = vector.broadcast %cst_224 : f32 to vector<1x32xf32>
    %285 = vector.extract_strided_slice %277 {offsets = [0, 0], sizes = [3, 32], strides = [1, 1]} : vector<4x32xf32> to vector<3x32xf32>
    %286 = tpu.concatenate %284, %285 in 0 : vector<1x32xf32>, vector<3x32xf32> -> vector<4x32xf32>
    %287 = vector.extract_strided_slice %283 {offsets = [1, 0], sizes = [3, 32], strides = [1, 1]} : vector<4x32xf32> to vector<3x32xf32>
    %288 = tpu.concatenate %287, %284 in 0 : vector<3x32xf32>, vector<1x32xf32> -> vector<4x32xf32>
    %289 = arith.addf %286, %280 : vector<4x32xf32>
    %290 = arith.addf %289, %288 : vector<4x32xf32>
    %c0_225 = arith.constant 0 : index
    %c0_226 = arith.constant 0 : index
    %291 = vector.load %arg33[%c0_225, %c0_226] : memref<1x32xf32, #tpu.memory_space<vmem>>, vector<1x32xf32>
    %292 = vector.broadcast %291 : vector<1x32xf32> to vector<4x32xf32>
    %293 = arith.mulf %290, %292 : vector<4x32xf32>
    %c0_227 = arith.constant 0 : index
    %c0_228 = arith.constant 0 : index
    %294 = vector.load %arg34[%c0_227, %c0_228] : memref<1x32xf32, #tpu.memory_space<vmem>>, vector<1x32xf32>
    %295 = vector.broadcast %294 : vector<1x32xf32> to vector<4x32xf32>
    %296 = arith.addf %293, %295 : vector<4x32xf32>
    %cst_229 = arith.constant 0.000000e+00 : f32
    %297 = vector.broadcast %cst_229 : f32 to vector<4x32xf32>
    %298 = arith.maximumf %296, %297 : vector<4x32xf32>
    %299 = arith.truncf %298 : vector<4x32xf32> to vector<4x32xbf16>
    %c0_230 = arith.constant 0 : index
    %c0_231 = arith.constant 0 : index
    %c0_232 = arith.constant 0 : index
    %300 = vector.load %arg35[%c0_230, %c0_231, %c0_232] : memref<2x32x16xbf16, #tpu.memory_space<vmem>>, vector<1x32x16xbf16>
    %301 = vector.shape_cast %300 : vector<1x32x16xbf16> to vector<32x16xbf16>
    %cst_233 = arith.constant dense<0.000000e+00> : vector<4x16xf32>
    %302 = tpu.matmul %299, %301, %cst_233 {dimension_numbers = #tpu.dot_dimension_numbers<[1], [0], [0], [1], [0, 0, 1, 1], [], []>} : vector<4x32xbf16>, vector<32x16xbf16>, vector<4x16xf32> -> vector<4x16xf32>
    %c0_234 = arith.constant 0 : index
    %c0_235 = arith.constant 0 : index
    %303 = vector.load %arg36[%c0_234, %c0_235] : memref<1x16xf32, #tpu.memory_space<vmem>>, vector<1x16xf32>
    %304 = vector.broadcast %303 : vector<1x16xf32> to vector<4x16xf32>
    %305 = arith.addf %302, %304 : vector<4x16xf32>
    %c1_236 = arith.constant 1 : index
    %c0_237 = arith.constant 0 : index
    %c0_238 = arith.constant 0 : index
    %306 = vector.load %arg35[%c1_236, %c0_237, %c0_238] : memref<2x32x16xbf16, #tpu.memory_space<vmem>>, vector<1x32x16xbf16>
    %307 = vector.shape_cast %306 : vector<1x32x16xbf16> to vector<32x16xbf16>
    %cst_239 = arith.constant dense<0.000000e+00> : vector<4x16xf32>
    %308 = tpu.matmul %299, %307, %cst_239 {dimension_numbers = #tpu.dot_dimension_numbers<[1], [0], [0], [1], [0, 0, 1, 1], [], []>} : vector<4x32xbf16>, vector<32x16xbf16>, vector<4x16xf32> -> vector<4x16xf32>
    %c0_240 = arith.constant 0 : index
    %c0_241 = arith.constant 0 : index
    %309 = vector.load %arg36[%c0_240, %c0_241] : memref<1x16xf32, #tpu.memory_space<vmem>>, vector<1x16xf32>
    %310 = vector.broadcast %309 : vector<1x16xf32> to vector<4x16xf32>
    %311 = arith.addf %308, %310 : vector<4x16xf32>
    %c0_242 = arith.constant 0 : index
    %c0_243 = arith.constant 0 : index
    %312 = tpu.strided_load %arg60[%c0_242, %c0_243] {strides = array<i32: 2, 1>} : memref<8x16xf32, #tpu.memory_space<vmem>>, vector<4x16xf32>
    tpu.strided_store %arg60[%c0_242, %c0_243], %305 {strides = array<i32: 2, 1>} : memref<8x16xf32, #tpu.memory_space<vmem>>, vector<4x16xf32>
    %c1_244 = arith.constant 1 : index
    %c0_245 = arith.constant 0 : index
    %313 = tpu.strided_load %arg60[%c1_244, %c0_245] {strides = array<i32: 2, 1>} : memref<8x16xf32, #tpu.memory_space<vmem>>, vector<4x16xf32>
    tpu.strided_store %arg60[%c1_244, %c0_245], %311 {strides = array<i32: 2, 1>} : memref<8x16xf32, #tpu.memory_space<vmem>>, vector<4x16xf32>
    %c0_246 = arith.constant 0 : index
    %c0_247 = arith.constant 0 : index
    %314 = vector.load %arg57[%c0_246, %c0_247] : memref<8x16xf32, #tpu.memory_space<vmem>>, vector<8x16xf32>
    %315 = arith.truncf %314 : vector<8x16xf32> to vector<8x16xbf16>
    %c0_248 = arith.constant 0 : index
    %c0_249 = arith.constant 0 : index
    %c0_250 = arith.constant 0 : index
    %316 = vector.load %arg37[%c0_248, %c0_249, %c0_250] : memref<3x16x16xbf16, #tpu.memory_space<vmem>>, vector<1x16x16xbf16>
    %317 = vector.shape_cast %316 : vector<1x16x16xbf16> to vector<16x16xbf16>
    %cst_251 = arith.constant dense<0.000000e+00> : vector<8x16xf32>
    %318 = tpu.matmul %315, %317, %cst_251 {dimension_numbers = #tpu.dot_dimension_numbers<[1], [0], [0], [1], [0, 0, 1, 1], [], []>} : vector<8x16xbf16>, vector<16x16xbf16>, vector<8x16xf32> -> vector<8x16xf32>
    %c1_252 = arith.constant 1 : index
    %c0_253 = arith.constant 0 : index
    %c0_254 = arith.constant 0 : index
    %319 = vector.load %arg37[%c1_252, %c0_253, %c0_254] : memref<3x16x16xbf16, #tpu.memory_space<vmem>>, vector<1x16x16xbf16>
    %320 = vector.shape_cast %319 : vector<1x16x16xbf16> to vector<16x16xbf16>
    %cst_255 = arith.constant dense<0.000000e+00> : vector<8x16xf32>
    %321 = tpu.matmul %315, %320, %cst_255 {dimension_numbers = #tpu.dot_dimension_numbers<[1], [0], [0], [1], [0, 0, 1, 1], [], []>} : vector<8x16xbf16>, vector<16x16xbf16>, vector<8x16xf32> -> vector<8x16xf32>
    %c2_256 = arith.constant 2 : index
    %c0_257 = arith.constant 0 : index
    %c0_258 = arith.constant 0 : index
    %322 = vector.load %arg37[%c2_256, %c0_257, %c0_258] : memref<3x16x16xbf16, #tpu.memory_space<vmem>>, vector<1x16x16xbf16>
    %323 = vector.shape_cast %322 : vector<1x16x16xbf16> to vector<16x16xbf16>
    %cst_259 = arith.constant dense<0.000000e+00> : vector<8x16xf32>
    %324 = tpu.matmul %315, %323, %cst_259 {dimension_numbers = #tpu.dot_dimension_numbers<[1], [0], [0], [1], [0, 0, 1, 1], [], []>} : vector<8x16xbf16>, vector<16x16xbf16>, vector<8x16xf32> -> vector<8x16xf32>
    %cst_260 = arith.constant 0.000000e+00 : f32
    %325 = vector.broadcast %cst_260 : f32 to vector<1x16xf32>
    %326 = vector.extract_strided_slice %318 {offsets = [0, 0], sizes = [7, 16], strides = [1, 1]} : vector<8x16xf32> to vector<7x16xf32>
    %327 = tpu.concatenate %325, %326 in 0 : vector<1x16xf32>, vector<7x16xf32> -> vector<8x16xf32>
    %328 = vector.extract_strided_slice %324 {offsets = [1, 0], sizes = [7, 16], strides = [1, 1]} : vector<8x16xf32> to vector<7x16xf32>
    %329 = tpu.concatenate %328, %325 in 0 : vector<7x16xf32>, vector<1x16xf32> -> vector<8x16xf32>
    %330 = arith.addf %327, %321 : vector<8x16xf32>
    %331 = arith.addf %330, %329 : vector<8x16xf32>
    %c0_261 = arith.constant 0 : index
    %c0_262 = arith.constant 0 : index
    %332 = vector.load %arg60[%c0_261, %c0_262] : memref<8x16xf32, #tpu.memory_space<vmem>>, vector<8x16xf32>
    %333 = arith.truncf %332 : vector<8x16xf32> to vector<8x16xbf16>
    %c0_263 = arith.constant 0 : index
    %c0_264 = arith.constant 0 : index
    %c0_265 = arith.constant 0 : index
    %334 = vector.load %arg38[%c0_263, %c0_264, %c0_265] : memref<3x16x16xbf16, #tpu.memory_space<vmem>>, vector<1x16x16xbf16>
    %335 = vector.shape_cast %334 : vector<1x16x16xbf16> to vector<16x16xbf16>
    %cst_266 = arith.constant dense<0.000000e+00> : vector<8x16xf32>
    %336 = tpu.matmul %333, %335, %cst_266 {dimension_numbers = #tpu.dot_dimension_numbers<[1], [0], [0], [1], [0, 0, 1, 1], [], []>} : vector<8x16xbf16>, vector<16x16xbf16>, vector<8x16xf32> -> vector<8x16xf32>
    %c1_267 = arith.constant 1 : index
    %c0_268 = arith.constant 0 : index
    %c0_269 = arith.constant 0 : index
    %337 = vector.load %arg38[%c1_267, %c0_268, %c0_269] : memref<3x16x16xbf16, #tpu.memory_space<vmem>>, vector<1x16x16xbf16>
    %338 = vector.shape_cast %337 : vector<1x16x16xbf16> to vector<16x16xbf16>
    %cst_270 = arith.constant dense<0.000000e+00> : vector<8x16xf32>
    %339 = tpu.matmul %333, %338, %cst_270 {dimension_numbers = #tpu.dot_dimension_numbers<[1], [0], [0], [1], [0, 0, 1, 1], [], []>} : vector<8x16xbf16>, vector<16x16xbf16>, vector<8x16xf32> -> vector<8x16xf32>
    %c2_271 = arith.constant 2 : index
    %c0_272 = arith.constant 0 : index
    %c0_273 = arith.constant 0 : index
    %340 = vector.load %arg38[%c2_271, %c0_272, %c0_273] : memref<3x16x16xbf16, #tpu.memory_space<vmem>>, vector<1x16x16xbf16>
    %341 = vector.shape_cast %340 : vector<1x16x16xbf16> to vector<16x16xbf16>
    %cst_274 = arith.constant dense<0.000000e+00> : vector<8x16xf32>
    %342 = tpu.matmul %333, %341, %cst_274 {dimension_numbers = #tpu.dot_dimension_numbers<[1], [0], [0], [1], [0, 0, 1, 1], [], []>} : vector<8x16xbf16>, vector<16x16xbf16>, vector<8x16xf32> -> vector<8x16xf32>
    %cst_275 = arith.constant 0.000000e+00 : f32
    %343 = vector.broadcast %cst_275 : f32 to vector<1x16xf32>
    %344 = vector.extract_strided_slice %336 {offsets = [0, 0], sizes = [7, 16], strides = [1, 1]} : vector<8x16xf32> to vector<7x16xf32>
    %345 = tpu.concatenate %343, %344 in 0 : vector<1x16xf32>, vector<7x16xf32> -> vector<8x16xf32>
    %346 = vector.extract_strided_slice %342 {offsets = [1, 0], sizes = [7, 16], strides = [1, 1]} : vector<8x16xf32> to vector<7x16xf32>
    %347 = tpu.concatenate %346, %343 in 0 : vector<7x16xf32>, vector<1x16xf32> -> vector<8x16xf32>
    %348 = arith.addf %345, %339 : vector<8x16xf32>
    %349 = arith.addf %348, %347 : vector<8x16xf32>
    %350 = arith.addf %331, %349 : vector<8x16xf32>
    %c0_276 = arith.constant 0 : index
    %c0_277 = arith.constant 0 : index
    %351 = vector.load %arg39[%c0_276, %c0_277] : memref<1x16xf32, #tpu.memory_space<vmem>>, vector<1x16xf32>
    %352 = vector.broadcast %351 : vector<1x16xf32> to vector<8x16xf32>
    %353 = arith.mulf %350, %352 : vector<8x16xf32>
    %c0_278 = arith.constant 0 : index
    %c0_279 = arith.constant 0 : index
    %354 = vector.load %arg40[%c0_278, %c0_279] : memref<1x16xf32, #tpu.memory_space<vmem>>, vector<1x16xf32>
    %355 = vector.broadcast %354 : vector<1x16xf32> to vector<8x16xf32>
    %356 = arith.addf %353, %355 : vector<8x16xf32>
    %cst_280 = arith.constant 0.000000e+00 : f32
    %357 = vector.broadcast %cst_280 : f32 to vector<8x16xf32>
    %358 = arith.maximumf %356, %357 : vector<8x16xf32>
    %359 = arith.truncf %358 : vector<8x16xf32> to vector<8x16xbf16>
    %c0_281 = arith.constant 0 : index
    %c0_282 = arith.constant 0 : index
    %c0_283 = arith.constant 0 : index
    %360 = vector.load %arg41[%c0_281, %c0_282, %c0_283] : memref<3x16x16xbf16, #tpu.memory_space<vmem>>, vector<1x16x16xbf16>
    %361 = vector.shape_cast %360 : vector<1x16x16xbf16> to vector<16x16xbf16>
    %cst_284 = arith.constant dense<0.000000e+00> : vector<8x16xf32>
    %362 = tpu.matmul %359, %361, %cst_284 {dimension_numbers = #tpu.dot_dimension_numbers<[1], [0], [0], [1], [0, 0, 1, 1], [], []>} : vector<8x16xbf16>, vector<16x16xbf16>, vector<8x16xf32> -> vector<8x16xf32>
    %c1_285 = arith.constant 1 : index
    %c0_286 = arith.constant 0 : index
    %c0_287 = arith.constant 0 : index
    %363 = vector.load %arg41[%c1_285, %c0_286, %c0_287] : memref<3x16x16xbf16, #tpu.memory_space<vmem>>, vector<1x16x16xbf16>
    %364 = vector.shape_cast %363 : vector<1x16x16xbf16> to vector<16x16xbf16>
    %cst_288 = arith.constant dense<0.000000e+00> : vector<8x16xf32>
    %365 = tpu.matmul %359, %364, %cst_288 {dimension_numbers = #tpu.dot_dimension_numbers<[1], [0], [0], [1], [0, 0, 1, 1], [], []>} : vector<8x16xbf16>, vector<16x16xbf16>, vector<8x16xf32> -> vector<8x16xf32>
    %c2_289 = arith.constant 2 : index
    %c0_290 = arith.constant 0 : index
    %c0_291 = arith.constant 0 : index
    %366 = vector.load %arg41[%c2_289, %c0_290, %c0_291] : memref<3x16x16xbf16, #tpu.memory_space<vmem>>, vector<1x16x16xbf16>
    %367 = vector.shape_cast %366 : vector<1x16x16xbf16> to vector<16x16xbf16>
    %cst_292 = arith.constant dense<0.000000e+00> : vector<8x16xf32>
    %368 = tpu.matmul %359, %367, %cst_292 {dimension_numbers = #tpu.dot_dimension_numbers<[1], [0], [0], [1], [0, 0, 1, 1], [], []>} : vector<8x16xbf16>, vector<16x16xbf16>, vector<8x16xf32> -> vector<8x16xf32>
    %cst_293 = arith.constant 0.000000e+00 : f32
    %369 = vector.broadcast %cst_293 : f32 to vector<1x16xf32>
    %370 = vector.extract_strided_slice %362 {offsets = [0, 0], sizes = [7, 16], strides = [1, 1]} : vector<8x16xf32> to vector<7x16xf32>
    %371 = tpu.concatenate %369, %370 in 0 : vector<1x16xf32>, vector<7x16xf32> -> vector<8x16xf32>
    %372 = vector.extract_strided_slice %368 {offsets = [1, 0], sizes = [7, 16], strides = [1, 1]} : vector<8x16xf32> to vector<7x16xf32>
    %373 = tpu.concatenate %372, %369 in 0 : vector<7x16xf32>, vector<1x16xf32> -> vector<8x16xf32>
    %374 = arith.addf %371, %365 : vector<8x16xf32>
    %375 = arith.addf %374, %373 : vector<8x16xf32>
    %c0_294 = arith.constant 0 : index
    %c0_295 = arith.constant 0 : index
    %376 = vector.load %arg42[%c0_294, %c0_295] : memref<1x16xf32, #tpu.memory_space<vmem>>, vector<1x16xf32>
    %377 = vector.broadcast %376 : vector<1x16xf32> to vector<8x16xf32>
    %378 = arith.mulf %375, %377 : vector<8x16xf32>
    %c0_296 = arith.constant 0 : index
    %c0_297 = arith.constant 0 : index
    %379 = vector.load %arg43[%c0_296, %c0_297] : memref<1x16xf32, #tpu.memory_space<vmem>>, vector<1x16xf32>
    %380 = vector.broadcast %379 : vector<1x16xf32> to vector<8x16xf32>
    %381 = arith.addf %378, %380 : vector<8x16xf32>
    %cst_298 = arith.constant 0.000000e+00 : f32
    %382 = vector.broadcast %cst_298 : f32 to vector<8x16xf32>
    %383 = arith.maximumf %381, %382 : vector<8x16xf32>
    %384 = arith.truncf %383 : vector<8x16xf32> to vector<8x16xbf16>
    %c0_299 = arith.constant 0 : index
    %c0_300 = arith.constant 0 : index
    %c0_301 = arith.constant 0 : index
    %385 = vector.load %arg44[%c0_299, %c0_300, %c0_301] : memref<2x16x8xbf16, #tpu.memory_space<vmem>>, vector<1x16x8xbf16>
    %386 = vector.shape_cast %385 : vector<1x16x8xbf16> to vector<16x8xbf16>
    %cst_302 = arith.constant dense<0.000000e+00> : vector<8x8xf32>
    %387 = tpu.matmul %384, %386, %cst_302 {dimension_numbers = #tpu.dot_dimension_numbers<[1], [0], [0], [1], [0, 0, 1, 1], [], []>} : vector<8x16xbf16>, vector<16x8xbf16>, vector<8x8xf32> -> vector<8x8xf32>
    %c0_303 = arith.constant 0 : index
    %c0_304 = arith.constant 0 : index
    %388 = vector.load %arg45[%c0_303, %c0_304] : memref<1x8xf32, #tpu.memory_space<vmem>>, vector<1x8xf32>
    %389 = vector.broadcast %388 : vector<1x8xf32> to vector<8x8xf32>
    %390 = arith.addf %387, %389 : vector<8x8xf32>
    %c1_305 = arith.constant 1 : index
    %c0_306 = arith.constant 0 : index
    %c0_307 = arith.constant 0 : index
    %391 = vector.load %arg44[%c1_305, %c0_306, %c0_307] : memref<2x16x8xbf16, #tpu.memory_space<vmem>>, vector<1x16x8xbf16>
    %392 = vector.shape_cast %391 : vector<1x16x8xbf16> to vector<16x8xbf16>
    %cst_308 = arith.constant dense<0.000000e+00> : vector<8x8xf32>
    %393 = tpu.matmul %384, %392, %cst_308 {dimension_numbers = #tpu.dot_dimension_numbers<[1], [0], [0], [1], [0, 0, 1, 1], [], []>} : vector<8x16xbf16>, vector<16x8xbf16>, vector<8x8xf32> -> vector<8x8xf32>
    %c0_309 = arith.constant 0 : index
    %c0_310 = arith.constant 0 : index
    %394 = vector.load %arg45[%c0_309, %c0_310] : memref<1x8xf32, #tpu.memory_space<vmem>>, vector<1x8xf32>
    %395 = vector.broadcast %394 : vector<1x8xf32> to vector<8x8xf32>
    %396 = arith.addf %393, %395 : vector<8x8xf32>
    %c0_311 = arith.constant 0 : index
    %c0_312 = arith.constant 0 : index
    %397 = tpu.strided_load %arg61[%c0_311, %c0_312] {strides = array<i32: 2, 1>} : memref<16x8xf32, #tpu.memory_space<vmem>>, vector<8x8xf32>
    tpu.strided_store %arg61[%c0_311, %c0_312], %390 {strides = array<i32: 2, 1>} : memref<16x8xf32, #tpu.memory_space<vmem>>, vector<8x8xf32>
    %c1_313 = arith.constant 1 : index
    %c0_314 = arith.constant 0 : index
    %398 = tpu.strided_load %arg61[%c1_313, %c0_314] {strides = array<i32: 2, 1>} : memref<16x8xf32, #tpu.memory_space<vmem>>, vector<8x8xf32>
    tpu.strided_store %arg61[%c1_313, %c0_314], %396 {strides = array<i32: 2, 1>} : memref<16x8xf32, #tpu.memory_space<vmem>>, vector<8x8xf32>
    %c0_315 = arith.constant 0 : index
    %c0_316 = arith.constant 0 : index
    %399 = vector.load %arg56[%c0_315, %c0_316] : memref<16x8xf32, #tpu.memory_space<vmem>>, vector<16x8xf32>
    %400 = arith.truncf %399 : vector<16x8xf32> to vector<16x8xbf16>
    %c0_317 = arith.constant 0 : index
    %c0_318 = arith.constant 0 : index
    %c0_319 = arith.constant 0 : index
    %401 = vector.load %arg46[%c0_317, %c0_318, %c0_319] : memref<3x8x8xbf16, #tpu.memory_space<vmem>>, vector<1x8x8xbf16>
    %402 = vector.shape_cast %401 : vector<1x8x8xbf16> to vector<8x8xbf16>
    %cst_320 = arith.constant dense<0.000000e+00> : vector<16x8xf32>
    %403 = tpu.matmul %400, %402, %cst_320 {dimension_numbers = #tpu.dot_dimension_numbers<[1], [0], [0], [1], [0, 0, 1, 1], [], []>} : vector<16x8xbf16>, vector<8x8xbf16>, vector<16x8xf32> -> vector<16x8xf32>
    %c1_321 = arith.constant 1 : index
    %c0_322 = arith.constant 0 : index
    %c0_323 = arith.constant 0 : index
    %404 = vector.load %arg46[%c1_321, %c0_322, %c0_323] : memref<3x8x8xbf16, #tpu.memory_space<vmem>>, vector<1x8x8xbf16>
    %405 = vector.shape_cast %404 : vector<1x8x8xbf16> to vector<8x8xbf16>
    %cst_324 = arith.constant dense<0.000000e+00> : vector<16x8xf32>
    %406 = tpu.matmul %400, %405, %cst_324 {dimension_numbers = #tpu.dot_dimension_numbers<[1], [0], [0], [1], [0, 0, 1, 1], [], []>} : vector<16x8xbf16>, vector<8x8xbf16>, vector<16x8xf32> -> vector<16x8xf32>
    %c2_325 = arith.constant 2 : index
    %c0_326 = arith.constant 0 : index
    %c0_327 = arith.constant 0 : index
    %407 = vector.load %arg46[%c2_325, %c0_326, %c0_327] : memref<3x8x8xbf16, #tpu.memory_space<vmem>>, vector<1x8x8xbf16>
    %408 = vector.shape_cast %407 : vector<1x8x8xbf16> to vector<8x8xbf16>
    %cst_328 = arith.constant dense<0.000000e+00> : vector<16x8xf32>
    %409 = tpu.matmul %400, %408, %cst_328 {dimension_numbers = #tpu.dot_dimension_numbers<[1], [0], [0], [1], [0, 0, 1, 1], [], []>} : vector<16x8xbf16>, vector<8x8xbf16>, vector<16x8xf32> -> vector<16x8xf32>
    %cst_329 = arith.constant 0.000000e+00 : f32
    %410 = vector.broadcast %cst_329 : f32 to vector<1x8xf32>
    %411 = vector.extract_strided_slice %403 {offsets = [0, 0], sizes = [15, 8], strides = [1, 1]} : vector<16x8xf32> to vector<15x8xf32>
    %412 = tpu.concatenate %410, %411 in 0 : vector<1x8xf32>, vector<15x8xf32> -> vector<16x8xf32>
    %413 = vector.extract_strided_slice %409 {offsets = [1, 0], sizes = [15, 8], strides = [1, 1]} : vector<16x8xf32> to vector<15x8xf32>
    %414 = tpu.concatenate %413, %410 in 0 : vector<15x8xf32>, vector<1x8xf32> -> vector<16x8xf32>
    %415 = arith.addf %412, %406 : vector<16x8xf32>
    %416 = arith.addf %415, %414 : vector<16x8xf32>
    %c0_330 = arith.constant 0 : index
    %c0_331 = arith.constant 0 : index
    %417 = vector.load %arg61[%c0_330, %c0_331] : memref<16x8xf32, #tpu.memory_space<vmem>>, vector<16x8xf32>
    %418 = arith.truncf %417 : vector<16x8xf32> to vector<16x8xbf16>
    %c0_332 = arith.constant 0 : index
    %c0_333 = arith.constant 0 : index
    %c0_334 = arith.constant 0 : index
    %419 = vector.load %arg47[%c0_332, %c0_333, %c0_334] : memref<3x8x8xbf16, #tpu.memory_space<vmem>>, vector<1x8x8xbf16>
    %420 = vector.shape_cast %419 : vector<1x8x8xbf16> to vector<8x8xbf16>
    %cst_335 = arith.constant dense<0.000000e+00> : vector<16x8xf32>
    %421 = tpu.matmul %418, %420, %cst_335 {dimension_numbers = #tpu.dot_dimension_numbers<[1], [0], [0], [1], [0, 0, 1, 1], [], []>} : vector<16x8xbf16>, vector<8x8xbf16>, vector<16x8xf32> -> vector<16x8xf32>
    %c1_336 = arith.constant 1 : index
    %c0_337 = arith.constant 0 : index
    %c0_338 = arith.constant 0 : index
    %422 = vector.load %arg47[%c1_336, %c0_337, %c0_338] : memref<3x8x8xbf16, #tpu.memory_space<vmem>>, vector<1x8x8xbf16>
    %423 = vector.shape_cast %422 : vector<1x8x8xbf16> to vector<8x8xbf16>
    %cst_339 = arith.constant dense<0.000000e+00> : vector<16x8xf32>
    %424 = tpu.matmul %418, %423, %cst_339 {dimension_numbers = #tpu.dot_dimension_numbers<[1], [0], [0], [1], [0, 0, 1, 1], [], []>} : vector<16x8xbf16>, vector<8x8xbf16>, vector<16x8xf32> -> vector<16x8xf32>
    %c2_340 = arith.constant 2 : index
    %c0_341 = arith.constant 0 : index
    %c0_342 = arith.constant 0 : index
    %425 = vector.load %arg47[%c2_340, %c0_341, %c0_342] : memref<3x8x8xbf16, #tpu.memory_space<vmem>>, vector<1x8x8xbf16>
    %426 = vector.shape_cast %425 : vector<1x8x8xbf16> to vector<8x8xbf16>
    %cst_343 = arith.constant dense<0.000000e+00> : vector<16x8xf32>
    %427 = tpu.matmul %418, %426, %cst_343 {dimension_numbers = #tpu.dot_dimension_numbers<[1], [0], [0], [1], [0, 0, 1, 1], [], []>} : vector<16x8xbf16>, vector<8x8xbf16>, vector<16x8xf32> -> vector<16x8xf32>
    %cst_344 = arith.constant 0.000000e+00 : f32
    %428 = vector.broadcast %cst_344 : f32 to vector<1x8xf32>
    %429 = vector.extract_strided_slice %421 {offsets = [0, 0], sizes = [15, 8], strides = [1, 1]} : vector<16x8xf32> to vector<15x8xf32>
    %430 = tpu.concatenate %428, %429 in 0 : vector<1x8xf32>, vector<15x8xf32> -> vector<16x8xf32>
    %431 = vector.extract_strided_slice %427 {offsets = [1, 0], sizes = [15, 8], strides = [1, 1]} : vector<16x8xf32> to vector<15x8xf32>
    %432 = tpu.concatenate %431, %428 in 0 : vector<15x8xf32>, vector<1x8xf32> -> vector<16x8xf32>
    %433 = arith.addf %430, %424 : vector<16x8xf32>
    %434 = arith.addf %433, %432 : vector<16x8xf32>
    %435 = arith.addf %416, %434 : vector<16x8xf32>
    %c0_345 = arith.constant 0 : index
    %c0_346 = arith.constant 0 : index
    %436 = vector.load %arg48[%c0_345, %c0_346] : memref<1x8xf32, #tpu.memory_space<vmem>>, vector<1x8xf32>
    %437 = vector.broadcast %436 : vector<1x8xf32> to vector<16x8xf32>
    %438 = arith.mulf %435, %437 : vector<16x8xf32>
    %c0_347 = arith.constant 0 : index
    %c0_348 = arith.constant 0 : index
    %439 = vector.load %arg49[%c0_347, %c0_348] : memref<1x8xf32, #tpu.memory_space<vmem>>, vector<1x8xf32>
    %440 = vector.broadcast %439 : vector<1x8xf32> to vector<16x8xf32>
    %441 = arith.addf %438, %440 : vector<16x8xf32>
    %cst_349 = arith.constant 0.000000e+00 : f32
    %442 = vector.broadcast %cst_349 : f32 to vector<16x8xf32>
    %443 = arith.maximumf %441, %442 : vector<16x8xf32>
    %444 = arith.truncf %443 : vector<16x8xf32> to vector<16x8xbf16>
    %c0_350 = arith.constant 0 : index
    %c0_351 = arith.constant 0 : index
    %c0_352 = arith.constant 0 : index
    %445 = vector.load %arg50[%c0_350, %c0_351, %c0_352] : memref<3x8x8xbf16, #tpu.memory_space<vmem>>, vector<1x8x8xbf16>
    %446 = vector.shape_cast %445 : vector<1x8x8xbf16> to vector<8x8xbf16>
    %cst_353 = arith.constant dense<0.000000e+00> : vector<16x8xf32>
    %447 = tpu.matmul %444, %446, %cst_353 {dimension_numbers = #tpu.dot_dimension_numbers<[1], [0], [0], [1], [0, 0, 1, 1], [], []>} : vector<16x8xbf16>, vector<8x8xbf16>, vector<16x8xf32> -> vector<16x8xf32>
    %c1_354 = arith.constant 1 : index
    %c0_355 = arith.constant 0 : index
    %c0_356 = arith.constant 0 : index
    %448 = vector.load %arg50[%c1_354, %c0_355, %c0_356] : memref<3x8x8xbf16, #tpu.memory_space<vmem>>, vector<1x8x8xbf16>
    %449 = vector.shape_cast %448 : vector<1x8x8xbf16> to vector<8x8xbf16>
    %cst_357 = arith.constant dense<0.000000e+00> : vector<16x8xf32>
    %450 = tpu.matmul %444, %449, %cst_357 {dimension_numbers = #tpu.dot_dimension_numbers<[1], [0], [0], [1], [0, 0, 1, 1], [], []>} : vector<16x8xbf16>, vector<8x8xbf16>, vector<16x8xf32> -> vector<16x8xf32>
    %c2_358 = arith.constant 2 : index
    %c0_359 = arith.constant 0 : index
    %c0_360 = arith.constant 0 : index
    %451 = vector.load %arg50[%c2_358, %c0_359, %c0_360] : memref<3x8x8xbf16, #tpu.memory_space<vmem>>, vector<1x8x8xbf16>
    %452 = vector.shape_cast %451 : vector<1x8x8xbf16> to vector<8x8xbf16>
    %cst_361 = arith.constant dense<0.000000e+00> : vector<16x8xf32>
    %453 = tpu.matmul %444, %452, %cst_361 {dimension_numbers = #tpu.dot_dimension_numbers<[1], [0], [0], [1], [0, 0, 1, 1], [], []>} : vector<16x8xbf16>, vector<8x8xbf16>, vector<16x8xf32> -> vector<16x8xf32>
    %cst_362 = arith.constant 0.000000e+00 : f32
    %454 = vector.broadcast %cst_362 : f32 to vector<1x8xf32>
    %455 = vector.extract_strided_slice %447 {offsets = [0, 0], sizes = [15, 8], strides = [1, 1]} : vector<16x8xf32> to vector<15x8xf32>
    %456 = tpu.concatenate %454, %455 in 0 : vector<1x8xf32>, vector<15x8xf32> -> vector<16x8xf32>
    %457 = vector.extract_strided_slice %453 {offsets = [1, 0], sizes = [15, 8], strides = [1, 1]} : vector<16x8xf32> to vector<15x8xf32>
    %458 = tpu.concatenate %457, %454 in 0 : vector<15x8xf32>, vector<1x8xf32> -> vector<16x8xf32>
    %459 = arith.addf %456, %450 : vector<16x8xf32>
    %460 = arith.addf %459, %458 : vector<16x8xf32>
    %c0_363 = arith.constant 0 : index
    %c0_364 = arith.constant 0 : index
    %461 = vector.load %arg51[%c0_363, %c0_364] : memref<1x8xf32, #tpu.memory_space<vmem>>, vector<1x8xf32>
    %462 = vector.broadcast %461 : vector<1x8xf32> to vector<16x8xf32>
    %463 = arith.mulf %460, %462 : vector<16x8xf32>
    %c0_365 = arith.constant 0 : index
    %c0_366 = arith.constant 0 : index
    %464 = vector.load %arg52[%c0_365, %c0_366] : memref<1x8xf32, #tpu.memory_space<vmem>>, vector<1x8xf32>
    %465 = vector.broadcast %464 : vector<1x8xf32> to vector<16x8xf32>
    %466 = arith.addf %463, %465 : vector<16x8xf32>
    %cst_367 = arith.constant 0.000000e+00 : f32
    %467 = vector.broadcast %cst_367 : f32 to vector<16x8xf32>
    %468 = arith.maximumf %466, %467 : vector<16x8xf32>
    %c0_368 = arith.constant 0 : index
    %c0_369 = arith.constant 0 : index
    %469 = vector.load %arg53[%c0_368, %c0_369] : memref<3x8xbf16, #tpu.memory_space<vmem>>, vector<3x8xbf16>
    %470 = arith.truncf %468 : vector<16x8xf32> to vector<16x8xbf16>
    %cst_370 = arith.constant dense<0.000000e+00> : vector<3x16xf32>
    %471 = tpu.matmul %469, %470, %cst_370 {dimension_numbers = #tpu.dot_dimension_numbers<[1], [1], [0], [0], [0, 0, 1, 0], [], []>} : vector<3x8xbf16>, vector<16x8xbf16>, vector<3x16xf32> -> vector<3x16xf32>
    %c0_371 = arith.constant 0 : index
    %c0_372 = arith.constant 0 : index
    %472 = vector.load %arg54[%c0_371, %c0_372] : memref<3x1xf32, #tpu.memory_space<vmem>>, vector<3x1xf32>
    %473 = vector.broadcast %472 : vector<3x1xf32> to vector<3x16xf32>
    %474 = arith.addf %471, %473 : vector<3x16xf32>
    %c0_373 = arith.constant 0 : index
    %c0_374 = arith.constant 0 : index
    %c0_375 = arith.constant 0 : index
    %475 = vector.load %arg55[%c0_373, %c0_374, %c0_375] : memref<1x3x16xf32, #tpu.memory_space<vmem>>, vector<1x3x16xf32>
    %476 = vector.shape_cast %475 : vector<1x3x16xf32> to vector<3x16xf32>
    %477 = vector.shape_cast %474 : vector<3x16xf32> to vector<1x3x16xf32>
    tpu.vector_store %arg55[%c0_373, %c0_374, %c0_375], %477 {strides = array<i32>} : memref<1x3x16xf32, #tpu.memory_space<vmem>>, vector<1x3x16xf32>,
    return
  }
  func.func @transform_0(%arg0: i32) -> (i32, i32, i32) {
    %c0_i32 = arith.constant 0 : i32
    %c0_i32_0 = arith.constant 0 : i32
    %c0_i32_1 = arith.constant 0 : i32
    return %arg0, %c0_i32, %c0_i32_0 : i32, i32, i32
  }
  func.func @transform_1(%arg0: i32) -> (i32, i32, i32) {
    %c0_i32 = arith.constant 0 : i32
    %c0_i32_0 = arith.constant 0 : i32
    %c0_i32_1 = arith.constant 0 : i32
    %c0_i32_2 = arith.constant 0 : i32
    return %c0_i32, %c0_i32_0, %c0_i32_1 : i32, i32, i32
  }
  func.func @transform_2(%arg0: i32) -> (i32, i32) {
    %c0_i32 = arith.constant 0 : i32
    %c0_i32_0 = arith.constant 0 : i32
    %c0_i32_1 = arith.constant 0 : i32
    return %c0_i32, %c0_i32_0 : i32, i32
  }
  func.func @transform_3(%arg0: i32) -> (i32, i32) {
    %c0_i32 = arith.constant 0 : i32
    %c0_i32_0 = arith.constant 0 : i32
    %c0_i32_1 = arith.constant 0 : i32
    return %c0_i32, %c0_i32_0 : i32, i32
  }
  func.func @transform_4(%arg0: i32) -> (i32, i32, i32) {
    %c0_i32 = arith.constant 0 : i32
    %c0_i32_0 = arith.constant 0 : i32
    %c0_i32_1 = arith.constant 0 : i32
    %c0_i32_2 = arith.constant 0 : i32
    return %c0_i32, %c0_i32_0, %c0_i32_1 : i32, i32, i32
  }
  func.func @transform_5(%arg0: i32) -> (i32, i32) {
    %c0_i32 = arith.constant 0 : i32
    %c0_i32_0 = arith.constant 0 : i32
    %c0_i32_1 = arith.constant 0 : i32
    return %c0_i32, %c0_i32_0 : i32, i32
  }
  func.func @transform_6(%arg0: i32) -> (i32, i32) {
    %c0_i32 = arith.constant 0 : i32
    %c0_i32_0 = arith.constant 0 : i32
    %c0_i32_1 = arith.constant 0 : i32
    return %c0_i32, %c0_i32_0 : i32, i32
  }
  func.func @transform_7(%arg0: i32) -> (i32, i32, i32) {
    %c0_i32 = arith.constant 0 : i32
    %c0_i32_0 = arith.constant 0 : i32
    %c0_i32_1 = arith.constant 0 : i32
    %c0_i32_2 = arith.constant 0 : i32
    return %c0_i32, %c0_i32_0, %c0_i32_1 : i32, i32, i32
  }
  func.func @transform_8(%arg0: i32) -> (i32, i32) {
    %c0_i32 = arith.constant 0 : i32
    %c0_i32_0 = arith.constant 0 : i32
    %c0_i32_1 = arith.constant 0 : i32
    return %c0_i32, %c0_i32_0 : i32, i32
  }
  func.func @transform_9(%arg0: i32) -> (i32, i32) {
    %c0_i32 = arith.constant 0 : i32
    %c0_i32_0 = arith.constant 0 : i32
    %c0_i32_1 = arith.constant 0 : i32
    return %c0_i32, %c0_i32_0 : i32, i32
  }
  func.func @transform_10(%arg0: i32) -> (i32, i32, i32) {
    %c0_i32 = arith.constant 0 : i32
    %c0_i32_0 = arith.constant 0 : i32
    %c0_i32_1 = arith.constant 0 : i32
    %c0_i32_2 = arith.constant 0 : i32
    return %c0_i32, %c0_i32_0, %c0_i32_1 : i32, i32, i32
  }
  func.func @transform_11(%arg0: i32) -> (i32, i32) {
    %c0_i32 = arith.constant 0 : i32
    %c0_i32_0 = arith.constant 0 : i32
    %c0_i32_1 = arith.constant 0 : i32
    return %c0_i32, %c0_i32_0 : i32, i32
  }
  func.func @transform_12(%arg0: i32) -> (i32, i32) {
    %c0_i32 = arith.constant 0 : i32
    %c0_i32_0 = arith.constant 0 : i32
    %c0_i32_1 = arith.constant 0 : i32
    return %c0_i32, %c0_i32_0 : i32, i32
  }
  func.func @transform_13(%arg0: i32) -> (i32, i32, i32) {
    %c0_i32 = arith.constant 0 : i32
    %c0_i32_0 = arith.constant 0 : i32
    %c0_i32_1 = arith.constant 0 : i32
    %c0_i32_2 = arith.constant 0 : i32
    return %c0_i32, %c0_i32_0, %c0_i32_1 : i32, i32, i32
  }
  func.func @transform_14(%arg0: i32) -> (i32, i32) {
    %c0_i32 = arith.constant 0 : i32
    %c0_i32_0 = arith.constant 0 : i32
    %c0_i32_1 = arith.constant 0 : i32
    return %c0_i32, %c0_i32_0 : i32, i32
  }
  func.func @transform_15(%arg0: i32) -> (i32, i32) {
    %c0_i32 = arith.constant 0 : i32
    %c0_i32_0 = arith.constant 0 : i32
    %c0_i32_1 = arith.constant 0 : i32
    return %c0_i32, %c0_i32_0 : i32, i32
  }
  func.func @transform_16(%arg0: i32) -> (i32, i32, i32) {
    %c0_i32 = arith.constant 0 : i32
    %c0_i32_0 = arith.constant 0 : i32
    %c0_i32_1 = arith.constant 0 : i32
    %c0_i32_2 = arith.constant 0 : i32
    return %c0_i32, %c0_i32_0, %c0_i32_1 : i32, i32, i32
  }
  func.func @transform_17(%arg0: i32) -> (i32, i32) {
    %c0_i32 = arith.constant 0 : i32
    %c0_i32_0 = arith.constant 0 : i32
    %c0_i32_1 = arith.constant 0 : i32
    return %c0_i32, %c0_i32_0 : i32, i32
  }
  func.func @transform_18(%arg0: i32) -> (i32, i32) {
    %c0_i32 = arith.constant 0 : i32
    %c0_i32_0 = arith.constant 0 : i32
    %c0_i32_1 = arith.constant 0 : i32
    return %c0_i32, %c0_i32_0 : i32, i32
  }
  func.func @transform_19(%arg0: i32) -> (i32, i32, i32) {
    %c0_i32 = arith.constant 0 : i32
    %c0_i32_0 = arith.constant 0 : i32
    %c0_i32_1 = arith.constant 0 : i32
    %c0_i32_2 = arith.constant 0 : i32
    return %c0_i32, %c0_i32_0, %c0_i32_1 : i32, i32, i32
  }
  func.func @transform_20(%arg0: i32) -> (i32, i32) {
    %c0_i32 = arith.constant 0 : i32
    %c0_i32_0 = arith.constant 0 : i32
    %c0_i32_1 = arith.constant 0 : i32
    return %c0_i32, %c0_i32_0 : i32, i32
  }
  func.func @transform_21(%arg0: i32) -> (i32, i32) {
    %c0_i32 = arith.constant 0 : i32
    %c0_i32_0 = arith.constant 0 : i32
    %c0_i32_1 = arith.constant 0 : i32
    return %c0_i32, %c0_i32_0 : i32, i32
  }
  func.func @transform_22(%arg0: i32) -> (i32, i32, i32) {
    %c0_i32 = arith.constant 0 : i32
    %c0_i32_0 = arith.constant 0 : i32
    %c0_i32_1 = arith.constant 0 : i32
    %c0_i32_2 = arith.constant 0 : i32
    return %c0_i32, %c0_i32_0, %c0_i32_1 : i32, i32, i32
  }
  func.func @transform_23(%arg0: i32) -> (i32, i32) {
    %c0_i32 = arith.constant 0 : i32
    %c0_i32_0 = arith.constant 0 : i32
    %c0_i32_1 = arith.constant 0 : i32
    return %c0_i32, %c0_i32_0 : i32, i32
  }
  func.func @transform_24(%arg0: i32) -> (i32, i32) {
    %c0_i32 = arith.constant 0 : i32
    %c0_i32_0 = arith.constant 0 : i32
    %c0_i32_1 = arith.constant 0 : i32
    return %c0_i32, %c0_i32_0 : i32, i32
  }
  func.func @transform_25(%arg0: i32) -> (i32, i32, i32) {
    %c0_i32 = arith.constant 0 : i32
    %c0_i32_0 = arith.constant 0 : i32
    %c0_i32_1 = arith.constant 0 : i32
    %c0_i32_2 = arith.constant 0 : i32
    return %c0_i32, %c0_i32_0, %c0_i32_1 : i32, i32, i32
  }
  func.func @transform_26(%arg0: i32) -> (i32, i32) {
    %c0_i32 = arith.constant 0 : i32
    %c0_i32_0 = arith.constant 0 : i32
    %c0_i32_1 = arith.constant 0 : i32
    return %c0_i32, %c0_i32_0 : i32, i32
  }
  func.func @transform_27(%arg0: i32) -> (i32, i32, i32) {
    %c0_i32 = arith.constant 0 : i32
    %c0_i32_0 = arith.constant 0 : i32
    %c0_i32_1 = arith.constant 0 : i32
    %c0_i32_2 = arith.constant 0 : i32
    return %c0_i32, %c0_i32_0, %c0_i32_1 : i32, i32, i32
  }
  func.func @transform_28(%arg0: i32) -> (i32, i32, i32) {
    %c0_i32 = arith.constant 0 : i32
    %c0_i32_0 = arith.constant 0 : i32
    %c0_i32_1 = arith.constant 0 : i32
    %c0_i32_2 = arith.constant 0 : i32
    return %c0_i32, %c0_i32_0, %c0_i32_1 : i32, i32, i32
  }
  func.func @transform_29(%arg0: i32) -> (i32, i32) {
    %c0_i32 = arith.constant 0 : i32
    %c0_i32_0 = arith.constant 0 : i32
    %c0_i32_1 = arith.constant 0 : i32
    return %c0_i32, %c0_i32_0 : i32, i32
  }
  func.func @transform_30(%arg0: i32) -> (i32, i32) {
    %c0_i32 = arith.constant 0 : i32
    %c0_i32_0 = arith.constant 0 : i32
    %c0_i32_1 = arith.constant 0 : i32
    return %c0_i32, %c0_i32_0 : i32, i32
  }
  func.func @transform_31(%arg0: i32) -> (i32, i32, i32) {
    %c0_i32 = arith.constant 0 : i32
    %c0_i32_0 = arith.constant 0 : i32
    %c0_i32_1 = arith.constant 0 : i32
    %c0_i32_2 = arith.constant 0 : i32
    return %c0_i32, %c0_i32_0, %c0_i32_1 : i32, i32, i32
  }
  func.func @transform_32(%arg0: i32) -> (i32, i32) {
    %c0_i32 = arith.constant 0 : i32
    %c0_i32_0 = arith.constant 0 : i32
    %c0_i32_1 = arith.constant 0 : i32
    return %c0_i32, %c0_i32_0 : i32, i32
  }
  func.func @transform_33(%arg0: i32) -> (i32, i32) {
    %c0_i32 = arith.constant 0 : i32
    %c0_i32_0 = arith.constant 0 : i32
    %c0_i32_1 = arith.constant 0 : i32
    return %c0_i32, %c0_i32_0 : i32, i32
  }
  func.func @transform_34(%arg0: i32) -> (i32, i32, i32) {
    %c0_i32 = arith.constant 0 : i32
    %c0_i32_0 = arith.constant 0 : i32
    %c0_i32_1 = arith.constant 0 : i32
    %c0_i32_2 = arith.constant 0 : i32
    return %c0_i32, %c0_i32_0, %c0_i32_1 : i32, i32, i32
  }
  func.func @transform_35(%arg0: i32) -> (i32, i32) {
    %c0_i32 = arith.constant 0 : i32
    %c0_i32_0 = arith.constant 0 : i32
    %c0_i32_1 = arith.constant 0 : i32
    return %c0_i32, %c0_i32_0 : i32, i32
  }
  func.func @transform_36(%arg0: i32) -> (i32, i32, i32) {
    %c0_i32 = arith.constant 0 : i32
    %c0_i32_0 = arith.constant 0 : i32
    %c0_i32_1 = arith.constant 0 : i32
    %c0_i32_2 = arith.constant 0 : i32
    return %c0_i32, %c0_i32_0, %c0_i32_1 : i32, i32, i32
  }
  func.func @transform_37(%arg0: i32) -> (i32, i32, i32) {
    %c0_i32 = arith.constant 0 : i32
    %c0_i32_0 = arith.constant 0 : i32
    %c0_i32_1 = arith.constant 0 : i32
    %c0_i32_2 = arith.constant 0 : i32
    return %c0_i32, %c0_i32_0, %c0_i32_1 : i32, i32, i32
  }
  func.func @transform_38(%arg0: i32) -> (i32, i32) {
    %c0_i32 = arith.constant 0 : i32
    %c0_i32_0 = arith.constant 0 : i32
    %c0_i32_1 = arith.constant 0 : i32
    return %c0_i32, %c0_i32_0 : i32, i32
  }
  func.func @transform_39(%arg0: i32) -> (i32, i32) {
    %c0_i32 = arith.constant 0 : i32
    %c0_i32_0 = arith.constant 0 : i32
    %c0_i32_1 = arith.constant 0 : i32
    return %c0_i32, %c0_i32_0 : i32, i32
  }
  func.func @transform_40(%arg0: i32) -> (i32, i32, i32) {
    %c0_i32 = arith.constant 0 : i32
    %c0_i32_0 = arith.constant 0 : i32
    %c0_i32_1 = arith.constant 0 : i32
    %c0_i32_2 = arith.constant 0 : i32
    return %c0_i32, %c0_i32_0, %c0_i32_1 : i32, i32, i32
  }
  func.func @transform_41(%arg0: i32) -> (i32, i32) {
    %c0_i32 = arith.constant 0 : i32
    %c0_i32_0 = arith.constant 0 : i32
    %c0_i32_1 = arith.constant 0 : i32
    return %c0_i32, %c0_i32_0 : i32, i32
  }
  func.func @transform_42(%arg0: i32) -> (i32, i32) {
    %c0_i32 = arith.constant 0 : i32
    %c0_i32_0 = arith.constant 0 : i32
    %c0_i32_1 = arith.constant 0 : i32
    return %c0_i32, %c0_i32_0 : i32, i32
  }
  func.func @transform_43(%arg0: i32) -> (i32, i32, i32) {
    %c0_i32 = arith.constant 0 : i32
    %c0_i32_0 = arith.constant 0 : i32
    %c0_i32_1 = arith.constant 0 : i32
    %c0_i32_2 = arith.constant 0 : i32
    return %c0_i32, %c0_i32_0, %c0_i32_1 : i32, i32, i32
  }
  func.func @transform_44(%arg0: i32) -> (i32, i32) {
    %c0_i32 = arith.constant 0 : i32
    %c0_i32_0 = arith.constant 0 : i32
    %c0_i32_1 = arith.constant 0 : i32
    return %c0_i32, %c0_i32_0 : i32, i32
  }
  func.func @transform_45(%arg0: i32) -> (i32, i32, i32) {
    %c0_i32 = arith.constant 0 : i32
    %c0_i32_0 = arith.constant 0 : i32
    %c0_i32_1 = arith.constant 0 : i32
    %c0_i32_2 = arith.constant 0 : i32
    return %c0_i32, %c0_i32_0, %c0_i32_1 : i32, i32, i32
  }
  func.func @transform_46(%arg0: i32) -> (i32, i32, i32) {
    %c0_i32 = arith.constant 0 : i32
    %c0_i32_0 = arith.constant 0 : i32
    %c0_i32_1 = arith.constant 0 : i32
    %c0_i32_2 = arith.constant 0 : i32
    return %c0_i32, %c0_i32_0, %c0_i32_1 : i32, i32, i32
  }
  func.func @transform_47(%arg0: i32) -> (i32, i32) {
    %c0_i32 = arith.constant 0 : i32
    %c0_i32_0 = arith.constant 0 : i32
    %c0_i32_1 = arith.constant 0 : i32
    return %c0_i32, %c0_i32_0 : i32, i32
  }
  func.func @transform_48(%arg0: i32) -> (i32, i32) {
    %c0_i32 = arith.constant 0 : i32
    %c0_i32_0 = arith.constant 0 : i32
    %c0_i32_1 = arith.constant 0 : i32
    return %c0_i32, %c0_i32_0 : i32, i32
  }
  func.func @transform_49(%arg0: i32) -> (i32, i32, i32) {
    %c0_i32 = arith.constant 0 : i32
    %c0_i32_0 = arith.constant 0 : i32
    %c0_i32_1 = arith.constant 0 : i32
    %c0_i32_2 = arith.constant 0 : i32
    return %c0_i32, %c0_i32_0, %c0_i32_1 : i32, i32, i32
  }
  func.func @transform_50(%arg0: i32) -> (i32, i32) {
    %c0_i32 = arith.constant 0 : i32
    %c0_i32_0 = arith.constant 0 : i32
    %c0_i32_1 = arith.constant 0 : i32
    return %c0_i32, %c0_i32_0 : i32, i32
  }
  func.func @transform_51(%arg0: i32) -> (i32, i32) {
    %c0_i32 = arith.constant 0 : i32
    %c0_i32_0 = arith.constant 0 : i32
    %c0_i32_1 = arith.constant 0 : i32
    return %c0_i32, %c0_i32_0 : i32, i32
  }
  func.func @transform_52(%arg0: i32) -> (i32, i32) {
    %c0_i32 = arith.constant 0 : i32
    %c0_i32_0 = arith.constant 0 : i32
    %c0_i32_1 = arith.constant 0 : i32
    return %c0_i32, %c0_i32_0 : i32, i32
  }
  func.func @transform_53(%arg0: i32) -> (i32, i32) {
    %c0_i32 = arith.constant 0 : i32
    %c0_i32_0 = arith.constant 0 : i32
    %c0_i32_1 = arith.constant 0 : i32
    return %c0_i32, %c0_i32_0 : i32, i32
  }
  func.func @transform_54(%arg0: i32) -> (i32, i32, i32) {
    %c0_i32 = arith.constant 0 : i32
    %c0_i32_0 = arith.constant 0 : i32
    %c0_i32_1 = arith.constant 0 : i32
    return %arg0, %c0_i32, %c0_i32_0 : i32, i32, i32
  }
}

</mosaic_0001>

<bundles_post_ra>
// kernel: unet_forward.1
= control target key start
LH: loop header
LB: loop body
LE: loop exit
PB: predicated region body
PF: predicated region fallthrough
CT: control target
= control target key end

     0   :  { %s8492_s6 = smov 1   ;;  %s8493_s10 = smov 2   ;;  %s9819_s0 = inlined_call_operand.smem [shape: u32[55], index: -1, kind: input, shape index: {}] }
   0x1   :  { %s8597_s5 = sld [smem:[%s9819_s0]]   ;;  %s8494_s14 = smov 3  }
   0x2   :  { %s8602_s9 = sld [smem:[%s9819_s0 + %s8492_s6]]   ;;  %s8495_s18 = smov 4  }
   0x3   :  { %s8607_s13 = sld [smem:[%s9819_s0 + %s8493_s10]]   ;;  %s8496_s22 = smov 5  }
   0x4   :  { %s8612_s17 = sld [smem:[%s9819_s0 + %s8494_s14]]   ;;  %s8497_s26 = smov 6  }
   0x5   :  { %s8617_s21 = sld [smem:[%s9819_s0 + %s8495_s18]]   ;;  %s8498_s30 = smov 7  }
   0x6   :  { %s8622_s25 = sld [smem:[%s9819_s0 + %s8496_s22]]   ;;  %s8499_s4 = smov 8  }
   0x7   :  { %9883 = sst [smem:[#allocation82_spill]] %s8597_s5  ;;  %s8500_s10 = smov 9  }
   0x8   :  { %9884 = sst [smem:[#allocation83_spill]] %s8602_s9  ;;  %s8501_s15 = smov 10  }
   0x9   :  { %s8627_s29 = sld [smem:[%s9819_s0 + %s8497_s26]]   ;;  %s8502_s20 = smov 11  }
   0xa   :  { %9885 = sst [smem:[#allocation84_spill]] %s8612_s17  ;;  %s8503_s26 = smov 12  }
   0xb   :  { %s8632_s3 = sld [smem:[%s9819_s0 + %s8498_s30]]   ;;  %s8504_s1 = smov 13  }
   0xc   :  { %9886 = sst [smem:[#allocation85_spill]] %s8622_s25  ;;  %s8505_s7 = smov 14  }
   0xd   :  { %s8637_s8 = sld [smem:[%s9819_s0 + %s8499_s4]]   ;;  %s8507_s22 = smov 16  }
   0xe   :  { %s8642_s14 = sld [smem:[%s9819_s0 + %s8500_s10]]   ;;  %s8508_s28 = smov 17  }
   0xf   :  { %s8647_s19 = sld [smem:[%s9819_s0 + %s8501_s15]]   ;;  %s8506_s15 = smov 15  }
  0x10   :  { %s8652_s24 = sld [smem:[%s9819_s0 + %s8502_s20]]  }
  0x11   :  { %9887 = sst [smem:[#allocation86_spill]] %s8632_s3 }
  0x12   :  { %s8657_s30 = sld [smem:[%s9819_s0 + %s8503_s26]]  }
  0x13   :  { %9888 = sst [smem:[#allocation87_spill]] %s8637_s8 }
  0x14   :  { %9889 = sst [smem:[#allocation88_spill]] %s8642_s14 }
  0x15   :  { %s8662_s6 = sld [smem:[%s9819_s0 + %s8504_s1]]  }
  0x16   :  { %9890 = sst [smem:[#allocation89_spill]] %s8652_s24 }
  0x17   :  { %s8667_s12 = sld [smem:[%s9819_s0 + %s8505_s7]]   ;;  %s8509_s7 = smov 18  }
  0x18   :  { %s8672_s20 = sld [smem:[%s9819_s0 + %s8506_s15]]   ;;  %s8510_s15 = smov 19  }
  0x19   :  { %s8677_s27 = sld [smem:[%s9819_s0 + %s8507_s22]]   ;;  %s8511_s22 = smov 20  }
  0x1a   :  { %s8682_s4 = sld [smem:[%s9819_s0 + %s8508_s28]]   ;;  %s8512_s28 = smov 21  }
  0x1b   :  { %9891 = sst [smem:[#allocation90_spill]] %s8662_s6 }
  0x1c   :  { %s8687_s5 = sld [smem:[%s9819_s0 + %s8509_s7]]   ;;  %s8513_s7 = smov 22  }
  0x1d   :  { %9892 = sst [smem:[#allocation91_spill]] %s8667_s12 }
  0x1e   :  { %9893 = sst [smem:[#allocation92_spill]] %s8672_s20 }
  0x1f   :  { %9894 = sst [smem:[#allocation93_spill]] %s8677_s27 }
  0x20   :  { %9895 = sst [smem:[#allocation94_spill]] %s8682_s4 }
  0x21   :  { %s8692_s20 = sld [smem:[%s9819_s0 + %s8510_s15]]   ;;  %s8514_s15 = smov 23  }
  0x22   :  { %9896 = sst [smem:[#allocation95_spill]] %s8687_s5 }
  0x23   :  { %s8697_s27 = sld [smem:[%s9819_s0 + %s8511_s22]]   ;;  %s8515_s22 = smov 24  }
  0x24   :  { %s8702_s6 = sld [smem:[%s9819_s0 + %s8512_s28]]   ;;  %s8516_s28 = smov 25  }
  0x25   :  { %s8707_s5 = sld [smem:[%s9819_s0 + %s8513_s7]]   ;;  %s8517_s7 = smov 26  }
  0x26   :  { %s8717_s24 = sld [smem:[%s9819_s0 + %s8515_s22]]   ;;  %s8519_s22 = smov 28  }
  0x27   :  { %9897 = sst [smem:[#allocation96_spill]] %s8692_s20 }
  0x28   :  { %s8712_s20 = sld [smem:[%s9819_s0 + %s8514_s15]]   ;;  %s8518_s15 = smov 27  }
  0x29   :  { %s8732_s14 = sld [smem:[%s9819_s0 + %s8518_s15]]   ;;  %s8522_s15 = smov 31  }
  0x2a   :  { %9898 = sst [smem:[#allocation97_spill]] %s8702_s6 }
  0x2b   :  { %9899 = sst [smem:[#allocation98_spill]] %s8707_s5 }
  0x2c   :  { %9900 = sst [smem:[#allocation99_spill]] %s8717_s24 }
  0x2d   :  { %s8722_s6 = sld [smem:[%s9819_s0 + %s8516_s28]]   ;;  %s8520_s28 = smov 29  }
  0x2e   :  { %s8727_s5 = sld [smem:[%s9819_s0 + %s8517_s7]]   ;;  %s8521_s7 = smov 30  }
  0x2f   :  { %9903 = sst [smem:[#allocation102_spill]] %s8732_s14 }
  0x30   :  { %s8737_s24 = sld [smem:[%s9819_s0 + %s8519_s22]]   ;;  %s8523_s22 = smov 32  }
  0x31   :  { %s8747_s3 = sld [smem:[%s9819_s0 + %s8521_s7]]   ;;  %s8525_s7 = smov 34  }
  0x32   :  { %s8752_s14 = sld [smem:[%s9819_s0 + %s8522_s15]]   ;;  %s8526_s15 = smov 35  }
  0x33   :  { %9901 = sst [smem:[#allocation100_spill]] %s8722_s6 }
  0x34   :  { %9902 = sst [smem:[#allocation101_spill]] %s8727_s5 }
  0x35   :  { %s8742_s6 = sld [smem:[%s9819_s0 + %s8520_s28]]   ;;  %s8524_s28 = smov 33  }
  0x36   :  { %9904 = sst [smem:[#allocation103_spill]] %s8737_s24 }
  0x37   :  { %9906 = sst [smem:[#allocation105_spill]] %s8747_s3 }
  0x38   :  { %9907 = sst [smem:[#allocation106_spill]] %s8752_s14 }
  0x39   :  { %s8757_s24 = sld [smem:[%s9819_s0 + %s8523_s22]]   ;;  %s8527_s22 = smov 36  }
  0x3a   :  { %s8767_s25 = sld [smem:[%s9819_s0 + %s8525_s7]]   ;;  %s8529_s7 = smov 38  }
  0x3b   :  { %9905 = sst [smem:[#allocation104_spill]] %s8742_s6 }
  0x3c   :  { %s8762_s6 = sld [smem:[%s9819_s0 + %s8524_s28]]   ;;  %s8528_s28 = smov 37  }
  0x3d   :  { %s8772_s14 = sld [smem:[%s9819_s0 + %s8526_s15]]   ;;  %s8530_s15 = smov 39  }
  0x3e   :  { %s8782_s17 = sld [smem:[%s9819_s0 + %s8528_s28]]   ;;  %s8532_s28 = smov 41  }
  0x3f   :  { %9908 = sst [smem:[#allocation107_spill]] %s8757_s24 }
  0x40   :  { %9910 = sst [smem:[#allocation109_spill]] %s8767_s25 }
  0x41   :  { %s8777_s24 = sld [smem:[%s9819_s0 + %s8527_s22]]   ;;  %s8531_s22 = smov 40  }
  0x42   :  { %9909 = sst [smem:[#allocation108_spill]] %s8762_s6 }
  0x43   :  { %9911 = sst [smem:[#allocation110_spill]] %s8772_s14 }
  0x44   :  { %9912 = sst [smem:[#allocation111_spill]] %s8782_s17 }
  0x45   :  { %s8787_s25 = sld [smem:[%s9819_s0 + %s8529_s7]]   ;;  %s8533_s7 = smov 42  }
  0x46   :  { %s8792_s14 = sld [smem:[%s9819_s0 + %s8530_s15]]   ;;  %s8534_s15 = smov 43  }
  0x47   :  { %s8797_s9 = sld [smem:[%s9819_s0 + %s8531_s22]]   ;;  %s8535_s22 = smov 44  }
  0x48   :  { %s8802_s17 = sld [smem:[%s9819_s0 + %s8532_s28]]   ;;  %s8536_s28 = smov 45  }
  0x4b   :  { %9913 = sst [smem:[#allocation112_spill]] %s8787_s25 }
  0x4c   :  { %9914 = sst [smem:[#allocation113_spill]] %s8792_s14 }
  0x4d   :  { %9915 = sst [smem:[#allocation114_spill]] %s8797_s9 }
  0x4e   :  { %9916 = sst [smem:[#allocation115_spill]] %s8802_s17 }
  0x4f   :  { %s8807_s25 = sld [smem:[%s9819_s0 + %s8533_s7]]   ;;  %s8537_s7 = smov 46  }
  0x50   :  { %s8812_s14 = sld [smem:[%s9819_s0 + %s8534_s15]]   ;;  %s8538_s15 = smov 47  }
  0x51   :  { %s8817_s9 = sld [smem:[%s9819_s0 + %s8535_s22]]   ;;  %s8539_s22 = smov 48  }
  0x52   :  { %s8822_s17 = sld [smem:[%s9819_s0 + %s8536_s28]]   ;;  %s8540_s28 = smov 49  }
  0x55   :  { %9917 = sst [smem:[#allocation116_spill]] %s8807_s25 }
  0x56   :  { %9918 = sst [smem:[#allocation117_spill]] %s8812_s14 }
  0x57   :  { %9919 = sst [smem:[#allocation118_spill]] %s8817_s9 }
  0x58   :  { %9920 = sst [smem:[#allocation119_spill]] %s8822_s17 }
  0x59   :  { %s8827_s25 = sld [smem:[%s9819_s0 + %s8537_s7]]   ;;  %s8541_s7 = smov 50  }
  0x5a   :  { %s8832_s14 = sld [smem:[%s9819_s0 + %s8538_s15]]   ;;  %s8542_s15 = smov 51  }
  0x5b   :  { %s8837_s9 = sld [smem:[%s9819_s0 + %s8539_s22]]   ;;  %s8543_s22 = smov 52  }
  0x5c   :  { %s8842_s17 = sld [smem:[%s9819_s0 + %s8540_s28]]   ;;  %s8544_s28 = smov 53  }
  0x5f   :  { %9921 = sst [smem:[#allocation120_spill]] %s8827_s25 }
  0x60   :  { %9922 = sst [smem:[#allocation121_spill]] %s8832_s14 }
  0x61   :  { %9923 = sst [smem:[#allocation122_spill]] %s8837_s9 }
  0x62   :  { %9924 = sst [smem:[#allocation123_spill]] %s8842_s17 }
  0x63   :  { %s8847_s25 = sld [smem:[%s9819_s0 + %s8541_s7]]   ;;  %s8545_s7 = smov 54  }
  0x64   :  { %s8852_s14 = sld [smem:[%s9819_s0 + %s8542_s15]]  }
  0x65   :  { %s8857_s9 = sld [smem:[%s9819_s0 + %s8543_s22]]  }
  0x66   :  { %s8862_s17 = sld [smem:[%s9819_s0 + %s8544_s28]]  }
  0x69   :  { %9925 = sst [smem:[#allocation124_spill]] %s8847_s25 }
  0x6a   :  { %s8867_s25 = sld [smem:[%s9819_s0 + %s8545_s7]]  }
  0x6b   :  { %114 = vsyncpa [#allocation9], 0 }
  0x6c   :  { %115 = vsyncpa [#allocation11], 0 }
  0x6d   :  { %116 = vsyncpa [#allocation14], 0 }
  0x6e   :  { %117 = vsyncpa [#allocation17], 0 }
  0x6f   :  { %118 = vsyncpa [#allocation20], 0 }
  0x70   :  { %119 = vsyncpa [#allocation23], 0 }
  0x71   :  { %120 = vsyncpa [#allocation26], 0 }
  0x72   :  { %121 = vsyncpa [#allocation29], 0 }
  0x73   :  { %122 = vsyncpa [#allocation32], 0 }
  0x74   :  { %123 = vsyncpa [#allocation35], 0 }
  0x75   :  { %124 = vsyncpa [#allocation38], 0 }
  0x76   :  { %125 = vsyncpa [#allocation41], 0 }
  0x77   :  { %126 = vsyncpa [#allocation44], 0 }
  0x78   :  { %127 = vsyncpa [#allocation47], 0 }
  0x79   :  { %128 = vsyncpa [#allocation50], 0 }
  0x7a   :  { %129 = vsyncpa [#allocation53], 0 }
  0x7b   :  { %130 = vsyncpa [#allocation56], 0 }
  0x7c   :  { %131 = vsyncpa [#allocation59], 0 }
  0x7d   :  { %132 = vsyncpa [#allocation62], 0  ;;  %s8869_s0 = smov 0  }
  0x7e LB: > { %s9926_s12 = sld [smem:[#allocation91_spill]]  ;;  %s9927_s8 = sld [smem:[#allocation87_spill]]  ;;  %s8490_s0 = sphi %s8869_s0, %s138_s0  }
  0x7f   : > { %s9928_s6 = sld [smem:[#allocation108_spill]]  ;;  %s9929_s5 = sld [smem:[#allocation101_spill]] }
  0x80   : > { %s9930_s4 = sld [smem:[#allocation94_spill]]  ;;  %s9931_s3 = sld [smem:[#allocation105_spill]] }
  0x81   : > { %s8875_s15 = sadd.s32 4294967295, %s8490_s0   ;;  %p6170_p0 = scmp.ge.s32.totalorder %s8490_s0, 1 }
  0x82   : > { %p1308_p1 = scmp.lt.s32.totalorder %s8490_s0, 3 }
  0x84   : > { %p8879_p2 = pnand %p6170_p0, %p1308_p1 }
  0x85   : > { %p7223_p3 = scmp.eq.s32.totalorder (!%p8879_p2), %s8875_s15, 0  ;;  %s8546_s18 = smov (!%p8879_p2), [#allocation10]  }
  0x86   : > { %1312 = sbr.rel (%p8879_p2) target bundleno = 1010 (0x3f2), region = 12  ;;  %s1334_s22 = sshll.u32 (!%p8879_p2), %s8546_s18, 4  ;;  %s1335_s22 = int_to_ptr.vmem [resolvable:$true] %s1334_s22 }
  0x87   : > { %s8547_s23 = smov (!%p8879_p2), [#allocation13]   ;;  %s7472_s28 = scalar_lea.hbm (!%p8879_p2), %s8607_s13, 16 }
  0x88   : > { %s1355_s26 = sshll.u32 (!%p8879_p2), %s8547_s23, 4  ;;  %p7473_p4 = scmp.ne.s32.totalorder (!%p8879_p2), %s8607_s13, %s7472_s28  ;;  %s1356_s26 = int_to_ptr.vmem [resolvable:$true] %s1355_s26 }
  0x89   : > { %p7478_p7 = scmp.lt.u32.totalorder (!%p8879_p2), %s7472_s28, %s8607_s13 }
  0x8a   : > { %p7474_p5 = pnand (!%p8879_p2), %p7473_p4, %p7223_p3 }
  0x8c   : > { %p7475_p6 = pneg (!%p8879_p2), %p7474_p5 }
  0x8e   : > { %p7480_p8 = pnand %p7478_p7, %p7475_p6 }
  0x90   : > { %7483 = shalt.err (!%p7480_p8)
}
  0x91   : > { %s7484_s1 = scalar_lea.vmem %s1335_s22, 16  ;;  %s7490_s2 = scalar_lea.vmem %s1335_s22, 32 }
  0x92   : > { %p7485_p9 = scmp.ne.s32.totalorder %s1335_s22, %s7484_s1  ;;  %p7491_p12 = scmp.lt.s32.totalorder %s1335_s22, %s1335_s22 }
  0x93   : > { %p7492_p13 = scmp.lt.s32.totalorder %s7490_s2, %s7484_s1 }
  0x94   : > { %p7486_p10 = pnand %p7485_p9, %p7223_p3 }
  0x95   : > { %p7493_p0 = por %p7492_p13, %p7491_p12 }
  0x96   : > { %p7487_p11 = pneg %p7486_p10 }
  0x98   : > { %p7494_p1 = pnand %p7493_p0, %p7487_p11 }
  0x9a   : > { %7497 = shalt.err (!%p7494_p1)
}
  0x9b   : > { %7082 = dma.hbm_to_vmem [thread:$0]  (%p7223_p3), %s8607_s13, 16, %s1335_s22, [#allocation11]  }
  0x9c   : > { %s7498_s7 = scalar_lea.hbm %s8617_s21, 192 }
  0x9d   : > { %p7499_p4 = scmp.ne.s32.totalorder %s8617_s21, %s7498_s7  ;;  %p7504_p7 = scmp.lt.u32.totalorder %s7498_s7, %s8617_s21 }
  0x9f   : > { %p7500_p5 = pnand %p7499_p4, %p7223_p3 }
  0xa1   : > { %p7501_p6 = pneg %p7500_p5 }
  0xa3   : > { %p7506_p8 = pnand %p7504_p7, %p7501_p6 }
  0xa5   : > { %7509 = shalt.err (!%p7506_p8)
}
  0xa6   : > { %s7510_s10 = scalar_lea.vmem %s1356_s26, 192  ;;  %p7517_p12 = scmp.lt.s32.totalorder %s1356_s26, %s1356_s26 }
  0xa7   : > { %p7511_p9 = scmp.ne.s32.totalorder %s1356_s26, %s7510_s10  ;;  %p7518_p13 = scmp.lt.s32.totalorder %s7510_s10, %s7510_s10 }
  0xa9   : > { %p7512_p10 = pnand %p7511_p9, %p7223_p3  ;;  %p7519_p0 = por %p7518_p13, %p7517_p12 }
  0xab   : > { %p7513_p11 = pneg %p7512_p10 }
  0xad   : > { %p7520_p1 = pnand %p7519_p0, %p7513_p11 }
  0xaf   : > { %7523 = shalt.err (!%p7520_p1)
}
  0xb0   : > { %s9854_s11 = smov 64   ;;  %s9856_s18 = smov 4  }
  0xb1   : > { %7086 = dma.hbm_to_vmem [thread:$0]  (%p7223_p3), %s8617_s21, 192, %s1356_s26, [#allocation14], %s9854_s11, %s9854_s11, %s9856_s18  }
  0xb2   : > { %s8550_s22 = smov [#allocation16]   ;;  %s8551_s28 = smov [#allocation19]  }
  0xb3   : > { %s1380_s23 = sshll.u32 %s8550_s22, 4  ;;  %s1404_s1 = sshll.u32 %s8551_s28, 4  ;;  %s1381_s23 = int_to_ptr.vmem [resolvable:$true] %s1380_s23  ;;  %s1405_s1 = int_to_ptr.vmem [resolvable:$true] %s1404_s1 }
  0xb4   : > { %s7524_s2 = scalar_lea.hbm %s8627_s29, 16 }
  0xb5   : > { %p7525_p4 = scmp.ne.s32.totalorder %s8627_s29, %s7524_s2  ;;  %p7530_p7 = scmp.lt.u32.totalorder %s7524_s2, %s8627_s29 }
  0xb7   : > { %p7526_p5 = pnand %p7525_p4, %p7223_p3 }
  0xb9   : > { %p7527_p6 = pneg %p7526_p5 }
  0xbb   : > { %p7532_p8 = pnand %p7530_p7, %p7527_p6 }
  0xbd   : > { %7535 = shalt.err (!%p7532_p8)
}
  0xbe   : > { %s7536_s7 = scalar_lea.vmem %s1381_s23, 16  ;;  %s7542_s26 = scalar_lea.vmem %s1381_s23, 32 }
  0xbf   : > { %p7537_p9 = scmp.ne.s32.totalorder %s1381_s23, %s7536_s7  ;;  %p7543_p12 = scmp.lt.s32.totalorder %s1381_s23, %s1381_s23 }
  0xc0   : > { %p7544_p13 = scmp.lt.s32.totalorder %s7542_s26, %s7536_s7 }
  0xc1   : > { %p7538_p10 = pnand %p7537_p9, %p7223_p3 }
  0xc2   : > { %p7545_p0 = por %p7544_p13, %p7543_p12 }
  0xc3   : > { %p7539_p11 = pneg %p7538_p10 }
  0xc5   : > { %p7546_p1 = pnand %p7545_p0, %p7539_p11 }
  0xc7   : > { %7549 = shalt.err (!%p7546_p1)
}
  0xc8   : > { %7090 = dma.hbm_to_vmem [thread:$0]  (%p7223_p3), %s8627_s29, 16, %s1381_s23, [#allocation17]  }
  0xc9   : > { %s7550_s10 = scalar_lea.hbm %s9927_s8, 16 }
  0xca   : > { %p7551_p4 = scmp.ne.s32.totalorder %s9927_s8, %s7550_s10  ;;  %p7556_p7 = scmp.lt.u32.totalorder %s7550_s10, %s9927_s8 }
  0xcc   : > { %p7552_p5 = pnand %p7551_p4, %p7223_p3 }
  0xce   : > { %p7553_p6 = pneg %p7552_p5 }
  0xd0   : > { %p7558_p8 = pnand %p7556_p7, %p7553_p6 }
  0xd2   : > { %7561 = shalt.err (!%p7558_p8)
}
  0xd3   : > { %s7562_s22 = scalar_lea.vmem %s1405_s1, 16  ;;  %s7568_s28 = scalar_lea.vmem %s1405_s1, 32 }
  0xd4   : > { %p7563_p9 = scmp.ne.s32.totalorder %s1405_s1, %s7562_s22  ;;  %p7569_p12 = scmp.lt.s32.totalorder %s1405_s1, %s1405_s1 }
  0xd5   : > { %p7570_p13 = scmp.lt.s32.totalorder %s7568_s28, %s7562_s22 }
  0xd6   : > { %p7564_p10 = pnand %p7563_p9, %p7223_p3 }
  0xd7   : > { %p7571_p0 = por %p7570_p13, %p7569_p12 }
  0xd8   : > { %p7565_p11 = pneg %p7564_p10 }
  0xda   : > { %p7572_p1 = pnand %p7571_p0, %p7565_p11 }
  0xdc   : > { %7575 = shalt.err (!%p7572_p1)
}
  0xdd   : > { %7094 = dma.hbm_to_vmem [thread:$0]  (%p7223_p3), %s9927_s8, 16, %s1405_s1, [#allocation20]  }
  0xde   : > { %s8552_s23 = smov [#allocation22]   ;;  %s8553_s7 = smov [#allocation25]  }
  0xdf   : > { %s1425_s2 = sshll.u32 %s8552_s23, 4  ;;  %s1450_s26 = sshll.u32 %s8553_s7, 4  ;;  %s1426_s2 = int_to_ptr.vmem [resolvable:$true] %s1425_s2  ;;  %s1451_s26 = int_to_ptr.vmem [resolvable:$true] %s1450_s26 }
  0xe0   : > { %s7576_s10 = scalar_lea.hbm %s8647_s19, 384 }
  0xe1   : > { %p7577_p4 = scmp.ne.s32.totalorder %s8647_s19, %s7576_s10  ;;  %p7582_p7 = scmp.lt.u32.totalorder %s7576_s10, %s8647_s19 }
  0xe3   : > { %p7578_p5 = pnand %p7577_p4, %p7223_p3 }
  0xe5   : > { %p7579_p6 = pneg %p7578_p5 }
  0xe7   : > { %p7584_p8 = pnand %p7582_p7, %p7579_p6 }
  0xe9   : > { %7587 = shalt.err (!%p7584_p8)
}
  0xea   : > { %s7588_s22 = scalar_lea.vmem %s1426_s2, 384  ;;  %p7595_p12 = scmp.lt.s32.totalorder %s1426_s2, %s1426_s2 }
  0xeb   : > { %p7589_p9 = scmp.ne.s32.totalorder %s1426_s2, %s7588_s22  ;;  %p7596_p13 = scmp.lt.s32.totalorder %s7588_s22, %s7588_s22 }
  0xed   : > { %p7590_p10 = pnand %p7589_p9, %p7223_p3  ;;  %p7597_p0 = por %p7596_p13, %p7595_p12 }
  0xef   : > { %p7591_p11 = pneg %p7590_p10 }
  0xf1   : > { %p7598_p1 = pnand %p7597_p0, %p7591_p11 }
  0xf3   : > { %7601 = shalt.err (!%p7598_p1)
}
  0xf4   : > { %7098 = dma.hbm_to_vmem [thread:$0]  (%p7223_p3), %s8647_s19, 384, %s1426_s2, [#allocation23], %s9854_s11, %s9854_s11, %s9856_s18  }
  0xf5   : > { %s7602_s1 = scalar_lea.hbm %s8657_s30, 16 }
  0xf6   : > { %p7603_p4 = scmp.ne.s32.totalorder %s8657_s30, %s7602_s1  ;;  %p7608_p7 = scmp.lt.u32.totalorder %s7602_s1, %s8657_s30 }
  0xf8   : > { %p7604_p5 = pnand %p7603_p4, %p7223_p3 }
  0xfa   : > { %p7605_p6 = pneg %p7604_p5 }
  0xfc   : > { %p7610_p8 = pnand %p7608_p7, %p7605_p6 }
  0xfe   : > { %7613 = shalt.err (!%p7610_p8)
}
  0xff   : > { %s7614_s28 = scalar_lea.vmem %s1451_s26, 16  ;;  %s7620_s23 = scalar_lea.vmem %s1451_s26, 32 }
 0x100   : > { %p7615_p9 = scmp.ne.s32.totalorder %s1451_s26, %s7614_s28  ;;  %p7621_p12 = scmp.lt.s32.totalorder %s1451_s26, %s1451_s26 }
 0x101   : > { %p7622_p13 = scmp.lt.s32.totalorder %s7620_s23, %s7614_s28 }
 0x102   : > { %p7616_p10 = pnand %p7615_p9, %p7223_p3 }
 0x103   : > { %p7623_p0 = por %p7622_p13, %p7621_p12 }
 0x104   : > { %p7617_p11 = pneg %p7616_p10 }
 0x106   : > { %p7624_p1 = pnand %p7623_p0, %p7617_p11 }
 0x108   : > { %7627 = shalt.err (!%p7624_p1)
}
 0x109   : > { %7102 = dma.hbm_to_vmem [thread:$0]  (%p7223_p3), %s8657_s30, 16, %s1451_s26, [#allocation26]  }
 0x10a   : > { %s8554_s2 = smov [#allocation28]   ;;  %s8555_s10 = smov [#allocation31]  }
 0x10b   : > { %s1474_s7 = sshll.u32 %s8554_s2, 4  ;;  %s1499_s22 = sshll.u32 %s8555_s10, 4  ;;  %s1475_s7 = int_to_ptr.vmem [resolvable:$true] %s1474_s7  ;;  %s1500_s22 = int_to_ptr.vmem [resolvable:$true] %s1499_s22 }
 0x10c   : > { %s7628_s1 = scalar_lea.hbm %s9926_s12, 16 }
 0x10d   : > { %p7629_p4 = scmp.ne.s32.totalorder %s9926_s12, %s7628_s1  ;;  %p7634_p7 = scmp.lt.u32.totalorder %s7628_s1, %s9926_s12 }
 0x10f   : > { %p7630_p5 = pnand %p7629_p4, %p7223_p3 }
 0x111   : > { %p7631_p6 = pneg %p7630_p5 }
 0x113   : > { %p7636_p8 = pnand %p7634_p7, %p7631_p6 }
 0x115   : > { %7639 = shalt.err (!%p7636_p8)
}
 0x116   : > { %s7640_s28 = scalar_lea.vmem %s1475_s7, 16  ;;  %s7646_s26 = scalar_lea.vmem %s1475_s7, 32 }
 0x117   : > { %p7641_p9 = scmp.ne.s32.totalorder %s1475_s7, %s7640_s28  ;;  %p7647_p12 = scmp.lt.s32.totalorder %s1475_s7, %s1475_s7 }
 0x118   : > { %p7648_p13 = scmp.lt.s32.totalorder %s7646_s26, %s7640_s28 }
 0x119   : > { %p7642_p10 = pnand %p7641_p9, %p7223_p3 }
 0x11a   : > { %p7649_p0 = por %p7648_p13, %p7647_p12 }
 0x11b   : > { %p7643_p11 = pneg %p7642_p10 }
 0x11d   : > { %p7650_p1 = pnand %p7649_p0, %p7643_p11 }
 0x11f   : > { %7653 = shalt.err (!%p7650_p1)
}
 0x120   : > { %7106 = dma.hbm_to_vmem [thread:$0]  (%p7223_p3), %s9926_s12, 16, %s1475_s7, [#allocation29]  }
 0x121   : > { %s7654_s23 = scalar_lea.hbm %s9930_s4, 16 }
 0x122   : > { %p7655_p4 = scmp.ne.s32.totalorder %s9930_s4, %s7654_s23  ;;  %p7660_p7 = scmp.lt.u32.totalorder %s7654_s23, %s9930_s4 }
 0x124   : > { %p7656_p5 = pnand %p7655_p4, %p7223_p3 }
 0x126   : > { %p7657_p6 = pneg %p7656_p5 }
 0x128   : > { %p7662_p8 = pnand %p7660_p7, %p7657_p6 }
 0x12a   : > { %7665 = shalt.err (!%p7662_p8)
}
 0x12b   : > { %s7666_s2 = scalar_lea.vmem %s1500_s22, 16  ;;  %s7672_s10 = scalar_lea.vmem %s1500_s22, 32 }
 0x12c   : > { %p7667_p9 = scmp.ne.s32.totalorder %s1500_s22, %s7666_s2  ;;  %p7673_p12 = scmp.lt.s32.totalorder %s1500_s22, %s1500_s22 }
 0x12d   : > { %p7674_p13 = scmp.lt.s32.totalorder %s7672_s10, %s7666_s2 }
 0x12e   : > { %p7668_p10 = pnand %p7667_p9, %p7223_p3 }
 0x12f   : > { %p7675_p0 = por %p7674_p13, %p7673_p12 }
 0x130   : > { %p7669_p11 = pneg %p7668_p10 }
 0x132   : > { %p7676_p1 = pnand %p7675_p0, %p7669_p11 }
 0x134   : > { %7679 = shalt.err (!%p7676_p1)
}
 0x135   : > { %7110 = dma.hbm_to_vmem [thread:$0]  (%p7223_p3), %s9930_s4, 16, %s1500_s22, [#allocation32]  }
 0x136   : > { %s8556_s7 = smov [#allocation34]   ;;  %s8557_s28 = smov [#allocation37]  }
 0x137   : > { %s1524_s1 = sshll.u32 %s8556_s7, 4  ;;  %s1549_s26 = sshll.u32 %s8557_s28, 4  ;;  %s1525_s1 = int_to_ptr.vmem [resolvable:$true] %s1524_s1  ;;  %s1550_s26 = int_to_ptr.vmem [resolvable:$true] %s1549_s26 }
 0x138   : > { %s7680_s23 = scalar_lea.hbm %s8697_s27, 16 }
 0x139   : > { %p7681_p4 = scmp.ne.s32.totalorder %s8697_s27, %s7680_s23  ;;  %p7686_p7 = scmp.lt.u32.totalorder %s7680_s23, %s8697_s27 }
 0x13b   : > { %p7682_p5 = pnand %p7681_p4, %p7223_p3 }
 0x13d   : > { %p7683_p6 = pneg %p7682_p5 }
 0x13f   : > { %p7688_p8 = pnand %p7686_p7, %p7683_p6 }
 0x141   : > { %7691 = shalt.err (!%p7688_p8)
}
 0x142   : > { %s7692_s2 = scalar_lea.vmem %s1525_s1, 16  ;;  %s7698_s22 = scalar_lea.vmem %s1525_s1, 32 }
 0x143   : > { %p7693_p9 = scmp.ne.s32.totalorder %s1525_s1, %s7692_s2  ;;  %p7699_p12 = scmp.lt.s32.totalorder %s1525_s1, %s1525_s1 }
 0x144   : > { %p7700_p13 = scmp.lt.s32.totalorder %s7698_s22, %s7692_s2 }
 0x145   : > { %p7694_p10 = pnand %p7693_p9, %p7223_p3 }
 0x146   : > { %p7701_p0 = por %p7700_p13, %p7699_p12 }
 0x147   : > { %p7695_p11 = pneg %p7694_p10 }
 0x149   : > { %p7702_p1 = pnand %p7701_p0, %p7695_p11 }
 0x14b   : > { %7705 = shalt.err (!%p7702_p1)
}
 0x14c   : > { %7114 = dma.hbm_to_vmem [thread:$0]  (%p7223_p3), %s8697_s27, 16, %s1525_s1, [#allocation35]  }
 0x14d   : > { %s7706_s10 = scalar_lea.hbm %s8712_s20, 16 }
 0x14e   : > { %p7707_p4 = scmp.ne.s32.totalorder %s8712_s20, %s7706_s10  ;;  %p7712_p7 = scmp.lt.u32.totalorder %s7706_s10, %s8712_s20 }
 0x150   : > { %p7708_p5 = pnand %p7707_p4, %p7223_p3 }
 0x152   : > { %p7709_p6 = pneg %p7708_p5 }
 0x154   : > { %p7714_p8 = pnand %p7712_p7, %p7709_p6 }
 0x156   : > { %7717 = shalt.err (!%p7714_p8)
}
 0x157   : > { %s7718_s7 = scalar_lea.vmem %s1550_s26, 16  ;;  %s7724_s28 = scalar_lea.vmem %s1550_s26, 32 }
 0x158   : > { %p7719_p9 = scmp.ne.s32.totalorder %s1550_s26, %s7718_s7  ;;  %p7725_p12 = scmp.lt.s32.totalorder %s1550_s26, %s1550_s26 }
 0x159   : > { %p7726_p13 = scmp.lt.s32.totalorder %s7724_s28, %s7718_s7 }
 0x15a   : > { %p7720_p10 = pnand %p7719_p9, %p7223_p3 }
 0x15b   : > { %p7727_p0 = por %p7726_p13, %p7725_p12 }
 0x15c   : > { %p7721_p11 = pneg %p7720_p10 }
 0x15e   : > { %p7728_p1 = pnand %p7727_p0, %p7721_p11 }
 0x160   : > { %7731 = shalt.err (!%p7728_p1)
}
 0x161   : > { %7118 = dma.hbm_to_vmem [thread:$0]  (%p7223_p3), %s8712_s20, 16, %s1550_s26, [#allocation38]  }
 0x162   : > { %s8558_s1 = smov [#allocation40]   ;;  %s8559_s2 = smov [#allocation43]  }
 0x163   : > { %s1574_s23 = sshll.u32 %s8558_s1, 4  ;;  %s1602_s22 = sshll.u32 %s8559_s2, 4  ;;  %s1575_s23 = int_to_ptr.vmem [resolvable:$true] %s1574_s23  ;;  %s1603_s22 = int_to_ptr.vmem [resolvable:$true] %s1602_s22 }
 0x164   : > { %s7732_s10 = scalar_lea.hbm %s9929_s5, 16 }
 0x165   : > { %p7733_p4 = scmp.ne.s32.totalorder %s9929_s5, %s7732_s10  ;;  %p7738_p7 = scmp.lt.u32.totalorder %s7732_s10, %s9929_s5 }
 0x167   : > { %p7734_p5 = pnand %p7733_p4, %p7223_p3 }
 0x169   : > { %p7735_p6 = pneg %p7734_p5 }
 0x16b   : > { %p7740_p8 = pnand %p7738_p7, %p7735_p6 }
 0x16d   : > { %7743 = shalt.err (!%p7740_p8)
}
 0x16e   : > { %s7744_s7 = scalar_lea.vmem %s1575_s23, 16  ;;  %s7750_s26 = scalar_lea.vmem %s1575_s23, 32 }
 0x16f   : > { %p7745_p9 = scmp.ne.s32.totalorder %s1575_s23, %s7744_s7  ;;  %p7751_p12 = scmp.lt.s32.totalorder %s1575_s23, %s1575_s23 }
 0x170   : > { %p7752_p13 = scmp.lt.s32.totalorder %s7750_s26, %s7744_s7 }
 0x171   : > { %p7746_p10 = pnand %p7745_p9, %p7223_p3 }
 0x172   : > { %p7753_p0 = por %p7752_p13, %p7751_p12 }
 0x173   : > { %p7747_p11 = pneg %p7746_p10 }
 0x175   : > { %p7754_p1 = pnand %p7753_p0, %p7747_p11 }
 0x177   : > { %7757 = shalt.err (!%p7754_p1)
}
 0x178   : > { %7122 = dma.hbm_to_vmem [thread:$0]  (%p7223_p3), %s9929_s5, 16, %s1575_s23, [#allocation41]  }
 0x179   : > { %s7758_s28 = scalar_lea.hbm %s9931_s3, 16 }
 0x17a   : > { %p7759_p4 = scmp.ne.s32.totalorder %s9931_s3, %s7758_s28  ;;  %p7764_p7 = scmp.lt.u32.totalorder %s7758_s28, %s9931_s3 }
 0x17c   : > { %p7760_p5 = pnand %p7759_p4, %p7223_p3 }
 0x17e   : > { %p7761_p6 = pneg %p7760_p5 }
 0x180   : > { %p7766_p8 = pnand %p7764_p7, %p7761_p6 }
 0x182   : > { %7769 = shalt.err (!%p7766_p8)
}
 0x183   : > { %s7770_s1 = scalar_lea.vmem %s1603_s22, 16  ;;  %s7776_s2 = scalar_lea.vmem %s1603_s22, 32 }
 0x184   : > { %p7771_p9 = scmp.ne.s32.totalorder %s1603_s22, %s7770_s1  ;;  %p7777_p12 = scmp.lt.s32.totalorder %s1603_s22, %s1603_s22 }
 0x185   : > { %p7778_p13 = scmp.lt.s32.totalorder %s7776_s2, %s7770_s1 }
 0x186   : > { %p7772_p10 = pnand %p7771_p9, %p7223_p3 }
 0x187   : > { %p7779_p0 = por %p7778_p13, %p7777_p12 }
 0x188   : > { %p7773_p11 = pneg %p7772_p10 }
 0x18a   : > { %p7780_p1 = pnand %p7779_p0, %p7773_p11 }
 0x18c   : > { %7783 = shalt.err (!%p7780_p1)
}
 0x18d   : > { %7126 = dma.hbm_to_vmem [thread:$0]  (%p7223_p3), %s9931_s3, 16, %s1603_s22, [#allocation44]  }
 0x18e   : > { %s8560_s23 = smov [#allocation46]   ;;  %s8561_s7 = smov [#allocation49]  }
 0x18f   : > { %s1627_s10 = sshll.u32 %s8560_s23, 4  ;;  %s1651_s26 = sshll.u32 %s8561_s7, 4  ;;  %s1628_s10 = int_to_ptr.vmem [resolvable:$true] %s1627_s10  ;;  %s1652_s26 = int_to_ptr.vmem [resolvable:$true] %s1651_s26 }
 0x190   : > { %s7784_s28 = scalar_lea.hbm %s9928_s6, 16 }
 0x191   : > { %p7785_p4 = scmp.ne.s32.totalorder %s9928_s6, %s7784_s28  ;;  %p7790_p7 = scmp.lt.u32.totalorder %s7784_s28, %s9928_s6 }
 0x193   : > { %p7786_p5 = pnand %p7785_p4, %p7223_p3 }
 0x195   : > { %p7787_p6 = pneg %p7786_p5 }
 0x197   : > { %p7792_p8 = pnand %p7790_p7, %p7787_p6 }
 0x199   : > { %7795 = shalt.err (!%p7792_p8)
}
 0x19a   : > { %s7796_s1 = scalar_lea.vmem %s1628_s10, 16  ;;  %s7802_s22 = scalar_lea.vmem %s1628_s10, 32 }
 0x19b   : > { %p7797_p9 = scmp.ne.s32.totalorder %s1628_s10, %s7796_s1  ;;  %p7803_p12 = scmp.lt.s32.totalorder %s1628_s10, %s1628_s10 }
 0x19c   : > { %p7804_p13 = scmp.lt.s32.totalorder %s7802_s22, %s7796_s1 }
 0x19d   : > { %p7798_p10 = pnand %p7797_p9, %p7223_p3 }
 0x19e   : > { %p7805_p0 = por %p7804_p13, %p7803_p12 }
 0x19f   : > { %p7799_p11 = pneg %p7798_p10 }
 0x1a1   : > { %p7806_p1 = pnand %p7805_p0, %p7799_p11 }
 0x1a3   : > { %7809 = shalt.err (!%p7806_p1)
}
 0x1a4   : > { %7130 = dma.hbm_to_vmem [thread:$0]  (%p7223_p3), %s9928_s6, 16, %s1628_s10, [#allocation47]  }
 0x1a5   : > { %s7810_s2 = scalar_lea.hbm %s8777_s24, 384 }
 0x1a6   : > { %p7811_p4 = scmp.ne.s32.totalorder %s8777_s24, %s7810_s2  ;;  %p7816_p7 = scmp.lt.u32.totalorder %s7810_s2, %s8777_s24 }
 0x1a8   : > { %p7812_p5 = pnand %p7811_p4, %p7223_p3 }
 0x1aa   : > { %p7813_p6 = pneg %p7812_p5 }
 0x1ac   : > { %p7818_p8 = pnand %p7816_p7, %p7813_p6 }
 0x1ae   : > { %7821 = shalt.err (!%p7818_p8)
}
 0x1af   : > { %s7822_s23 = scalar_lea.vmem %s1652_s26, 384  ;;  %p7829_p12 = scmp.lt.s32.totalorder %s1652_s26, %s1652_s26 }
 0x1b0   : > { %p7823_p9 = scmp.ne.s32.totalorder %s1652_s26, %s7822_s23  ;;  %p7830_p13 = scmp.lt.s32.totalorder %s7822_s23, %s7822_s23 }
 0x1b2   : > { %p7824_p10 = pnand %p7823_p9, %p7223_p3  ;;  %p7831_p0 = por %p7830_p13, %p7829_p12 }
 0x1b4   : > { %p7825_p11 = pneg %p7824_p10 }
 0x1b6   : > { %p7832_p1 = pnand %p7831_p0, %p7825_p11 }
 0x1b8   : > { %7835 = shalt.err (!%p7832_p1)
}
 0x1b9   : > { %s9933_s10 = sld [smem:[#allocation115_spill]]  ;;  %s8562_s7 = smov [#allocation52]  }
 0x1ba   : > { %7134 = dma.hbm_to_vmem [thread:$0]  (%p7223_p3), %s8777_s24, 384, %s1652_s26, [#allocation50], %s9854_s11, %s9854_s11, %s9856_s18  }
 0x1bb   : > { %s1687_s28 = sshll.u32 %s8562_s7, 4  ;;  %s8563_s1 = smov [#allocation55]   ;;  %s1688_s28 = int_to_ptr.vmem [resolvable:$true] %s1687_s28 }
 0x1bc   : > { %s1712_s22 = sshll.u32 %s8563_s1, 4  ;;  %s1713_s22 = int_to_ptr.vmem [resolvable:$true] %s1712_s22 }
 0x1bf   : > { %s7836_s2 = scalar_lea.hbm %s9933_s10, 16 }
 0x1c0   : > { %p7837_p4 = scmp.ne.s32.totalorder %s9933_s10, %s7836_s2  ;;  %p7842_p7 = scmp.lt.u32.totalorder %s7836_s2, %s9933_s10 }
 0x1c2   : > { %p7838_p5 = pnand %p7837_p4, %p7223_p3 }
 0x1c4   : > { %p7839_p6 = pneg %p7838_p5 }
 0x1c6   : > { %p7844_p8 = pnand %p7842_p7, %p7839_p6 }
 0x1c8   : > { %7847 = shalt.err (!%p7844_p8)
}
 0x1c9   : > { %s7848_s23 = scalar_lea.vmem %s1688_s28, 16  ;;  %s7854_s26 = scalar_lea.vmem %s1688_s28, 32 }
 0x1ca   : > { %p7849_p9 = scmp.ne.s32.totalorder %s1688_s28, %s7848_s23  ;;  %p7855_p12 = scmp.lt.s32.totalorder %s1688_s28, %s1688_s28 }
 0x1cb   : > { %p7856_p13 = scmp.lt.s32.totalorder %s7854_s26, %s7848_s23 }
 0x1cc   : > { %p7850_p10 = pnand %p7849_p9, %p7223_p3 }
 0x1cd   : > { %p7857_p0 = por %p7856_p13, %p7855_p12 }
 0x1ce   : > { %p7851_p11 = pneg %p7850_p10 }
 0x1d0   : > { %p7858_p1 = pnand %p7857_p0, %p7851_p11 }
 0x1d2   : > { %7861 = shalt.err (!%p7858_p1)
}
 0x1d3   : > { %s9934_s7 = sld [smem:[#allocation118_spill]] }
 0x1d4   : > { %7138 = dma.hbm_to_vmem [thread:$0]  (%p7223_p3), %s9933_s10, 16, %s1688_s28, [#allocation53]  }
 0x1d9   : > { %s7862_s1 = scalar_lea.hbm %s9934_s7, 16 }
 0x1da   : > { %p7863_p4 = scmp.ne.s32.totalorder %s9934_s7, %s7862_s1  ;;  %p7868_p7 = scmp.lt.u32.totalorder %s7862_s1, %s9934_s7 }
 0x1dc   : > { %p7864_p5 = pnand %p7863_p4, %p7223_p3 }
 0x1de   : > { %p7865_p6 = pneg %p7864_p5 }
 0x1e0   : > { %p7870_p8 = pnand %p7868_p7, %p7865_p6 }
 0x1e2   : > { %7873 = shalt.err (!%p7870_p8)
}
 0x1e3   : > { %s7874_s2 = scalar_lea.vmem %s1713_s22, 16  ;;  %s7880_s23 = scalar_lea.vmem %s1713_s22, 32 }
 0x1e4   : > { %p7875_p9 = scmp.ne.s32.totalorder %s1713_s22, %s7874_s2  ;;  %p7881_p12 = scmp.lt.s32.totalorder %s1713_s22, %s1713_s22 }
 0x1e5   : > { %p7882_p13 = scmp.lt.s32.totalorder %s7880_s23, %s7874_s2 }
 0x1e6   : > { %p7876_p10 = pnand %p7875_p9, %p7223_p3 }
 0x1e7   : > { %p7883_p0 = por %p7882_p13, %p7881_p12 }
 0x1e8   : > { %p7877_p11 = pneg %p7876_p10 }
 0x1ea   : > { %p7884_p1 = pnand %p7883_p0, %p7877_p11 }
 0x1ec   : > { %7887 = shalt.err (!%p7884_p1)
}
 0x1ed   : > { %s9935_s28 = sld [smem:[#allocation122_spill]]  ;;  %s8564_s26 = smov [#allocation58]  }
 0x1ee   : > { %7142 = dma.hbm_to_vmem [thread:$0]  (%p7223_p3), %s9934_s7, 16, %s1713_s22, [#allocation56]  }
 0x1ef   : > { %s1740_s1 = sshll.u32 %s8564_s26, 4  ;;  %s1741_s1 = int_to_ptr.vmem [resolvable:$true] %s1740_s1 }
 0x1f3   : > { %s7888_s11 = scalar_lea.hbm %s9935_s28, 16 }
 0x1f4   : > { %p7889_p4 = scmp.ne.s32.totalorder %s9935_s28, %s7888_s11  ;;  %p7894_p7 = scmp.lt.u32.totalorder %s7888_s11, %s9935_s28 }
 0x1f6   : > { %p7890_p5 = pnand %p7889_p4, %p7223_p3 }
 0x1f8   : > { %p7891_p6 = pneg %p7890_p5 }
 0x1fa   : > { %p7896_p8 = pnand %p7894_p7, %p7891_p6 }
 0x1fc   : > { %7899 = shalt.err (!%p7896_p8)
}
 0x1fd   : > { %s7900_s2 = scalar_lea.vmem %s1741_s1, 16  ;;  %s7906_s23 = scalar_lea.vmem %s1741_s1, 32 }
 0x1fe   : > { %p7901_p9 = scmp.ne.s32.totalorder %s1741_s1, %s7900_s2  ;;  %p7907_p12 = scmp.lt.s32.totalorder %s1741_s1, %s1741_s1 }
 0x1ff   : > { %p7908_p13 = scmp.lt.s32.totalorder %s7906_s23, %s7900_s2 }
 0x200   : > { %p7902_p10 = pnand %p7901_p9, %p7223_p3 }
 0x201   : > { %p7909_p0 = por %p7908_p13, %p7907_p12 }
 0x202   : > { %p7903_p11 = pneg %p7902_p10 }
 0x204   : > { %p7910_p1 = pnand %p7909_p0, %p7903_p11 }
 0x206   : > { %7913 = shalt.err (!%p7910_p1)
}
 0x207   : > { %s9936_s22 = sld [smem:[#allocation83_spill]]  ;;  %s8565_s11 = smov [#allocation8]  }
 0x208   : > { %7146 = dma.hbm_to_vmem [thread:$0]  (%p7223_p3), %s9935_s28, 16, %s1741_s1, [#allocation59]  }
 0x209   : > { %s1320_s26 = sshll.u32 %s8565_s11, 4  ;;  %s1321_s26 = int_to_ptr.vmem [resolvable:$true] %s1320_s26 }
 0x20d   : > { %s7914_s18 = scalar_lea.hbm %s9936_s22, 96 }
 0x20e   : > { %p7915_p4 = scmp.ne.s32.totalorder %s9936_s22, %s7914_s18  ;;  %p7920_p7 = scmp.lt.u32.totalorder %s7914_s18, %s9936_s22 }
 0x210   : > { %p7916_p5 = pnand %p7915_p4, %p7223_p3 }
 0x212   : > { %p7917_p6 = pneg %p7916_p5 }
 0x214   : > { %p7922_p8 = pnand %p7920_p7, %p7917_p6 }
 0x216   : > { %7925 = shalt.err (!%p7922_p8)
}
 0x217   : > { %s7926_s2 = scalar_lea.vmem %s1321_s26, 96  ;;  %p7933_p12 = scmp.lt.s32.totalorder %s1321_s26, %s1321_s26 }
 0x218   : > { %p7927_p9 = scmp.ne.s32.totalorder %s1321_s26, %s7926_s2  ;;  %p7934_p13 = scmp.lt.s32.totalorder %s7926_s2, %s7926_s2 }
 0x21a   : > { %p7928_p10 = pnand %p7927_p9, %p7223_p3  ;;  %p7935_p0 = por %p7934_p13, %p7933_p12 }
 0x21c   : > { %p7929_p11 = pneg %p7928_p10 }
 0x21e   : > { %p7936_p1 = pnand %p7935_p0, %p7929_p11 }
 0x220   : > { %7939 = shalt.err (!%p7936_p1)
}
 0x221   : > { %s8566_s1 = smov 32   ;;  %s9937_s23 = sld [smem:[#allocation84_spill]] }
 0x222   : > { %s8567_s18 = smov 2   ;;  %s8568_s11 = smov [#allocation12]  }
 0x223   : > { %7080 = dma.hbm_to_vmem [thread:$0]  (%p7223_p3), %s9936_s22, 96, %s1321_s26, [#allocation9], %s8566_s1, %s8566_s1, %s8567_s18  }
 0x224   : > { %s1345_s3 = sshll.u32 %s8568_s11, 4  ;;  %s8569_s4 = smov [#allocation15]   ;;  %s1346_s3 = int_to_ptr.vmem [resolvable:$true] %s1345_s3 }
 0x225   : > { %s1369_s5 = sshll.u32 %s8569_s4, 4  ;;  %s9075_s5 = int_to_ptr.vmem [resolvable:$true] %s1369_s5 }
 0x227   : > { %s7940_s2 = scalar_lea.hbm %s9937_s23, 16 }
 0x228   : > { %p7941_p4 = scmp.ne.s32.totalorder %s9937_s23, %s7940_s2  ;;  %p7946_p7 = scmp.lt.u32.totalorder %s7940_s2, %s9937_s23 }
 0x22a   : > { %p7942_p5 = pnand %p7941_p4, %p7223_p3 }
 0x22c   : > { %p7943_p6 = pneg %p7942_p5 }
 0x22e   : > { %p7948_p8 = pnand %p7946_p7, %p7943_p6 }
 0x230   : > { %7951 = shalt.err (!%p7948_p8)
}
 0x231   : > { %s7952_s6 = scalar_lea.vmem %s1346_s3, 16  ;;  %s7958_s26 = scalar_lea.vmem %s1346_s3, 32 }
 0x232   : > { %p7953_p9 = scmp.ne.s32.totalorder %s1346_s3, %s7952_s6  ;;  %p7959_p12 = scmp.lt.s32.totalorder %s1346_s3, %s1346_s3 }
 0x233   : > { %p7960_p13 = scmp.lt.s32.totalorder %s7958_s26, %s7952_s6 }
 0x234   : > { %p7954_p10 = pnand %p7953_p9, %p7223_p3 }
 0x235   : > { %p7961_p0 = por %p7960_p13, %p7959_p12 }
 0x236   : > { %p7955_p11 = pneg %p7954_p10 }
 0x238   : > { %p7962_p1 = pnand %p7961_p0, %p7955_p11 }
 0x23a   : > { %7965 = shalt.err (!%p7962_p1)
}
 0x23b   : > { %s9938_s4 = sld [smem:[#allocation85_spill]] }
 0x23c   : > { %7084 = dma.hbm_to_vmem [thread:$0]  (%p7223_p3), %s9937_s23, 16, %s1346_s3, [#allocation11]  }
 0x241   : > { %s7966_s1 = scalar_lea.hbm %s9938_s4, 16 }
 0x242   : > { %p7967_p4 = scmp.ne.s32.totalorder %s9938_s4, %s7966_s1  ;;  %p7972_p7 = scmp.lt.u32.totalorder %s7966_s1, %s9938_s4 }
 0x244   : > { %p7968_p5 = pnand %p7967_p4, %p7223_p3 }
 0x246   : > { %p7969_p6 = pneg %p7968_p5 }
 0x248   : > { %p7974_p8 = pnand %p7972_p7, %p7969_p6 }
 0x24a   : > { %7977 = shalt.err (!%p7974_p8)
}
 0x24b   : > { %s7978_s6 = scalar_lea.vmem %s9075_s5, 16  ;;  %s7984_s18 = scalar_lea.vmem %s9075_s5, 32 }
 0x24c   : > { %p7979_p9 = scmp.ne.s32.totalorder %s9075_s5, %s7978_s6  ;;  %p7985_p12 = scmp.lt.s32.totalorder %s9075_s5, %s9075_s5 }
 0x24d   : > { %p7986_p13 = scmp.lt.s32.totalorder %s7984_s18, %s7978_s6 }
 0x24e   : > { %p7980_p10 = pnand %p7979_p9, %p7223_p3 }
 0x24f   : > { %p7987_p0 = por %p7986_p13, %p7985_p12 }
 0x250   : > { %p7981_p11 = pneg %p7980_p10 }
 0x252   : > { %p7988_p1 = pnand %p7987_p0, %p7981_p11 }
 0x254   : > { %7991 = shalt.err (!%p7988_p1)
}
 0x255   : > { %s9939_s3 = sld [smem:[#allocation86_spill]]  ;;  %s8570_s11 = smov [#allocation18]  }
 0x256   : > { %7088 = dma.hbm_to_vmem [thread:$0]  (%p7223_p3), %s9938_s4, 16, %s9075_s5, [#allocation14]  }
 0x257   : > { %s1390_s2 = sshll.u32 %s8570_s11, 4  ;;  %s8571_s26 = smov [#allocation21]   ;;  %s1391_s2 = int_to_ptr.vmem [resolvable:$true] %s1390_s2 }
 0x258   : > { %s1415_s1 = sshll.u32 %s8571_s26, 4  ;;  %s9103_s1 = int_to_ptr.vmem [resolvable:$true] %s1415_s1 }
 0x25b   : > { %s7992_s6 = scalar_lea.hbm %s9939_s3, 192 }
 0x25c   : > { %p7993_p4 = scmp.ne.s32.totalorder %s9939_s3, %s7992_s6  ;;  %p7998_p7 = scmp.lt.u32.totalorder %s7992_s6, %s9939_s3 }
 0x25e   : > { %p7994_p5 = pnand %p7993_p4, %p7223_p3 }
 0x260   : > { %p7995_p6 = pneg %p7994_p5 }
 0x262   : > { %p8000_p8 = pnand %p7998_p7, %p7995_p6 }
 0x264   : > { %8003 = shalt.err (!%p8000_p8)
}
 0x265   : > { %s8004_s18 = scalar_lea.vmem %s1391_s2, 192  ;;  %p8011_p12 = scmp.lt.s32.totalorder %s1391_s2, %s1391_s2 }
 0x266   : > { %p8005_p9 = scmp.ne.s32.totalorder %s1391_s2, %s8004_s18  ;;  %p8012_p13 = scmp.lt.s32.totalorder %s8004_s18, %s8004_s18 }
 0x268   : > { %p8006_p10 = pnand %p8005_p9, %p7223_p3  ;;  %p8013_p0 = por %p8012_p13, %p8011_p12 }
 0x26a   : > { %p8007_p11 = pneg %p8006_p10 }
 0x26c   : > { %p8014_p1 = pnand %p8013_p0, %p8007_p11 }
 0x26e   : > { %8017 = shalt.err (!%p8014_p1)
}
 0x26f   : > { %s9940_s5 = smov 4   ;;  %s9941_s11 = smov 64  }
 0x270   : > { %s9942_s26 = sld [smem:[#allocation88_spill]] }
 0x271   : > { %7092 = dma.hbm_to_vmem [thread:$0]  (%p7223_p3), %s9939_s3, 192, %s1391_s2, [#allocation17], %s9941_s11, %s9941_s11, %s9940_s5  }
 0x276   : > { %s8018_s6 = scalar_lea.hbm %s9942_s26, 16 }
 0x277   : > { %p8019_p4 = scmp.ne.s32.totalorder %s9942_s26, %s8018_s6  ;;  %p8024_p7 = scmp.lt.u32.totalorder %s8018_s6, %s9942_s26 }
 0x279   : > { %p8020_p5 = pnand %p8019_p4, %p7223_p3 }
 0x27b   : > { %p8021_p6 = pneg %p8020_p5 }
 0x27d   : > { %p8026_p8 = pnand %p8024_p7, %p8021_p6 }
 0x27f   : > { %8029 = shalt.err (!%p8026_p8)
}
 0x280   : > { %s8030_s18 = scalar_lea.vmem %s9103_s1, 16  ;;  %s8036_s4 = scalar_lea.vmem %s9103_s1, 32 }
 0x281   : > { %p8031_p9 = scmp.ne.s32.totalorder %s9103_s1, %s8030_s18  ;;  %p8037_p12 = scmp.lt.s32.totalorder %s9103_s1, %s9103_s1 }
 0x282   : > { %p8038_p13 = scmp.lt.s32.totalorder %s8036_s4, %s8030_s18 }
 0x283   : > { %p8032_p10 = pnand %p8031_p9, %p7223_p3 }
 0x284   : > { %p8039_p0 = por %p8038_p13, %p8037_p12 }
 0x285   : > { %p8033_p11 = pneg %p8032_p10 }
 0x287   : > { %p8040_p1 = pnand %p8039_p0, %p8033_p11 }
 0x289   : > { %8043 = shalt.err (!%p8040_p1)
}
 0x28a   : > { %s9943_s2 = sld [smem:[#allocation89_spill]]  ;;  %s8572_s6 = smov [#allocation24]  }
 0x28b   : > { %7096 = dma.hbm_to_vmem [thread:$0]  (%p7223_p3), %s9942_s26, 16, %s9103_s1, [#allocation20]  }
 0x28c   : > { %s1439_s3 = sshll.u32 %s8572_s6, 4  ;;  %s8573_s7 = smov [#allocation27]   ;;  %s1440_s3 = int_to_ptr.vmem [resolvable:$true] %s1439_s3 }
 0x28d   : > { %s1460_s8 = sshll.u32 %s8573_s7, 4  ;;  %s9134_s8 = int_to_ptr.vmem [resolvable:$true] %s1460_s8 }
 0x290   : > { %s8044_s4 = scalar_lea.hbm %s9943_s2, 16 }
 0x291   : > { %p8045_p4 = scmp.ne.s32.totalorder %s9943_s2, %s8044_s4  ;;  %p8050_p7 = scmp.lt.u32.totalorder %s8044_s4, %s9943_s2 }
 0x293   : > { %p8046_p5 = pnand %p8045_p4, %p7223_p3 }
 0x295   : > { %p8047_p6 = pneg %p8046_p5 }
 0x297   : > { %p8052_p8 = pnand %p8050_p7, %p8047_p6 }
 0x299   : > { %8055 = shalt.err (!%p8052_p8)
}
 0x29a   : > { %s8056_s18 = scalar_lea.vmem %s1440_s3, 16  ;;  %s8062_s1 = scalar_lea.vmem %s1440_s3, 32 }
 0x29b   : > { %p8057_p9 = scmp.ne.s32.totalorder %s1440_s3, %s8056_s18  ;;  %p8063_p12 = scmp.lt.s32.totalorder %s1440_s3, %s1440_s3 }
 0x29c   : > { %p8064_p13 = scmp.lt.s32.totalorder %s8062_s1, %s8056_s18 }
 0x29d   : > { %p8058_p10 = pnand %p8057_p9, %p7223_p3 }
 0x29e   : > { %p8065_p0 = por %p8064_p13, %p8063_p12 }
 0x29f   : > { %p8059_p11 = pneg %p8058_p10 }
 0x2a1   : > { %p8066_p1 = pnand %p8065_p0, %p8059_p11 }
 0x2a3   : > { %8069 = shalt.err (!%p8066_p1)
}
 0x2a4   : > { %s9944_s7 = sld [smem:[#allocation90_spill]] }
 0x2a5   : > { %7100 = dma.hbm_to_vmem [thread:$0]  (%p7223_p3), %s9943_s2, 16, %s1440_s3, [#allocation23]  }
 0x2aa   : > { %s8070_s6 = scalar_lea.hbm %s9944_s7, 384 }
 0x2ab   : > { %p8071_p4 = scmp.ne.s32.totalorder %s9944_s7, %s8070_s6  ;;  %p8076_p7 = scmp.lt.u32.totalorder %s8070_s6, %s9944_s7 }
 0x2ad   : > { %p8072_p5 = pnand %p8071_p4, %p7223_p3 }
 0x2af   : > { %p8073_p6 = pneg %p8072_p5 }
 0x2b1   : > { %p8078_p8 = pnand %p8076_p7, %p8073_p6 }
 0x2b3   : > { %8081 = shalt.err (!%p8078_p8)
}
 0x2b4   : > { %s8082_s4 = scalar_lea.vmem %s9134_s8, 384  ;;  %p8089_p12 = scmp.lt.s32.totalorder %s9134_s8, %s9134_s8 }
 0x2b5   : > { %p8083_p9 = scmp.ne.s32.totalorder %s9134_s8, %s8082_s4  ;;  %p8090_p13 = scmp.lt.s32.totalorder %s8082_s4, %s8082_s4 }
 0x2b7   : > { %p8084_p10 = pnand %p8083_p9, %p7223_p3  ;;  %p8091_p0 = por %p8090_p13, %p8089_p12 }
 0x2b9   : > { %p8085_p11 = pneg %p8084_p10 }
 0x2bb   : > { %p8092_p1 = pnand %p8091_p0, %p8085_p11 }
 0x2bd   : > { %8095 = shalt.err (!%p8092_p1)
}
 0x2be   : > { %s9945_s3 = sld [smem:[#allocation92_spill]]  ;;  %s8574_s18 = smov [#allocation30]  }
 0x2bf   : > { %7104 = dma.hbm_to_vmem [thread:$0]  (%p7223_p3), %s9944_s7, 384, %s9134_s8, [#allocation26], %s9941_s11, %s9941_s11, %s9940_s5  }
 0x2c0   : > { %s1485_s1 = sshll.u32 %s8574_s18, 4  ;;  %s8575_s6 = smov [#allocation33]   ;;  %s1486_s1 = int_to_ptr.vmem [resolvable:$true] %s1485_s1 }
 0x2c1   : > { %s1510_s2 = sshll.u32 %s8575_s6, 4  ;;  %s9164_s2 = int_to_ptr.vmem [resolvable:$true] %s1510_s2 }
 0x2c4   : > { %s8096_s4 = scalar_lea.hbm %s9945_s3, 16 }
 0x2c5   : > { %p8097_p4 = scmp.ne.s32.totalorder %s9945_s3, %s8096_s4  ;;  %p8102_p7 = scmp.lt.u32.totalorder %s8096_s4, %s9945_s3 }
 0x2c7   : > { %p8098_p5 = pnand %p8097_p4, %p7223_p3 }
 0x2c9   : > { %p8099_p6 = pneg %p8098_p5 }
 0x2cb   : > { %p8104_p8 = pnand %p8102_p7, %p8099_p6 }
 0x2cd   : > { %8107 = shalt.err (!%p8104_p8)
}
 0x2ce   : > { %s8108_s10 = scalar_lea.vmem %s1486_s1, 16  ;;  %s8114_s8 = scalar_lea.vmem %s1486_s1, 32 }
 0x2cf   : > { %p8109_p9 = scmp.ne.s32.totalorder %s1486_s1, %s8108_s10  ;;  %p8115_p12 = scmp.lt.s32.totalorder %s1486_s1, %s1486_s1 }
 0x2d0   : > { %p8116_p13 = scmp.lt.s32.totalorder %s8114_s8, %s8108_s10 }
 0x2d1   : > { %p8110_p10 = pnand %p8109_p9, %p7223_p3 }
 0x2d2   : > { %p8117_p0 = por %p8116_p13, %p8115_p12 }
 0x2d3   : > { %p8111_p11 = pneg %p8110_p10 }
 0x2d5   : > { %p8118_p1 = pnand %p8117_p0, %p8111_p11 }
 0x2d7   : > { %8121 = shalt.err (!%p8118_p1)
}
 0x2d8   : > { %s9946_s18 = sld [smem:[#allocation95_spill]] }
 0x2d9   : > { %7108 = dma.hbm_to_vmem [thread:$0]  (%p7223_p3), %s9945_s3, 16, %s1486_s1, [#allocation29]  }
 0x2de   : > { %s8122_s6 = scalar_lea.hbm %s9946_s18, 16 }
 0x2df   : > { %p8123_p4 = scmp.ne.s32.totalorder %s9946_s18, %s8122_s6  ;;  %p8128_p7 = scmp.lt.u32.totalorder %s8122_s6, %s9946_s18 }
 0x2e1   : > { %p8124_p5 = pnand %p8123_p4, %p7223_p3 }
 0x2e3   : > { %p8125_p6 = pneg %p8124_p5 }
 0x2e5   : > { %p8130_p8 = pnand %p8128_p7, %p8125_p6 }
 0x2e7   : > { %8133 = shalt.err (!%p8130_p8)
}
 0x2e8   : > { %s8134_s10 = scalar_lea.vmem %s9164_s2, 16  ;;  %s8140_s4 = scalar_lea.vmem %s9164_s2, 32 }
 0x2e9   : > { %p8135_p9 = scmp.ne.s32.totalorder %s9164_s2, %s8134_s10  ;;  %p8141_p12 = scmp.lt.s32.totalorder %s9164_s2, %s9164_s2 }
 0x2ea   : > { %p8142_p13 = scmp.lt.s32.totalorder %s8140_s4, %s8134_s10 }
 0x2eb   : > { %p8136_p10 = pnand %p8135_p9, %p7223_p3 }
 0x2ec   : > { %p8143_p0 = por %p8142_p13, %p8141_p12 }
 0x2ed   : > { %p8137_p11 = pneg %p8136_p10 }
 0x2ef   : > { %p8144_p1 = pnand %p8143_p0, %p8137_p11 }
 0x2f1   : > { %8147 = shalt.err (!%p8144_p1)
}
 0x2f2   : > { %s9947_s1 = sld [smem:[#allocation97_spill]]  ;;  %s8576_s8 = smov [#allocation36]  }
 0x2f3   : > { %7112 = dma.hbm_to_vmem [thread:$0]  (%p7223_p3), %s9946_s18, 16, %s9164_s2, [#allocation32]  }
 0x2f4   : > { %s1535_s6 = sshll.u32 %s8576_s8, 4  ;;  %s8577_s3 = smov [#allocation39]   ;;  %s1536_s6 = int_to_ptr.vmem [resolvable:$true] %s1535_s6 }
 0x2f5   : > { %s1560_s7 = sshll.u32 %s8577_s3, 4  ;;  %s9192_s7 = int_to_ptr.vmem [resolvable:$true] %s1560_s7 }
 0x2f8   : > { %s8148_s10 = scalar_lea.hbm %s9947_s1, 16 }
 0x2f9   : > { %p8149_p4 = scmp.ne.s32.totalorder %s9947_s1, %s8148_s10  ;;  %p8154_p7 = scmp.lt.u32.totalorder %s8148_s10, %s9947_s1 }
 0x2fb   : > { %p8150_p5 = pnand %p8149_p4, %p7223_p3 }
 0x2fd   : > { %p8151_p6 = pneg %p8150_p5 }
 0x2ff   : > { %p8156_p8 = pnand %p8154_p7, %p8151_p6 }
 0x301   : > { %8159 = shalt.err (!%p8156_p8)
}
 0x302   : > { %s8160_s4 = scalar_lea.vmem %s1536_s6, 16  ;;  %s8166_s2 = scalar_lea.vmem %s1536_s6, 32 }
 0x303   : > { %p8161_p9 = scmp.ne.s32.totalorder %s1536_s6, %s8160_s4  ;;  %p8167_p12 = scmp.lt.s32.totalorder %s1536_s6, %s1536_s6 }
 0x304   : > { %p8168_p13 = scmp.lt.s32.totalorder %s8166_s2, %s8160_s4 }
 0x305   : > { %p8162_p10 = pnand %p8161_p9, %p7223_p3 }
 0x306   : > { %p8169_p0 = por %p8168_p13, %p8167_p12 }
 0x307   : > { %p8163_p11 = pneg %p8162_p10 }
 0x309   : > { %p8170_p1 = pnand %p8169_p0, %p8163_p11 }
 0x30b   : > { %8173 = shalt.err (!%p8170_p1)
}
 0x30c   : > { %s9948_s3 = sld [smem:[#allocation99_spill]] }
 0x30d   : > { %7116 = dma.hbm_to_vmem [thread:$0]  (%p7223_p3), %s9947_s1, 16, %s1536_s6, [#allocation35]  }
 0x312   : > { %s8174_s8 = scalar_lea.hbm %s9948_s3, 16 }
 0x313   : > { %p8175_p4 = scmp.ne.s32.totalorder %s9948_s3, %s8174_s8  ;;  %p8180_p7 = scmp.lt.u32.totalorder %s8174_s8, %s9948_s3 }
 0x315   : > { %p8176_p5 = pnand %p8175_p4, %p7223_p3 }
 0x317   : > { %p8177_p6 = pneg %p8176_p5 }
 0x319   : > { %p8182_p8 = pnand %p8180_p7, %p8177_p6 }
 0x31b   : > { %8185 = shalt.err (!%p8182_p8)
}
 0x31c   : > { %s8186_s10 = scalar_lea.vmem %s9192_s7, 16  ;;  %s8192_s4 = scalar_lea.vmem %s9192_s7, 32 }
 0x31d   : > { %p8187_p9 = scmp.ne.s32.totalorder %s9192_s7, %s8186_s10  ;;  %p8193_p12 = scmp.lt.s32.totalorder %s9192_s7, %s9192_s7 }
 0x31e   : > { %p8194_p13 = scmp.lt.s32.totalorder %s8192_s4, %s8186_s10 }
 0x31f   : > { %p8188_p10 = pnand %p8187_p9, %p7223_p3 }
 0x320   : > { %p8195_p0 = por %p8194_p13, %p8193_p12 }
 0x321   : > { %p8189_p11 = pneg %p8188_p10 }
 0x323   : > { %p8196_p1 = pnand %p8195_p0, %p8189_p11 }
 0x325   : > { %8199 = shalt.err (!%p8196_p1)
}
 0x326   : > { %s9949_s6 = sld [smem:[#allocation104_spill]]  ;;  %s8578_s2 = smov [#allocation42]  }
 0x327   : > { %7120 = dma.hbm_to_vmem [thread:$0]  (%p7223_p3), %s9948_s3, 16, %s9192_s7, [#allocation38]  }
 0x328   : > { %s1591_s8 = sshll.u32 %s8578_s2, 4  ;;  %s8579_s1 = smov [#allocation45]   ;;  %s1592_s8 = int_to_ptr.vmem [resolvable:$true] %s1591_s8 }
 0x329   : > { %s1616_s12 = sshll.u32 %s8579_s1, 4  ;;  %s9220_s12 = int_to_ptr.vmem [resolvable:$true] %s1616_s12 }
 0x32c   : > { %s8200_s10 = scalar_lea.hbm %s9949_s6, 16 }
 0x32d   : > { %p8201_p4 = scmp.ne.s32.totalorder %s9949_s6, %s8200_s10  ;;  %p8206_p7 = scmp.lt.u32.totalorder %s8200_s10, %s9949_s6 }
 0x32f   : > { %p8202_p5 = pnand %p8201_p4, %p7223_p3 }
 0x331   : > { %p8203_p6 = pneg %p8202_p5 }
 0x333   : > { %p8208_p8 = pnand %p8206_p7, %p8203_p6 }
 0x335   : > { %8211 = shalt.err (!%p8208_p8)
}
 0x336   : > { %s8212_s4 = scalar_lea.vmem %s1592_s8, 16  ;;  %s8218_s7 = scalar_lea.vmem %s1592_s8, 32 }
 0x337   : > { %p8213_p9 = scmp.ne.s32.totalorder %s1592_s8, %s8212_s4  ;;  %p8219_p12 = scmp.lt.s32.totalorder %s1592_s8, %s1592_s8 }
 0x338   : > { %p8220_p13 = scmp.lt.s32.totalorder %s8218_s7, %s8212_s4 }
 0x339   : > { %p8214_p10 = pnand %p8213_p9, %p7223_p3 }
 0x33a   : > { %p8221_p0 = por %p8220_p13, %p8219_p12 }
 0x33b   : > { %p8215_p11 = pneg %p8214_p10 }
 0x33d   : > { %p8222_p1 = pnand %p8221_p0, %p8215_p11 }
 0x33f   : > { %8225 = shalt.err (!%p8222_p1)
}
 0x340   : > { %s9950_s1 = sld [smem:[#allocation107_spill]] }
 0x341   : > { %7124 = dma.hbm_to_vmem [thread:$0]  (%p7223_p3), %s9949_s6, 16, %s1592_s8, [#allocation41]  }
 0x346   : > { %s8226_s2 = scalar_lea.hbm %s9950_s1, 16 }
 0x347   : > { %p8227_p4 = scmp.ne.s32.totalorder %s9950_s1, %s8226_s2  ;;  %p8232_p7 = scmp.lt.u32.totalorder %s8226_s2, %s9950_s1 }
 0x349   : > { %p8228_p5 = pnand %p8227_p4, %p7223_p3 }
 0x34b   : > { %p8229_p6 = pneg %p8228_p5 }
 0x34d   : > { %p8234_p8 = pnand %p8232_p7, %p8229_p6 }
 0x34f   : > { %8237 = shalt.err (!%p8234_p8)
}
 0x350   : > { %s8238_s10 = scalar_lea.vmem %s9220_s12, 16  ;;  %s8244_s4 = scalar_lea.vmem %s9220_s12, 32 }
 0x351   : > { %p8239_p9 = scmp.ne.s32.totalorder %s9220_s12, %s8238_s10  ;;  %p8245_p12 = scmp.lt.s32.totalorder %s9220_s12, %s9220_s12 }
 0x352   : > { %p8246_p13 = scmp.lt.s32.totalorder %s8244_s4, %s8238_s10 }
 0x353   : > { %p8240_p10 = pnand %p8239_p9, %p7223_p3 }
 0x354   : > { %p8247_p0 = por %p8246_p13, %p8245_p12 }
 0x355   : > { %p8241_p11 = pneg %p8240_p10 }
 0x357   : > { %p8248_p1 = pnand %p8247_p0, %p8241_p11 }
 0x359   : > { %8251 = shalt.err (!%p8248_p1)
}
 0x35a   : > { %s9951_s8 = sld [smem:[#allocation110_spill]]  ;;  %s8580_s7 = smov [#allocation48]  }
 0x35b   : > { %7128 = dma.hbm_to_vmem [thread:$0]  (%p7223_p3), %s9950_s1, 16, %s9220_s12, [#allocation44]  }
 0x35c   : > { %s1641_s2 = sshll.u32 %s8580_s7, 4  ;;  %s8581_s3 = smov [#allocation51]   ;;  %s1642_s2 = int_to_ptr.vmem [resolvable:$true] %s1641_s2 }
 0x35d   : > { %s1673_s6 = sshll.u32 %s8581_s3, 4  ;;  %s9248_s6 = int_to_ptr.vmem [resolvable:$true] %s1673_s6 }
 0x360   : > { %s8252_s10 = scalar_lea.hbm %s9951_s8, 16 }
 0x361   : > { %p8253_p4 = scmp.ne.s32.totalorder %s9951_s8, %s8252_s10  ;;  %p8258_p7 = scmp.lt.u32.totalorder %s8252_s10, %s9951_s8 }
 0x363   : > { %p8254_p5 = pnand %p8253_p4, %p7223_p3 }
 0x365   : > { %p8255_p6 = pneg %p8254_p5 }
 0x367   : > { %p8260_p8 = pnand %p8258_p7, %p8255_p6 }
 0x369   : > { %8263 = shalt.err (!%p8260_p8)
}
 0x36a   : > { %s8264_s4 = scalar_lea.vmem %s1642_s2, 16  ;;  %s8270_s12 = scalar_lea.vmem %s1642_s2, 32 }
 0x36b   : > { %p8265_p9 = scmp.ne.s32.totalorder %s1642_s2, %s8264_s4  ;;  %p8271_p12 = scmp.lt.s32.totalorder %s1642_s2, %s1642_s2 }
 0x36c   : > { %p8272_p13 = scmp.lt.s32.totalorder %s8270_s12, %s8264_s4 }
 0x36d   : > { %p8266_p10 = pnand %p8265_p9, %p7223_p3 }
 0x36e   : > { %p8273_p0 = por %p8272_p13, %p8271_p12 }
 0x36f   : > { %p8267_p11 = pneg %p8266_p10 }
 0x371   : > { %p8274_p1 = pnand %p8273_p0, %p8267_p11 }
 0x373   : > { %8277 = shalt.err (!%p8274_p1)
}
 0x374   : > { %s9952_s3 = sld [smem:[#allocation114_spill]] }
 0x375   : > { %7132 = dma.hbm_to_vmem [thread:$0]  (%p7223_p3), %s9951_s8, 16, %s1642_s2, [#allocation47]  }
 0x37a   : > { %s8278_s7 = scalar_lea.hbm %s9952_s3, 384 }
 0x37b   : > { %p8279_p4 = scmp.ne.s32.totalorder %s9952_s3, %s8278_s7  ;;  %p8284_p7 = scmp.lt.u32.totalorder %s8278_s7, %s9952_s3 }
 0x37d   : > { %p8280_p5 = pnand %p8279_p4, %p7223_p3 }
 0x37f   : > { %p8281_p6 = pneg %p8280_p5 }
 0x381   : > { %p8286_p8 = pnand %p8284_p7, %p8281_p6 }
 0x383   : > { %8289 = shalt.err (!%p8286_p8)
}
 0x384   : > { %s8290_s10 = scalar_lea.vmem %s9248_s6, 384  ;;  %p8297_p12 = scmp.lt.s32.totalorder %s9248_s6, %s9248_s6 }
 0x385   : > { %p8291_p9 = scmp.ne.s32.totalorder %s9248_s6, %s8290_s10  ;;  %p8298_p13 = scmp.lt.s32.totalorder %s8290_s10, %s8290_s10 }
 0x387   : > { %p8292_p10 = pnand %p8291_p9, %p7223_p3  ;;  %p8299_p0 = por %p8298_p13, %p8297_p12 }
 0x389   : > { %p8293_p11 = pneg %p8292_p10 }
 0x38b   : > { %p8300_p1 = pnand %p8299_p0, %p8293_p11 }
 0x38d   : > { %8303 = shalt.err (!%p8300_p1)
}
 0x38e   : > { %s9953_s2 = sld [smem:[#allocation116_spill]]  ;;  %s8582_s4 = smov [#allocation54]  }
 0x38f   : > { %7136 = dma.hbm_to_vmem [thread:$0]  (%p7223_p3), %s9952_s3, 384, %s9248_s6, [#allocation50], %s9941_s11, %s9941_s11, %s9940_s5  }
 0x390   : > { %s1698_s12 = sshll.u32 %s8582_s4, 4  ;;  %s8583_s7 = smov [#allocation57]   ;;  %s1699_s12 = int_to_ptr.vmem [resolvable:$true] %s1698_s12 }
 0x391   : > { %s1729_s1 = sshll.u32 %s8583_s7, 4  ;;  %s9278_s1 = int_to_ptr.vmem [resolvable:$true] %s1729_s1 }
 0x394   : > { %s8304_s10 = scalar_lea.hbm %s9953_s2, 16 }
 0x395   : > { %p8305_p4 = scmp.ne.s32.totalorder %s9953_s2, %s8304_s10  ;;  %p8310_p7 = scmp.lt.u32.totalorder %s8304_s10, %s9953_s2 }
 0x397   : > { %p8306_p5 = pnand %p8305_p4, %p7223_p3 }
 0x399   : > { %p8307_p6 = pneg %p8306_p5 }
 0x39b   : > { %p8312_p8 = pnand %p8310_p7, %p8307_p6 }
 0x39d   : > { %8315 = shalt.err (!%p8312_p8)
}
 0x39e   : > { %s8316_s8 = scalar_lea.vmem %s1699_s12, 16  ;;  %s8322_s5 = scalar_lea.vmem %s1699_s12, 32 }
 0x39f   : > { %p8317_p9 = scmp.ne.s32.totalorder %s1699_s12, %s8316_s8  ;;  %p8323_p12 = scmp.lt.s32.totalorder %s1699_s12, %s1699_s12 }
 0x3a0   : > { %p8324_p13 = scmp.lt.s32.totalorder %s8322_s5, %s8316_s8 }
 0x3a1   : > { %p8318_p10 = pnand %p8317_p9, %p7223_p3 }
 0x3a2   : > { %p8325_p0 = por %p8324_p13, %p8323_p12 }
 0x3a3   : > { %p8319_p11 = pneg %p8318_p10 }
 0x3a5   : > { %p8326_p1 = pnand %p8325_p0, %p8319_p11 }
 0x3a7   : > { %8329 = shalt.err (!%p8326_p1)
}
 0x3a8   : > { %s9954_s11 = sld [smem:[#allocation121_spill]] }
 0x3a9   : > { %7140 = dma.hbm_to_vmem [thread:$0]  (%p7223_p3), %s9953_s2, 16, %s1699_s12, [#allocation53]  }
 0x3ae   : > { %s8330_s6 = scalar_lea.hbm %s9954_s11, 16 }
 0x3af   : > { %p8331_p4 = scmp.ne.s32.totalorder %s9954_s11, %s8330_s6  ;;  %p8336_p7 = scmp.lt.u32.totalorder %s8330_s6, %s9954_s11 }
 0x3b1   : > { %p8332_p5 = pnand %p8331_p4, %p7223_p3 }
 0x3b3   : > { %p8333_p6 = pneg %p8332_p5 }
 0x3b5   : > { %p8338_p8 = pnand %p8336_p7, %p8333_p6 }
 0x3b7   : > { %8341 = shalt.err (!%p8338_p8)
}
 0x3b8   : > { %s8342_s8 = scalar_lea.vmem %s9278_s1, 16  ;;  %s8348_s4 = scalar_lea.vmem %s9278_s1, 32 }
 0x3b9   : > { %p8343_p9 = scmp.ne.s32.totalorder %s9278_s1, %s8342_s8  ;;  %p8349_p12 = scmp.lt.s32.totalorder %s9278_s1, %s9278_s1 }
 0x3ba   : > { %p8350_p13 = scmp.lt.s32.totalorder %s8348_s4, %s8342_s8 }
 0x3bb   : > { %p8344_p10 = pnand %p8343_p9, %p7223_p3 }
 0x3bc   : > { %p8351_p0 = por %p8350_p13, %p8349_p12 }
 0x3bd   : > { %p8345_p11 = pneg %p8344_p10 }
 0x3bf   : > { %p8352_p1 = pnand %p8351_p0, %p8345_p11 }
 0x3c1   : > { %8355 = shalt.err (!%p8352_p1)
}
 0x3c2   : > { %s9955_s12 = sld [smem:[#allocation124_spill]]  ;;  %s8584_s7 = smov [#allocation60]  }
 0x3c3   : > { %7144 = dma.hbm_to_vmem [thread:$0]  (%p7223_p3), %s9954_s11, 16, %s9278_s1, [#allocation56]  }
 0x3c4   : > { %s1754_s10 = sshll.u32 %s8584_s7, 4  ;;  %s8585_s5 = smov [#allocation61]   ;;  %s1755_s10 = int_to_ptr.vmem [resolvable:$true] %s1754_s10 }
 0x3c5   : > { %s1768_s6 = sshll.u32 %s8585_s5, 4  ;;  %s9306_s6 = int_to_ptr.vmem [resolvable:$true] %s1768_s6 }
 0x3c8   : > { %s8356_s8 = scalar_lea.hbm %s9955_s12, 16 }
 0x3c9   : > { %p8357_p4 = scmp.ne.s32.totalorder %s9955_s12, %s8356_s8  ;;  %p8362_p7 = scmp.lt.u32.totalorder %s8356_s8, %s9955_s12 }
 0x3cb   : > { %p8358_p5 = pnand %p8357_p4, %p7223_p3 }
 0x3cd   : > { %p8359_p6 = pneg %p8358_p5 }
 0x3cf   : > { %p8364_p8 = pnand %p8362_p7, %p8359_p6 }
 0x3d1   : > { %8367 = shalt.err (!%p8364_p8)
}
 0x3d2   : > { %s8368_s4 = scalar_lea.vmem %s1755_s10, 16  ;;  %s8374_s1 = scalar_lea.vmem %s1755_s10, 32 }
 0x3d3   : > { %p8369_p9 = scmp.ne.s32.totalorder %s1755_s10, %s8368_s4  ;;  %p8375_p12 = scmp.lt.s32.totalorder %s1755_s10, %s1755_s10 }
 0x3d4   : > { %p8376_p13 = scmp.lt.s32.totalorder %s8374_s1, %s8368_s4 }
 0x3d5   : > { %p8370_p10 = pnand %p8369_p9, %p7223_p3 }
 0x3d6   : > { %p8377_p0 = por %p8376_p13, %p8375_p12 }
 0x3d7   : > { %p8371_p11 = pneg %p8370_p10 }
 0x3d9   : > { %p8378_p1 = pnand %p8377_p0, %p8371_p11 }
 0x3db   : > { %8381 = shalt.err (!%p8378_p1)
}
 0x3dc   : > { %7148 = dma.hbm_to_vmem [thread:$0]  (%p7223_p3), %s9955_s12, 16, %s1755_s10, [#allocation59]  }
 0x3dd   : > { %s8382_s7 = scalar_lea.hbm %s8857_s9, 32 }
 0x3de   : > { %p8383_p4 = scmp.ne.s32.totalorder %s8857_s9, %s8382_s7  ;;  %p8388_p7 = scmp.lt.u32.totalorder %s8382_s7, %s8857_s9 }
 0x3e0   : > { %p8384_p5 = pnand %p8383_p4, %p7223_p3 }
 0x3e2   : > { %p8385_p6 = pneg %p8384_p5 }
 0x3e4   : > { %p8390_p8 = pnand %p8388_p7, %p8385_p6 }
 0x3e6   : > { %8393 = shalt.err (!%p8390_p8)
}
 0x3e7   : > { %s8394_s5 = scalar_lea.vmem %s9306_s6, 32  ;;  %p8401_p12 = scmp.lt.s32.totalorder %s9306_s6, %s9306_s6 }
 0x3e8   : > { %p8395_p9 = scmp.ne.s32.totalorder %s9306_s6, %s8394_s5  ;;  %p8402_p13 = scmp.lt.s32.totalorder %s8394_s5, %s8394_s5 }
 0x3ea   : > { %p8396_p10 = pnand %p8395_p9, %p7223_p3  ;;  %p8403_p0 = por %p8402_p13, %p8401_p12 }
 0x3ec   : > { %p8397_p11 = pneg %p8396_p10 }
 0x3ee   : > { %p8404_p1 = pnand %p8403_p0, %p8397_p11 }
 0x3f0   : > { %8407 = shalt.err (!%p8404_p1)
}
 0x3f1   : > { %7150 = dma.hbm_to_vmem [thread:$0]  (%p7223_p3), %s8857_s9, 32, %s9306_s6, [#allocation62]  }
 0x3f2 PF: > { %1792 = sbr.rel (%p8879_p2) target bundleno = 5270 (0x1496), region = 236  ;;  %p7259_p4 = scmp.eq.s32.totalorder (!%p8879_p2), %s8875_s15, 0 }
 0x3f9   : > { %8413 = dma.done.wait (%p7259_p4), [#allocation9], 96  }
 0x3fa   : > { %8415 = vsyncadd (%p7259_p4), [#allocation9], 4294967200 }
 0x3fb   : > { %8417 = dma.done.wait (%p7259_p4), [#allocation11], 32  }
 0x3fc   : > { %8419 = vsyncadd (%p7259_p4), [#allocation11], 4294967264 }
 0x3fd   : > { %8421 = dma.done.wait (%p7259_p4), [#allocation14], 208  }
 0x3fe   : > { %8423 = vsyncadd (%p7259_p4), [#allocation14], 4294967088 }
 0x3ff   : > { %8425 = dma.done.wait (%p7259_p4), [#allocation17], 208  }
 0x400   : > { %8427 = vsyncadd (%p7259_p4), [#allocation17], 4294967088 }
 0x401   : > { %8429 = dma.done.wait (%p7259_p4), [#allocation20], 32  }
 0x402   : > { %8431 = vsyncadd (%p7259_p4), [#allocation20], 4294967264 }
 0x403   : > { %8433 = dma.done.wait (%p7259_p4), [#allocation23], 400  }
 0x404   : > { %8435 = vsyncadd (%p7259_p4), [#allocation23], 4294966896 }
 0x405   : > { %8437 = dma.done.wait (%p7259_p4), [#allocation26], 400  }
 0x406   : > { %8439 = vsyncadd (%p7259_p4), [#allocation26], 4294966896 }
 0x407   : > { %8441 = dma.done.wait (%p7259_p4), [#allocation29], 32  }
 0x408   : > { %8443 = vsyncadd (%p7259_p4), [#allocation29], 4294967264 }
 0x409   : > { %8445 = dma.done.wait (%p7259_p4), [#allocation32], 32  }
 0x40a   : > { %8447 = vsyncadd (%p7259_p4), [#allocation32], 4294967264 }
 0x40b   : > { %8449 = dma.done.wait (%p7259_p4), [#allocation35], 32  }
 0x40c   : > { %8451 = vsyncadd (%p7259_p4), [#allocation35], 4294967264 }
 0x40d   : > { %8453 = dma.done.wait (%p7259_p4), [#allocation38], 32  }
 0x40e   : > { %8455 = vsyncadd (%p7259_p4), [#allocation38], 4294967264 }
 0x40f   : > { %8457 = dma.done.wait (%p7259_p4), [#allocation41], 32  }
 0x410   : > { %8459 = vsyncadd (%p7259_p4), [#allocation41], 4294967264 }
 0x411   : > { %8461 = dma.done.wait (%p7259_p4), [#allocation44], 32  }
 0x412   : > { %8463 = vsyncadd (%p7259_p4), [#allocation44], 4294967264 }
 0x413   : > { %8465 = dma.done.wait (%p7259_p4), [#allocation47], 32  }
 0x414   : > { %8467 = vsyncadd (%p7259_p4), [#allocation47], 4294967264 }
 0x415   : > { %8469 = dma.done.wait (%p7259_p4), [#allocation50], 768  }
 0x416   : > { %8471 = vsyncadd (%p7259_p4), [#allocation50], 4294966528 }
 0x417   : > { %8473 = dma.done.wait (%p7259_p4), [#allocation53], 32  }
 0x418   : > { %8475 = vsyncadd (%p7259_p4), [#allocation53], 4294967264 }
 0x419   : > { %8477 = dma.done.wait (%p7259_p4), [#allocation56], 32  }
 0x41a   : > { %8479 = vsyncadd (%p7259_p4), [#allocation56], 4294967264 }
 0x41b   : > { %8481 = dma.done.wait (%p7259_p4), [#allocation59], 32  }
 0x41c   : > { %8483 = vsyncadd (%p7259_p4), [#allocation59], 4294967264 }
 0x41d   : > { %8485 = dma.done.wait (%p7259_p4), [#allocation62], 32  }
 0x41e   : > { %8487 = vsyncadd (%p7259_p4), [#allocation62], 4294967264  ;;  %s9956_s16 = sld [smem:[#allocation82_spill]]  ;;  %p2057_p2 = scmp.lt.s32.totalorder %s8875_s15, 1  ;;  %v8586_v0 = vmov 0.0   ;;  %vm8587_vm0 = vmmov 0  }
 0x41f   : > { %6639 = vmatprep.subr.bf16.mxu0 %v8586_v0  ;;  %6641 = vmatprep.mubr.msk.bf16.mxu0 %vm8587_vm0, %v8586_v0  ;;  %vm2075_vm1 = vcmask 1041408   ;;  %v2070_v1 = vld [vmem:[#allocation8] sm:$0x3]  ;;  %vm2071_vm2 = vcmask 31744   ;;  %v2121_v6 = vld [vmem:[#allocation8 + $0x2] sm:$0x3] }
 0x420   : > { %6645 = vmatprep.subr.bf16.mxu1 %v8586_v0  ;;  %s9973_s15 = smov (!%p2057_p2, %s8875_s15), 1  ;;  %6647 = vmatprep.mubr.msk.bf16.mxu1 %vm8587_vm0, %v8586_v0  ;;  %v2077_v4 = vsel %vm2075_vm1, %v2070_v1, 0  ;;  %v2167_v7 = vld [vmem:[#allocation8 + $0x4] sm:$0x3]  ;;  %v2123_v8 = vsel %vm2075_vm1, %v2121_v6, 0  ;;  %vm2260_vm3 = vcmask 1043456  }
 0x421   : > { %s6490_s10 = sshll.u32 %s9973_s15, 4  ;;  %6640 = vmatpush3.bf16.msra.mxu0 %v2077_v4  ;;  %v2169_v9 = vsel %vm2075_vm1, %v2167_v7, 0  ;;  %6646 = vmatpush3.bf16.msra.mxu1 %v2123_v8  ;;  %v2255_v10 = vld [vmem:[#allocation13] sm:$0xf]  ;;  %v2306_v11 = vld [vmem:[#allocation13 + $0x4] sm:$0xf] }
 0x422   : > { %6651 = vmatprep.subr.bf16.mxu0 %v8586_v0  ;;  %6657 = vmatprep.subr.bf16.mxu1 %v8586_v0  ;;  %v2262_v12 = vsel %vm2260_vm3, %v2255_v10, 0  ;;  %v2308_v13 = vsel %vm2260_vm3, %v2306_v11, 0  ;;  %vm2214_vm4 = vcmask 1040384   ;;  %vm2223_vm5 = vcmask 1046528   ;;  %v6251_v36 = vld [vmem:[#allocation10] ss:$0 sm:$0xff] }
 0x423   : > { %v6252_v39 = vld [vmem:[#allocation12] ss:$0 sm:$0xff]  ;;  %v2352_v44 = vld [vmem:[#allocation13 + $0x8] sm:$0xf]  ;;  %vm2256_vm6 = vcmask 64512   ;;  %vm2617_vm7 = vcmask 130048  }
 0x424   : > { %s2061_s6 = scalar_lea.vmem %s9956_s16, %s6490_s10  ;;  %v2354_v48 = vsel %vm2260_vm3, %v2352_v44, 0  ;;  %v2444_v49 = vld [vmem:[#allocation18] sm:$0xf]  ;;  %v2492_v50 = vld [vmem:[#allocation18 + $0x4] sm:$0xf]  ;;  %s9957_s8 = sld [smem:[#allocation93_spill]] }
 0x425   : > { %v2067_v2 = vld [vmem:[%s2061_s6] sm:$0xff]  ;;  %v2068_v3 = vld [vmem:[%s2061_s6 + $0x8] sm:$0xff]  ;;  %v2449_v51 = vsel %vm2260_vm3, %v2444_v49, 0  ;;  %v2494_v52 = vsel %vm2260_vm3, %v2492_v50, 0  ;;  %vm2948_vm8 = vcmask 1042432   ;;  %s9958_s4 = sld [smem:[#allocation96_spill]] }
 0x426   : > { %v2069_v5 = vpack.c.bf16 %v2068_v3, %v2067_v2  ;;  %v6262_v49 = vld [vmem:[#allocation21] ss:$0 sm:$0xff]  ;;  %vm2986_vm9 = vcmask 261120   ;;  %vm3171_vm10 = vcmask 257024   ;;  %s9959_s1 = sld [smem:[#allocation98_spill]]  ;;  %vm3411_vm11 = vcmask 523264  }
 0x427   : > { %s9960_s7 = sld [smem:[#allocation100_spill]]  ;;  %s9961_s5 = sld [smem:[#allocation102_spill]]  ;;  %vm5714_vm12 = vcmask 124928  }
 0x428   : > { %6642 = vmatmul.mubr.msk.bf16.vlgmr.msra.gmra.mrb[0].mxu0 %vm2071_vm2, %v2069_v5  ;;  %6648 = vmatmul.mubr.msk.bf16.vlgmr.msra.gmra.mrb[0].mxu1 %vm2071_vm2, %v2069_v5  ;;  %s9962_s16 = sld [smem:[#allocation103_spill]]  ;;  %s9963_s10 = sld [smem:[#allocation106_spill]] }
 0x429   : > { %6652 = vmatpush3.bf16.msra.mxu0 %v2169_v9  ;;  %6653 = vmatprep.mubr.msk.bf16.mxu0 %vm8587_vm0, %v8586_v0  ;;  %s9964_s6 = sld [smem:[#allocation109_spill]]  ;;  %s9967_s2 = sld [smem:[#allocation113_spill]] }
 0x42a   : > { %6663 = vmatprep.subr.bf16.mxu0 %v8586_v0  ;;  %6659 = vmatprep.mubr.msk.bf16.mxu1 %vm8587_vm0, %v8586_v0  ;;  %s9968_s3 = sld [smem:[#allocation117_spill]] }
 0x42b   : > { %6658 = vmatpush3.bf16.msra.mxu1 %v2262_v12  ;;  %v6256_v12 = vld [vmem:[#allocation15] ss:$0 sm:$0xff] }
 0x42c   : > { %6669 = vmatprep.subr.bf16.mxu1 %v8586_v0 }
 0x430   : > { %6654 = vmatmul.mubr.msk.bf16.vlgmr.msra.gmra.mrb[4].mxu0 %vm2071_vm2, %v2069_v5 }
 0x431   : > { %6665 = vmatprep.mubr.msk.bf16.mxu0 %vm8587_vm0, %v8586_v0  ;;  %6664 = vmatpush3.bf16.msra.mxu0 %v2308_v13 }
 0x432   : > { %6675 = vmatprep.subr.bf16.mxu0 %v8586_v0 }
 0x4fb   : > { %v2113_v14 = vpop.f32.mrb[0].mxu0  ;;  %v2159_v17 = vpop.f32.mrb[0].mxu1 }
 0x4fc   : > { %v2215_v15 = vrot.slane %v2113_v14, 7  ;;  %v6643_v16 = vpop.f32.mrb[1].mxu0  ;;  %v6649_v19 = vpop.f32.mrb[1].mxu1 }
 0x4fd   : > { %v2116_v18 = vpop.f32.mrb[2].mxu0  ;;  %v2162_v23 = vpop.f32.mrb[2].mxu1 }
 0x4fe   : > { %v2216_v20 = vrot.slane %v2116_v18, 7  ;;  %v6644_v21 = vpop.f32.mrb[3].mxu0  ;;  %v2220_v22 = vsel %vm2214_vm4, 0.0, %v2215_v15  ;;  %v6650_v25 = vpop.f32.mrb[3].mxu1 }
 0x4ff   : > { %v2230_v24 = vadd.f32 %v2220_v22, %v2159_v17 }
 0x500   : > { %v2217_v26 = vsel %vm2214_vm4, %v2215_v15, %v2216_v20  ;;  %v6257_v15 = vld [vmem:[#allocation16] ss:$0 sm:$0xff] }
 0x501   : > { %v2231_v27 = vadd.f32 %v2217_v26, %v2162_v23 }
 0x503   : > { %v2205_v28 = vpop.f32.mrb[4].mxu0 }
 0x504   : > { %v6655_v29 = vpop.f32.mrb[5].mxu0  ;;  %v2224_v31 = vrot.slane %v2205_v28, 1  ;;  %v7401_v28 = vld [vmem:[#allocation22] sm:$0xff]  }
 0x505   : > { %v2208_v30 = vpop.f32.mrb[6].mxu0  ;;  %v7402_v29 = vld [vmem:[#allocation22 + $0x8] sm:$0xff]  }
 0x506   : > { %v2225_v32 = vrot.slane %v2208_v30, 1  ;;  %v6656_v33 = vpop.f32.mrb[7].mxu0 }
 0x508   : > { %v2226_v34 = vsel %vm2223_vm5, %v2224_v31, %v2225_v32  ;;  %v2229_v35 = vsel %vm2223_vm5, %v2225_v32, 0.0 }
 0x509   : > { %v2232_v37 = vadd.f32 %v2230_v24, %v2226_v34  ;;  %v2233_v38 = vadd.f32 %v2231_v27, %v2229_v35  ;;  %v2537_v24 = vld [vmem:[#allocation18 + $0x8] sm:$0xf] }
 0x50a   : > { %v2539_v27 = vsel %vm2260_vm3, %v2537_v24, 0  ;;  %v7409_v24 = vld [vmem:[%s9957_s8 + $0x8] sm:$0xff]  }
 0x50b   : > { %v2241_v40 = vmul.f32 %v6251_v36, %v2232_v37  ;;  %v2242_v41 = vmul.f32 %v6251_v36, %v2233_v38 }
 0x50d   : > { %v2250_v42 = vadd.f32 %v6252_v39, %v2241_v40  ;;  %v2251_v43 = vadd.f32 %v6252_v39, %v2242_v41 }
 0x50f   : > { %v2252_v45 = vmax.f32 %v2250_v42, 0.0  ;;  %v2253_v46 = vmax.f32 %v2251_v43, 0.0 }
 0x511   : > { %v2254_v47 = vpack.c.bf16 %v2253_v46, %v2252_v45  ;;  %v6261_v46 = vld [vmem:[#allocation19] ss:$0 sm:$0xff] }
 0x513   : > { %6660 = vmatmul.mubr.msk.bf16.vlgmr.msra.gmra.mrb[4].mxu1 %vm2256_vm6, %v2254_v47  ;;  %6666 = vmatmul.mubr.msk.bf16.vlgmr.msra.gmra.mrb[8].mxu0 %vm2256_vm6, %v2254_v47 }
 0x514   : > { %6670 = vmatpush3.bf16.msra.mxu1 %v2354_v48  ;;  %6671 = vmatprep.mubr.msk.bf16.mxu1 %vm8587_vm0, %v8586_v0 }
 0x515   : > { %6681 = vmatprep.subr.bf16.mxu1 %v8586_v0  ;;  %6677 = vmatprep.mubr.msk.bf16.mxu0 %vm8587_vm0, %v8586_v0 }
 0x516   : > { %6676 = vmatpush3.bf16.msra.mxu0 %v2449_v51 }
 0x517   : > { %6687 = vmatprep.subr.bf16.mxu0 %v8586_v0 }
 0x51b   : > { %6672 = vmatmul.mubr.msk.bf16.vlgmr.msra.gmra.mrb[8].mxu1 %vm2256_vm6, %v2254_v47 }
 0x51c   : > { %6683 = vmatprep.mubr.msk.bf16.mxu1 %vm8587_vm0, %v8586_v0  ;;  %6682 = vmatpush3.bf16.msra.mxu1 %v2494_v52 }
 0x51d   : > { %6693 = vmatprep.subr.bf16.mxu1 %v8586_v0 }
 0x5e6   : > { %v2298_v53 = vpop.f32.mrb[4].mxu1  ;;  %v2344_v54 = vpop.f32.mrb[8].mxu0 }
 0x5e7   : > { %v2399_v55 = vrot.slane %v2298_v53, 7  ;;  %v6661_v56 = vpop.f32.mrb[5].mxu1  ;;  %v6667_v57 = vpop.f32.mrb[9].mxu0  ;;  %v7403_v53 = vld [vmem:[#allocation22 + $0x10] sm:$0xff]  }
 0x5e8   : > { %v2301_v58 = vpop.f32.mrb[6].mxu1  ;;  %v2347_v59 = vpop.f32.mrb[10].mxu0  ;;  %v7405_v56 = vld [vmem:[#allocation27 + $0x8] sm:$0xff]  }
 0x5e9   : > { %v2404_v60 = vsel %vm2214_vm4, 0.0, %v2399_v55  ;;  %v2400_v61 = vrot.slane %v2301_v58, 7  ;;  %v6662_v62 = vpop.f32.mrb[7].mxu1  ;;  %v6668_v63 = vpop.f32.mrb[11].mxu0 }
 0x5ea   : > { %v2413_v1 = vadd.f32 %v2404_v60, %v2344_v54 }
 0x5eb   : > { %v2401_v2 = vsel %vm2214_vm4, %v2399_v55, %v2400_v61  ;;  %v7404_v55 = vld [vmem:[#allocation27] sm:$0xff]  }
 0x5ec   : > { %v2414_v3 = vadd.f32 %v2401_v2, %v2347_v59 }
 0x5ee   : > { %v2390_v4 = vpop.f32.mrb[8].mxu1 }
 0x5ef   : > { %v6673_v5 = vpop.f32.mrb[9].mxu1  ;;  %v2407_v7 = vrot.slane %v2390_v4, 1 }
 0x5f0   : > { %v2393_v6 = vpop.f32.mrb[10].mxu1 }
 0x5f1   : > { %v2408_v8 = vrot.slane %v2393_v6, 1  ;;  %v6674_v9 = vpop.f32.mrb[11].mxu1 }
 0x5f3   : > { %v2409_v10 = vsel %vm2223_vm5, %v2407_v7, %v2408_v8  ;;  %v2412_v11 = vsel %vm2223_vm5, %v2408_v8, 0.0 }
 0x5f4   : > { %v2415_v13 = vadd.f32 %v2413_v1, %v2409_v10  ;;  %v2416_v14 = vadd.f32 %v2414_v3, %v2412_v11  ;;  %v6269_v10 = vld [vmem:[#allocation24] ss:$0 sm:$0xff] }
 0x5f6   : > { %v2424_v16 = vmul.f32 %v6256_v12, %v2415_v13  ;;  %v2425_v17 = vmul.f32 %v6256_v12, %v2416_v14  ;;  %v6270_v13 = vld [vmem:[#allocation25] ss:$0 sm:$0xff] }
 0x5f8   : > { %v2433_v18 = vadd.f32 %v6257_v15, %v2424_v16  ;;  %v2434_v19 = vadd.f32 %v6257_v15, %v2425_v17 }
 0x5fa   : > { %v2435_v20 = vmax.f32 %v2433_v18, 0.0  ;;  %v2436_v21 = vmax.f32 %v2434_v19, 0.0 }
 0x5fc   : > { %2437 = vst.msk [vmem:[#allocation2] sm:$0xff] %vm2256_vm6, %v2435_v20  ;;  %2438 = vst.msk [vmem:[#allocation2 + $0x8] sm:$0xff] %vm2256_vm6, %v2436_v21  ;;  %v7406_v20 = vld [vmem:[#allocation27 + $0x10] sm:$0xff]  }
 0x603   : > { %v2439_v22 = vld [vmem:[#allocation2] ss:$2 sm:$0xff]  ;;  %v2441_v23 = vld [vmem:[#allocation2 + $0x1] ss:$2 sm:$0xff] }
 0x604   : > { %v2442_v25 = vmax.f32 %v2439_v22, %v2441_v23  ;;  %v7407_v22 = vld [vmem:[%s9957_s8] sm:$0xff]   ;;  %v7408_v23 = vld [vmem:[%s9957_s8 + $0x10] sm:$0xff]  }
 0x606   : > { %v2443_v26 = vpack.c.bf16 %v2442_v25, %v2442_v25  ;;  %v7410_v25 = vld [vmem:[%s9957_s8 + $0x18] sm:$0xff]  }
 0x608   : > { %6678 = vmatmul.mubr.msk.bf16.vlgmr.msra.gmra.mrb[12].mxu0 %vm2256_vm6, %v2443_v26  ;;  %6684 = vmatmul.mubr.msk.bf16.vlgmr.msra.gmra.mrb[12].mxu1 %vm2256_vm6, %v2443_v26 }
 0x609   : > { %6688 = vmatpush3.bf16.msra.mxu0 %v2539_v27  ;;  %6689 = vmatprep.mubr.msk.bf16.mxu0 %vm8587_vm0, %v8586_v0 }
 0x60a   : > { %6699 = vmatprep.subr.bf16.mxu0 %v8586_v0  ;;  %6695 = vmatprep.mubr.msk.bf16.mxu1 %vm8587_vm0, %v8586_v0 }
 0x60b   : > { %6694 = vmatpush3.bf16.msra.mxu1 %v7401_v28 }
 0x60c   : > { %6705 = vmatprep.subr.bf16.mxu1 %v8586_v0 }
 0x610   : > { %6690 = vmatmul.mubr.msk.bf16.vlgmr.msra.gmra.mrb[16].mxu0 %vm2256_vm6, %v2443_v26 }
 0x611   : > { %6701 = vmatprep.mubr.msk.bf16.mxu0 %vm8587_vm0, %v8586_v0  ;;  %6700 = vmatpush3.bf16.msra.mxu0 %v7402_v29 }
 0x612   : > { %6711 = vmatprep.subr.bf16.mxu0 %v8586_v0 }
 0x6db   : > { %v2485_v30 = vpop.f32.mrb[12].mxu0  ;;  %v2530_v31 = vpop.f32.mrb[12].mxu1 }
 0x6dc   : > { %v2582_v32 = vrot.slane %v2485_v30, 7  ;;  %v6679_v33 = vpop.f32.mrb[13].mxu0  ;;  %v6685_v34 = vpop.f32.mrb[13].mxu1 }
 0x6dd   : > { %v2488_v35 = vpop.f32.mrb[14].mxu0  ;;  %v2533_v36 = vpop.f32.mrb[14].mxu1 }
 0x6de   : > { %v2584_v37 = vsel %vm2214_vm4, 0.0, %v2582_v32  ;;  %v6680_v38 = vpop.f32.mrb[15].mxu0  ;;  %v6686_v39 = vpop.f32.mrb[15].mxu1 }
 0x6df   : > { %v2589_v40 = vadd.f32 %v2584_v37, %v2530_v31 }
 0x6e3   : > { %v2575_v41 = vpop.f32.mrb[16].mxu0 }
 0x6e4   : > { %v2586_v42 = vrot.slane %v2575_v41, 1  ;;  %v6691_v43 = vpop.f32.mrb[17].mxu0 }
 0x6e5   : > { %v2578_v44 = vpop.f32.mrb[18].mxu0 }
 0x6e6   : > { %v2588_v45 = vsel %vm2223_vm5, %v2586_v42, 0.0  ;;  %v6692_v47 = vpop.f32.mrb[19].mxu0  ;;  %v6277_v42 = vld [vmem:[#allocation28] ss:$0 sm:$0xff] }
 0x6e7   : > { %v2590_v48 = vadd.f32 %v2589_v40, %v2588_v45  ;;  %v6278_v45 = vld [vmem:[#allocation30] ss:$0 sm:$0xff] }
 0x6e9   : > { %v2598_v50 = vmul.f32 %v6261_v46, %v2590_v48 }
 0x6eb   : > { %v2606_v51 = vadd.f32 %v6262_v49, %v2598_v50  ;;  %v7411_v49 = vld [vmem:[%s9957_s8 + $0x20] sm:$0xff]  }
 0x6ed   : > { %v2607_v52 = vmax.f32 %v2606_v51, 0.0  ;;  %v7412_v51 = vld [vmem:[%s9957_s8 + $0x28] sm:$0xff]  }
 0x6ef   : > { %v2608_v54 = vpack.c.bf16 %v2607_v52, %v2607_v52  ;;  %v7413_v52 = vld [vmem:[%s9958_s4] sm:$0xff]  }
 0x6f1   : > { %6696 = vmatmul.mubr.msk.bf16.vlgmr.msra.gmra.mrb[16].mxu1 %vm2617_vm7, %v2608_v54  ;;  %6702 = vmatmul.mubr.msk.bf16.vlgmr.msra.gmra.mrb[20].mxu0 %vm2617_vm7, %v2608_v54 }
 0x6f2   : > { %6706 = vmatpush3.bf16.msra.mxu1 %v7403_v53  ;;  %6707 = vmatprep.mubr.msk.bf16.mxu1 %vm8587_vm0, %v8586_v0  ;;  %v7414_v53 = vld [vmem:[%s9958_s4 + $0x10] sm:$0xff]  }
 0x6f3   : > { %6717 = vmatprep.subr.bf16.mxu1 %v8586_v0  ;;  %6713 = vmatprep.mubr.msk.bf16.mxu0 %vm8587_vm0, %v8586_v0 }
 0x6f4   : > { %6712 = vmatpush3.bf16.msra.mxu0 %v7404_v55  ;;  %v7416_v55 = vld [vmem:[%s9958_s4 + $0x18] sm:$0xff]  }
 0x6f5   : > { %6723 = vmatprep.subr.bf16.mxu0 %v8586_v0 }
 0x6f9   : > { %6708 = vmatmul.mubr.msk.bf16.vlgmr.msra.gmra.mrb[20].mxu1 %vm2617_vm7, %v2608_v54  ;;  %v7415_v54 = vld [vmem:[%s9958_s4 + $0x8] sm:$0xff]  }
 0x6fa   : > { %6719 = vmatprep.mubr.msk.bf16.mxu1 %vm8587_vm0, %v8586_v0  ;;  %6718 = vmatpush3.bf16.msra.mxu1 %v7405_v56 }
 0x6fb   : > { %6729 = vmatprep.subr.bf16.mxu1 %v8586_v0 }
 0x7c4   : > { %v2655_v57 = vpop.f32.mrb[16].mxu1  ;;  %v2704_v58 = vpop.f32.mrb[20].mxu0 }
 0x7c5   : > { %v2760_v59 = vrot.slane %v2655_v57, 7  ;;  %v6697_v60 = vpop.f32.mrb[17].mxu1  ;;  %v6703_v61 = vpop.f32.mrb[21].mxu0 }
 0x7c6   : > { %v2658_v62 = vpop.f32.mrb[18].mxu1  ;;  %v2707_v63 = vpop.f32.mrb[22].mxu0 }
 0x7c7   : > { %v2762_v1 = vsel %vm2214_vm4, 0.0, %v2760_v59  ;;  %v6698_v2 = vpop.f32.mrb[19].mxu1  ;;  %v6704_v3 = vpop.f32.mrb[23].mxu0 }
 0x7c8   : > { %v2767_v4 = vadd.f32 %v2762_v1, %v2704_v58 }
 0x7cc   : > { %v2753_v5 = vpop.f32.mrb[20].mxu1 }
 0x7cd   : > { %v2764_v6 = vrot.slane %v2753_v5, 1  ;;  %v6709_v7 = vpop.f32.mrb[21].mxu1 }
 0x7ce   : > { %v2756_v8 = vpop.f32.mrb[22].mxu1 }
 0x7cf   : > { %v2766_v9 = vsel %vm2223_vm5, %v2764_v6, 0.0  ;;  %v6710_v11 = vpop.f32.mrb[23].mxu1 }
 0x7d0   : > { %v2768_v12 = vadd.f32 %v2767_v4, %v2766_v9  ;;  %v6296_v9 = vld [vmem:[#allocation31] ss:$0 sm:$0xff] }
 0x7d2   : > { %v2776_v14 = vmul.f32 %v6269_v10, %v2768_v12  ;;  %v6297_v12 = vld [vmem:[#allocation33] ss:$0 sm:$0xff] }
 0x7d4   : > { %v2784_v15 = vadd.f32 %v6270_v13, %v2776_v14 }
 0x7d6   : > { %v2785_v16 = vmax.f32 %v2784_v15, 0.0 }
 0x7d8   : > { %2786 = vst.msk [vmem:[#allocation3] sm:$0xff] %vm2617_vm7, %v2785_v16 }
 0x7df   : > { %v2787_v17 = vld [vmem:[#allocation3] ss:$2 sm:$0xf]  ;;  %v2789_v18 = vld [vmem:[#allocation3 + $0x1] ss:$2 sm:$0xf] }
 0x7e0   : > { %v2790_v19 = vmax.f32 %v2787_v17, %v2789_v18 }
 0x7e2   : > { %v2791_v21 = vpack.c.bf16 %v2790_v19, %v2790_v19  ;;  %v7417_v19 = vld [vmem:[%s9958_s4 + $0x20] sm:$0xff]  }
 0x7e4   : > { %6714 = vmatmul.mubr.msk.bf16.vlgmr.msra.gmra.mrb[24].mxu0 %vm2617_vm7, %v2791_v21  ;;  %6720 = vmatmul.mubr.msk.bf16.vlgmr.msra.gmra.mrb[24].mxu1 %vm2617_vm7, %v2791_v21 }
 0x7e5   : > { %6724 = vmatpush3.bf16.msra.mxu0 %v7406_v20  ;;  %6725 = vmatprep.mubr.msk.bf16.mxu0 %vm8587_vm0, %v8586_v0 }
 0x7e6   : > { %6737 = vmatprep.subr.bf16.mxu0 %v8586_v0  ;;  %6733 = vmatprep.mubr.msk.bf16.mxu1 %vm8587_vm0, %v8586_v0 }
 0x7e7   : > { %6730 = vmatpush3.bf16.msra.mxu1 %v7407_v22  ;;  %v7419_v22 = vld [vmem:[%s9959_s1] sm:$0xff]  }
 0x7e8   : > { %6731 = vmatprep.subr.bf16.mxu1 %v8586_v0 }
 0x7eb   : > { %6732 = vmatpush3.bf16.msra.mxu1 %v7409_v24  ;;  %v7421_v24 = vld [vmem:[%s9959_s1 + $0x8] sm:$0xff]  }
 0x7ec   : > { %6726 = vmatmul.mubr.msk.bf16.vlgmr.msra.gmra.mrb[28].mxu0 %vm2617_vm7, %v2791_v21  ;;  %6745 = vmatprep.subr.bf16.mxu1 %v8586_v0  ;;  %v7418_v21 = vld [vmem:[%s9958_s4 + $0x28] sm:$0xff]  }
 0x7ed   : > { %6741 = vmatprep.mubr.msk.bf16.mxu0 %vm8587_vm0, %v8586_v0  ;;  %6738 = vmatpush3.bf16.msra.mxu0 %v7408_v23  ;;  %v7420_v23 = vld [vmem:[%s9959_s1 + $0x20] sm:$0xff]  }
 0x7ee   : > { %6739 = vmatprep.subr.bf16.mxu0 %v8586_v0 }
 0x7f1   : > { %6740 = vmatpush3.bf16.msra.mxu0 %v7410_v25  ;;  %v7422_v25 = vld [vmem:[%s9959_s1 + $0x28] sm:$0xff]  }
 0x7f2   : > { %6753 = vmatprep.subr.bf16.mxu0 %v8586_v0 }
 0x8b7   : > { %v2837_v26 = vpop.f32.mrb[24].mxu0  ;;  %v2886_v27 = vpop.f32.mrb[24].mxu1 }
 0x8b8   : > { %v2942_v28 = vrot.slane %v2837_v26, 7  ;;  %v6715_v29 = vpop.f32.mrb[25].mxu0  ;;  %v6721_v30 = vpop.f32.mrb[25].mxu1  ;;  %v7423_v26 = vld [vmem:[%s9959_s1 + $0x10] sm:$0xff]  }
 0x8b9   : > { %v2840_v31 = vpop.f32.mrb[26].mxu0  ;;  %v2889_v32 = vpop.f32.mrb[26].mxu1  ;;  %v7426_v29 = vld [vmem:[%s9959_s1 + $0x38] sm:$0xff]  }
 0x8ba   : > { %v2944_v33 = vsel %vm2214_vm4, 0.0, %v2942_v28  ;;  %v6716_v34 = vpop.f32.mrb[27].mxu0  ;;  %v6722_v35 = vpop.f32.mrb[27].mxu1  ;;  %v7425_v28 = vld [vmem:[%s9959_s1 + $0x18] sm:$0xff]  }
 0x8bb   : > { %v2950_v36 = vadd.f32 %v2944_v33, %v2886_v27  ;;  %v7424_v27 = vld [vmem:[%s9959_s1 + $0x30] sm:$0xff]  }
 0x8bf   : > { %v2935_v37 = vpop.f32.mrb[28].mxu0 }
 0x8c0   : > { %v2946_v38 = vrot.slane %v2935_v37, 1  ;;  %v6727_v39 = vpop.f32.mrb[29].mxu0 }
 0x8c1   : > { %v2938_v40 = vpop.f32.mrb[30].mxu0 }
 0x8c2   : > { %v2949_v41 = vsel %vm2948_vm8, %v2946_v38, 0.0  ;;  %v6728_v43 = vpop.f32.mrb[31].mxu0 }
 0x8c3   : > { %v2951_v44 = vadd.f32 %v2950_v36, %v2949_v41 }
 0x8c5   : > { %v2959_v46 = vmul.f32 %v6277_v42, %v2951_v44 }
 0x8c7   : > { %v2967_v47 = vadd.f32 %v6278_v45, %v2959_v46  ;;  %v6315_v46 = vld [vmem:[#allocation34] ss:$0 sm:$0xff] }
 0x8c9   : > { %v2968_v48 = vmax.f32 %v2967_v47, 0.0 }
 0x8cb   : > { %v2969_v50 = vpack.c.bf16 %v2968_v48, %v2968_v48 }
 0x8cd   : > { %6734 = vmatmul.mubr.msk.bf16.vlgmr.msra.gmra.mrb[28].mxu1 %vm2986_vm9, %v2969_v50  ;;  %6742 = vmatmul.mubr.msk.bf16.vlgmr.msra.gmra.mrb[32].mxu0 %vm2986_vm9, %v2969_v50 }
 0x8ce   : > { %6746 = vmatpush3.bf16.msra.mxu1 %v7411_v49  ;;  %6749 = vmatprep.mubr.msk.bf16.mxu1 %vm8587_vm0, %v8586_v0  ;;  %v6316_v49 = vld [vmem:[#allocation36] ss:$0 sm:$0xff] }
 0x8cf   : > { %6747 = vmatprep.subr.bf16.mxu1 %v8586_v0  ;;  %6757 = vmatprep.mubr.msk.bf16.mxu0 %vm8587_vm0, %v8586_v0 }
 0x8d0   : > { %6754 = vmatpush3.bf16.msra.mxu0 %v7413_v52 }
 0x8d1   : > { %6755 = vmatprep.subr.bf16.mxu0 %v8586_v0 }
 0x8d2   : > { %6748 = vmatpush3.bf16.msra.mxu1 %v7412_v51 }
 0x8d3   : > { %6761 = vmatprep.subr.bf16.mxu1 %v8586_v0 }
 0x8d4   : > { %6756 = vmatpush3.bf16.msra.mxu0 %v7415_v54 }
 0x8d5   : > { %6750 = vmatmul.mubr.msk.bf16.vlgmr.msra.gmra.mrb[32].mxu1 %vm2986_vm9, %v2969_v50  ;;  %6769 = vmatprep.subr.bf16.mxu0 %v8586_v0 }
 0x8d6   : > { %6765 = vmatprep.mubr.msk.bf16.mxu1 %vm8587_vm0, %v8586_v0  ;;  %6762 = vmatpush3.bf16.msra.mxu1 %v7414_v53  ;;  %v7427_v53 = vld [vmem:[%s9959_s1 + $0x40] sm:$0xff]  }
 0x8d7   : > { %6763 = vmatprep.subr.bf16.mxu1 %v8586_v0 }
 0x8da   : > { %6764 = vmatpush3.bf16.msra.mxu1 %v7416_v55  ;;  %v7428_v55 = vld [vmem:[%s9959_s1 + $0x48] sm:$0xff]  }
 0x8db   : > { %6777 = vmatprep.subr.bf16.mxu1 %v8586_v0 }
 0x9a0   : > { %v3024_v56 = vpop.f32.mrb[28].mxu1  ;;  %v3081_v57 = vpop.f32.mrb[32].mxu0 }
 0x9a1   : > { %v3145_v58 = vrot.slane %v3024_v56, 7  ;;  %v6735_v59 = vpop.f32.mrb[29].mxu1  ;;  %v6743_v60 = vpop.f32.mrb[33].mxu0  ;;  %v7429_v56 = vld [vmem:[%s9959_s1 + $0x50] sm:$0xff]  }
 0x9a2   : > { %v3027_v61 = vpop.f32.mrb[30].mxu1  ;;  %v3084_v62 = vpop.f32.mrb[34].mxu0  ;;  %v7432_v59 = vld [vmem:[%s9960_s7 + $0x20] sm:$0xff]   ;;  %v7433_v60 = vld [vmem:[%s9960_s7 + $0x8] sm:$0xff]  }
 0x9a3   : > { %v3147_v63 = vsel %vm2214_vm4, 0.0, %v3145_v58  ;;  %v6736_v1 = vpop.f32.mrb[31].mxu1  ;;  %v6744_v2 = vpop.f32.mrb[35].mxu0  ;;  %v7431_v58 = vld [vmem:[%s9960_s7] sm:$0xff]   ;;  %v7434_v61 = vld [vmem:[%s9960_s7 + $0x28] sm:$0xff]   ;;  %v7435_v62 = vld [vmem:[%s9960_s7 + $0x10] sm:$0xff]  }
 0x9a4   : > { %v3152_v3 = vadd.f32 %v3147_v63, %v3081_v57  ;;  %v7430_v57 = vld [vmem:[%s9959_s1 + $0x58] sm:$0xff]   ;;  %v7436_v63 = vld [vmem:[%s9960_s7 + $0x30] sm:$0xff]   ;;  %s9965_s1 = sld [smem:[#allocation111_spill]] }
 0x9a5   : > { %v7437_v1 = vld [vmem:[%s9960_s7 + $0x18] sm:$0xff]  }
 0x9a6   : > { %v7438_v2 = vld [vmem:[%s9960_s7 + $0x38] sm:$0xff]  }
 0x9a8   : > { %v3138_v4 = vpop.f32.mrb[32].mxu1 }
 0x9a9   : > { %v3149_v5 = vrot.slane %v3138_v4, 1  ;;  %v6751_v6 = vpop.f32.mrb[33].mxu1 }
 0x9aa   : > { %v3141_v7 = vpop.f32.mrb[34].mxu1 }
 0x9ab   : > { %v3151_v8 = vsel %vm2948_vm8, %v3149_v5, 0.0  ;;  %v6752_v10 = vpop.f32.mrb[35].mxu1 }
 0x9ac   : > { %v3153_v11 = vadd.f32 %v3152_v3, %v3151_v8 }
 0x9ae   : > { %v3161_v13 = vmul.f32 %v6296_v9, %v3153_v11 }
 0x9b0   : > { %v3169_v14 = vadd.f32 %v6297_v12, %v3161_v13 }
 0x9b2   : > { %v3170_v15 = vmax.f32 %v3169_v14, 0.0 }
 0x9b4   : > { %3172 = vst.msk [vmem:[#allocation4] sm:$0xf] %vm3171_vm10, %v3170_v15 }
 0x9bb   : > { %v3173_v16 = vld [vmem:[#allocation4] ss:$2 sm:$0x3]  ;;  %v3175_v17 = vld [vmem:[#allocation4 + $0x1] ss:$2 sm:$0x3] }
 0x9bc   : > { %v3176_v18 = vmax.f32 %v3173_v16, %v3175_v17 }
 0x9be   : > { %v3177_v20 = vpack.c.bf16 %v3176_v18, %v3176_v18 }
 0x9c0   : > { %6758 = vmatmul.mubr.msk.bf16.vlgmr.msra.gmra.mrb[36].mxu0 %vm2986_vm9, %v3177_v20  ;;  %6766 = vmatmul.mubr.msk.bf16.vlgmr.msra.gmra.mrb[36].mxu1 %vm2986_vm9, %v3177_v20 }
 0x9c1   : > { %6770 = vmatpush3.bf16.msra.mxu0 %v7417_v19  ;;  %6773 = vmatprep.mubr.msk.bf16.mxu0 %vm8587_vm0, %v8586_v0  ;;  %v6348_v19 = vld [vmem:[#allocation37] ss:$0 sm:$0xff] }
 0x9c2   : > { %6771 = vmatprep.subr.bf16.mxu0 %v8586_v0  ;;  %6785 = vmatprep.mubr.msk.bf16.mxu1 %vm8587_vm0, %v8586_v0 }
 0x9c3   : > { %6778 = vmatpush3.bf16.msra.mxu1 %v7419_v22  ;;  %v6349_v22 = vld [vmem:[#allocation39] ss:$0 sm:$0xff] }
 0x9c4   : > { %6779 = vmatprep.subr.bf16.mxu1 %v8586_v0 }
 0x9c5   : > { %6772 = vmatpush3.bf16.msra.mxu0 %v7418_v21 }
 0x9c6   : > { %6789 = vmatprep.subr.bf16.mxu0 %v8586_v0 }
 0x9c7   : > { %6780 = vmatpush3.bf16.msra.mxu1 %v7421_v24 }
 0x9c8   : > { %6774 = vmatmul.mubr.msk.bf16.vlgmr.msra.gmra.mrb[40].mxu0 %vm2986_vm9, %v3177_v20  ;;  %6781 = vmatprep.subr.bf16.mxu1 %v8586_v0 }
 0x9c9   : > { %6797 = vmatprep.mubr.msk.bf16.mxu0 %vm8587_vm0, %v8586_v0  ;;  %6790 = vmatpush3.bf16.msra.mxu0 %v7420_v23 }
 0x9ca   : > { %6791 = vmatprep.subr.bf16.mxu0 %v8586_v0 }
 0x9cb   : > { %6782 = vmatpush3.bf16.msra.mxu1 %v7423_v26  ;;  %v7439_v26 = vld [vmem:[%s9961_s5] sm:$0xff]  }
 0x9cc   : > { %6783 = vmatprep.subr.bf16.mxu1 %v8586_v0 }
 0x9cd   : > { %6792 = vmatpush3.bf16.msra.mxu0 %v7422_v25 }
 0x9ce   : > { %6793 = vmatprep.subr.bf16.mxu0 %v8586_v0 }
 0x9cf   : > { %6784 = vmatpush3.bf16.msra.mxu1 %v7425_v28 }
 0x9d0   : > { %6801 = vmatprep.subr.bf16.mxu1 %v8586_v0 }
 0x9d1   : > { %6794 = vmatpush3.bf16.msra.mxu0 %v7424_v27  ;;  %v7440_v27 = vld [vmem:[%s9961_s5 + $0x20] sm:$0xff]  }
 0x9d2   : > { %6795 = vmatprep.subr.bf16.mxu0 %v8586_v0 }
 0x9d5   : > { %6796 = vmatpush3.bf16.msra.mxu0 %v7426_v29  ;;  %v7441_v29 = vld [vmem:[%s9961_s5 + $0x8] sm:$0xff]  }
 0x9d6   : > { %6813 = vmatprep.subr.bf16.mxu0 %v8586_v0 }
 0xa93   : > { %v3231_v30 = vpop.f32.mrb[36].mxu0  ;;  %v3288_v31 = vpop.f32.mrb[36].mxu1 }
 0xa94   : > { %v3352_v32 = vrot.slane %v3231_v30, 7  ;;  %v6759_v33 = vpop.f32.mrb[37].mxu0  ;;  %v6767_v34 = vpop.f32.mrb[37].mxu1  ;;  %v7442_v30 = vld [vmem:[%s9961_s5 + $0x28] sm:$0xff]  }
 0xa95   : > { %v3234_v35 = vpop.f32.mrb[38].mxu0  ;;  %v3291_v36 = vpop.f32.mrb[38].mxu1  ;;  %v7444_v34 = vld [vmem:[%s9961_s5 + $0x18] sm:$0xff]  }
 0xa96   : > { %v3354_v37 = vsel %vm2214_vm4, 0.0, %v3352_v32  ;;  %v6760_v38 = vpop.f32.mrb[39].mxu0  ;;  %v6768_v39 = vpop.f32.mrb[39].mxu1  ;;  %v7443_v32 = vld [vmem:[%s9961_s5 + $0x10] sm:$0xff]   ;;  %v7445_v35 = vld [vmem:[%s9962_s16] sm:$0xff]  }
 0xa97   : > { %v3359_v40 = vadd.f32 %v3354_v37, %v3288_v31  ;;  %v3787_v31 = vld [vmem:[#allocation4] sm:$0xf]  ;;  %v7446_v36 = vld [vmem:[%s9962_s16 + $0x20] sm:$0xff]   ;;  %v7447_v37 = vld [vmem:[%s9962_s16 + $0x8] sm:$0xff]  }
 0xa98   : > { %v3788_v33 = vpack.c.bf16 %v3787_v31, %v3787_v31  ;;  %v7448_v38 = vld [vmem:[%s9962_s16 + $0x28] sm:$0xff]   ;;  %v6350_v39 = vld [vmem:[#allocation40] ss:$0 sm:$0xff] }
 0xa9b   : > { %v3345_v41 = vpop.f32.mrb[40].mxu0 }
 0xa9c   : > { %v3356_v42 = vrot.slane %v3345_v41, 1  ;;  %v6775_v43 = vpop.f32.mrb[41].mxu0 }
 0xa9d   : > { %v3348_v44 = vpop.f32.mrb[42].mxu0 }
 0xa9e   : > { %v3358_v45 = vsel %vm2214_vm4, %v3356_v42, 0.0  ;;  %v6776_v47 = vpop.f32.mrb[43].mxu0 }
 0xa9f   : > { %v3360_v48 = vadd.f32 %v3359_v40, %v3358_v45 }
 0xaa1   : > { %v3368_v50 = vmul.f32 %v6315_v46, %v3360_v48 }
 0xaa3   : > { %v3376_v51 = vadd.f32 %v6316_v49, %v3368_v50 }
 0xaa5   : > { %v3377_v52 = vmax.f32 %v3376_v51, 0.0 }
 0xaa7   : > { %v3378_v54 = vpack.c.bf16 %v3377_v52, %v3377_v52 }
 0xaa9   : > { %6786 = vmatmul.mubr.msk.bf16.vlgmr.msra.gmra.mrb[40].mxu1 %vm3411_vm11, %v3378_v54  ;;  %6798 = vmatmul.mubr.msk.bf16.vlgmr.msra.gmra.mrb[44].mxu0 %vm3411_vm11, %v3378_v54 }
 0xaaa   : > { %6802 = vmatpush3.bf16.msra.mxu1 %v7427_v53  ;;  %6809 = vmatprep.mubr.msk.bf16.mxu1 %vm8587_vm0, %v8586_v0 }
 0xaab   : > { %6803 = vmatprep.subr.bf16.mxu1 %v8586_v0  ;;  %6821 = vmatprep.mubr.msk.bf16.mxu0 %vm8587_vm0, %v8586_v0 }
 0xaac   : > { %6814 = vmatpush3.bf16.msra.mxu0 %v7431_v58 }
 0xaad   : > { %6815 = vmatprep.subr.bf16.mxu0 %v8586_v0 }
 0xaae   : > { %6804 = vmatpush3.bf16.msra.mxu1 %v7428_v55 }
 0xaaf   : > { %6805 = vmatprep.subr.bf16.mxu1 %v8586_v0 }
 0xab0   : > { %6816 = vmatpush3.bf16.msra.mxu0 %v7433_v60 }
 0xab1   : > { %6817 = vmatprep.subr.bf16.mxu0 %v8586_v0 }
 0xab2   : > { %6806 = vmatpush3.bf16.msra.mxu1 %v7429_v56 }
 0xab3   : > { %6807 = vmatprep.subr.bf16.mxu1 %v8586_v0 }
 0xab4   : > { %6818 = vmatpush3.bf16.msra.mxu0 %v7435_v62 }
 0xab5   : > { %6819 = vmatprep.subr.bf16.mxu0 %v8586_v0 }
 0xab6   : > { %6808 = vmatpush3.bf16.msra.mxu1 %v7430_v57 }
 0xab7   : > { %6825 = vmatprep.subr.bf16.mxu1 %v8586_v0 }
 0xab8   : > { %6820 = vmatpush3.bf16.msra.mxu0 %v7437_v1 }
 0xab9   : > { %6810 = vmatmul.mubr.msk.bf16.vlgmr.msra.gmra.mrb[44].mxu1 %vm3411_vm11, %v3378_v54  ;;  %6837 = vmatprep.subr.bf16.mxu0 %v8586_v0 }
 0xaba   : > { %6833 = vmatprep.mubr.msk.bf16.mxu1 %vm8587_vm0, %v8586_v0  ;;  %6826 = vmatpush3.bf16.msra.mxu1 %v7432_v59  ;;  %v7449_v59 = vld [vmem:[%s9962_s16 + $0x10] sm:$0xff]  }
 0xabb   : > { %6827 = vmatprep.subr.bf16.mxu1 %v8586_v0 }
 0xabe   : > { %6828 = vmatpush3.bf16.msra.mxu1 %v7434_v61 }
 0xabf   : > { %6829 = vmatprep.subr.bf16.mxu1 %v8586_v0 }
 0xac2   : > { %6830 = vmatpush3.bf16.msra.mxu1 %v7436_v63 }
 0xac3   : > { %6831 = vmatprep.subr.bf16.mxu1 %v8586_v0 }
 0xac6   : > { %6832 = vmatpush3.bf16.msra.mxu1 %v7438_v2 }
 0xac7   : > { %6853 = vmatprep.subr.bf16.mxu1 %v8586_v0 }
 0xb7c   : > { %v3449_v3 = vpop.f32.mrb[40].mxu1  ;;  %v3522_v4 = vpop.f32.mrb[44].mxu0 }
 0xb7d   : > { %v3602_v5 = vrot.slane %v3449_v3, 7  ;;  %v6787_v6 = vpop.f32.mrb[41].mxu1  ;;  %v6799_v7 = vpop.f32.mrb[45].mxu0  ;;  %v7450_v3 = vld [vmem:[%s9962_s16 + $0x18] sm:$0xff]  }
 0xb7e   : > { %v3452_v8 = vpop.f32.mrb[42].mxu1  ;;  %v3525_v9 = vpop.f32.mrb[46].mxu0  ;;  %v7453_v6 = vld [vmem:[%s9963_s10 + $0x8] sm:$0xff]   ;;  %v7454_v7 = vld [vmem:[%s9963_s10 + $0x18] sm:$0xff]  }
 0xb7f   : > { %v3604_v10 = vsel %vm2214_vm4, 0.0, %v3602_v5  ;;  %v6788_v11 = vpop.f32.mrb[43].mxu1  ;;  %v6800_v12 = vpop.f32.mrb[47].mxu0  ;;  %v7452_v5 = vld [vmem:[%s9963_s10 + $0x10] sm:$0xff]  }
 0xb80   : > { %v3609_v13 = vadd.f32 %v3604_v10, %v3522_v4  ;;  %v7451_v4 = vld [vmem:[%s9963_s10] sm:$0xff]  }
 0xb8c   : > { %v3595_v14 = vpop.f32.mrb[44].mxu1 }
 0xb8d   : > { %v3606_v15 = vrot.slane %v3595_v14, 1  ;;  %v6811_v16 = vpop.f32.mrb[45].mxu1 }
 0xb8e   : > { %v3598_v17 = vpop.f32.mrb[46].mxu1 }
 0xb8f   : > { %v3608_v18 = vsel %vm2214_vm4, %v3606_v15, 0.0  ;;  %v6812_v20 = vpop.f32.mrb[47].mxu1 }
 0xb90   : > { %v3610_v21 = vadd.f32 %v3609_v13, %v3608_v18 }
 0xb92   : > { %v3618_v23 = vmul.f32 %v6348_v19, %v3610_v21 }
 0xb94   : > { %v3626_v24 = vadd.f32 %v6349_v22, %v3618_v23 }
 0xb96   : > { %v3627_v25 = vmax.f32 %v3626_v24, 0.0 }
 0xb98   : > { %v3628_v28 = vpack.c.bf16 %v3627_v25, %v3627_v25 }
 0xb9a   : > { %6822 = vmatmul.mubr.msk.bf16.vlgmr.msra.gmra.mrb[48].mxu0 %vm3411_vm11, %v3628_v28  ;;  %6834 = vmatmul.mubr.msk.bf16.vlgmr.msra.gmra.mrb[48].mxu1 %vm3411_vm11, %v3628_v28  ;;  %v6404_v28 = vld [vmem:[#allocation43] ss:$0 sm:$0xff] }
 0xb9b   : > { %6838 = vmatpush3.bf16.msra.mxu0 %v7439_v26  ;;  %6854 = vmatpush3.bf16.msra.mxu1 %v7440_v27  ;;  %v6403_v26 = vld [vmem:[#allocation42] ss:$0 sm:$0xff] }
 0xb9c   : > { %6839 = vmatprep.subr.bf16.mxu0 %v8586_v0  ;;  %6855 = vmatprep.subr.bf16.mxu1 %v8586_v0 }
 0xb9d   : > { %6841 = vmatprep.mubr.msk.bf16.mxu0 %vm8587_vm0, %v8586_v0  ;;  %6857 = vmatprep.mubr.msk.bf16.mxu1 %vm8587_vm0, %v8586_v0 }
 0xb9f   : > { %6840 = vmatpush3.bf16.msra.mxu0 %v7441_v29  ;;  %6856 = vmatpush3.bf16.msra.mxu1 %v7442_v30 }
 0xba0   : > { %6845 = vmatprep.subr.bf16.mxu0 %v8586_v0  ;;  %6877 = vmatprep.subr.bf16.mxu1 %v8586_v0 }
 0xba2   : > { %6842 = vmatmul.mubr.msk.bf16.vlgmr.msra.gmra.mrb[52].mxu0 %vm2986_vm9, %v3788_v33  ;;  %6858 = vmatmul.mubr.msk.bf16.vlgmr.msra.gmra.mrb[52].mxu1 %vm2986_vm9, %v3788_v33 }
 0xba3   : > { %6846 = vmatpush3.bf16.msra.mxu0 %v7443_v32  ;;  %6849 = vmatprep.mubr.msk.bf16.mxu0 %vm8587_vm0, %v8586_v0  ;;  %v7455_v32 = vld [vmem:[%s9963_s10 + $0x20] sm:$0xff]  }
 0xba4   : > { %6847 = vmatprep.subr.bf16.mxu0 %v8586_v0  ;;  %6881 = vmatprep.mubr.msk.bf16.mxu1 %vm8587_vm0, %v8586_v0 }
 0xba5   : > { %6878 = vmatpush3.bf16.msra.mxu1 %v7446_v36  ;;  %v7458_v36 = vld [vmem:[%s9964_s6 + $0x10] sm:$0xff]  }
 0xba6   : > { %6879 = vmatprep.subr.bf16.mxu1 %v8586_v0 }
 0xba7   : > { %6848 = vmatpush3.bf16.msra.mxu0 %v7444_v34  ;;  %v7456_v34 = vld [vmem:[%s9963_s10 + $0x28] sm:$0xff]  }
 0xba8   : > { %6861 = vmatprep.subr.bf16.mxu0 %v8586_v0 }
 0xba9   : > { %6880 = vmatpush3.bf16.msra.mxu1 %v7448_v38  ;;  %v7460_v38 = vld [vmem:[%s9964_s6 + $0x18] sm:$0xff]  }
 0xbaa   : > { %6850 = vmatmul.mubr.msk.bf16.vlgmr.msra.gmra.mrb[56].mxu0 %vm2986_vm9, %v3788_v33  ;;  %6885 = vmatprep.subr.bf16.mxu1 %v8586_v0 }
 0xbab   : > { %6865 = vmatprep.mubr.msk.bf16.mxu0 %vm8587_vm0, %v8586_v0  ;;  %6862 = vmatpush3.bf16.msra.mxu0 %v7445_v35  ;;  %v7457_v35 = vld [vmem:[%s9964_s6] sm:$0xff]  }
 0xbac   : > { %6863 = vmatprep.subr.bf16.mxu0 %v8586_v0 }
 0xbaf   : > { %6864 = vmatpush3.bf16.msra.mxu0 %v7447_v37  ;;  %v7459_v37 = vld [vmem:[%s9964_s6 + $0x8] sm:$0xff]  }
 0xbb0   : > { %6869 = vmatprep.subr.bf16.mxu0 %v8586_v0 }
 0xc6d   : > { %v3705_v40 = vpop.f32.mrb[48].mxu0  ;;  %v3778_v41 = vpop.f32.mrb[48].mxu1 }
 0xc6e   : > { %v3706_v42 = vadd.f32 %v6350_v39, %v3705_v40  ;;  %v3779_v43 = vadd.f32 %v6350_v39, %v3778_v41  ;;  %v6823_v44 = vpop.f32.mrb[49].mxu0  ;;  %v6835_v45 = vpop.f32.mrb[49].mxu1 }
 0xc6f   : > { %v3708_v46 = vpop.f32.mrb[50].mxu0  ;;  %v3781_v47 = vpop.f32.mrb[50].mxu1 }
 0xc70   : > { %3784 = vst [vmem:[#allocation5] ss:$2 sm:$0x3] %v3706_v42  ;;  %3786 = vst [vmem:[#allocation5 + $0x1] ss:$2 sm:$0x3] %v3779_v43 }
 0xc71   : > { %v6824_v48 = vpop.f32.mrb[51].mxu0  ;;  %v6836_v49 = vpop.f32.mrb[51].mxu1 }
 0xc75   : > { %v3842_v50 = vpop.f32.mrb[52].mxu0  ;;  %v3956_v51 = vpop.f32.mrb[52].mxu1 }
 0xc76   : > { %v3963_v52 = vrot.slane %v3842_v50, 7  ;;  %v3967_v53 = vrot.slane %v3956_v51, 1  ;;  %v6843_v54 = vpop.f32.mrb[53].mxu0  ;;  %v6859_v55 = vpop.f32.mrb[53].mxu1 }
 0xc77   : > { %v3845_v56 = vpop.f32.mrb[54].mxu0  ;;  %v3959_v57 = vpop.f32.mrb[54].mxu1  ;;  %v3972_v58 = vld [vmem:[#allocation5] sm:$0xf]  ;;  %v6422_v55 = vld [vmem:[#allocation45] ss:$0 sm:$0xff] }
 0xc78   : > { %v3965_v60 = vsel %vm2214_vm4, 0.0, %v3963_v52  ;;  %v3969_v61 = vsel %vm2948_vm8, %v3967_v53, 0.0  ;;  %v6844_v62 = vpop.f32.mrb[55].mxu0  ;;  %v6860_v63 = vpop.f32.mrb[55].mxu1  ;;  %v3973_v1 = vpack.c.bf16 %v3972_v58, %v3972_v58  ;;  %v6423_v58 = vld [vmem:[#allocation46] ss:$0 sm:$0xff] }
 0xc79   : > { %v7051_v2 = vadd.f32 %v3969_v61, %v3965_v60  ;;  %v7461_v62 = vld [vmem:[#allocation49] sm:$0xff]   ;;  %v7462_v63 = vld [vmem:[#allocation49 + $0x8] sm:$0xff]  }
 0xc7a   : > { %6866 = vmatmul.mubr.msk.bf16.vlgmr.msra.gmra.mrb[60].mxu0 %vm2986_vm9, %v3973_v1  ;;  %6882 = vmatmul.mubr.msk.bf16.vlgmr.msra.gmra.mrb[56].mxu1 %vm2986_vm9, %v3973_v1 }
 0xc7b   : > { %6870 = vmatpush3.bf16.msra.mxu0 %v7449_v59  ;;  %6873 = vmatprep.mubr.msk.bf16.mxu0 %vm8587_vm0, %v8586_v0 }
 0xc7c   : > { %6871 = vmatprep.subr.bf16.mxu0 %v8586_v0  ;;  %6889 = vmatprep.mubr.msk.bf16.mxu1 %vm8587_vm0, %v8586_v0 }
 0xc7d   : > { %6886 = vmatpush3.bf16.msra.mxu1 %v7451_v4 }
 0xc7e   : > { %6887 = vmatprep.subr.bf16.mxu1 %v8586_v0 }
 0xc7f   : > { %6872 = vmatpush3.bf16.msra.mxu0 %v7450_v3  ;;  %v7463_v3 = vld [vmem:[#allocation49 + $0x10] sm:$0xff]  }
 0xc80   : > { %6893 = vmatprep.subr.bf16.mxu0 %v8586_v0 }
 0xc81   : > { %6888 = vmatpush3.bf16.msra.mxu1 %v7453_v6  ;;  %v7465_v6 = vld [vmem:[%s9965_s1 + $0x10] sm:$0xff]  }
 0xc82   : > { %6874 = vmatmul.mubr.msk.bf16.vlgmr.msra.gmra.mrb[56].mxu0 %vm2986_vm9, %v3973_v1  ;;  %6901 = vmatprep.subr.bf16.mxu1 %v8586_v0 }
 0xc83   : > { %6897 = vmatprep.mubr.msk.bf16.mxu0 %vm8587_vm0, %v8586_v0  ;;  %6894 = vmatpush3.bf16.msra.mxu0 %v7452_v5  ;;  %v7464_v5 = vld [vmem:[%s9965_s1] sm:$0xff]  }
 0xc84   : > { %6895 = vmatprep.subr.bf16.mxu0 %v8586_v0 }
 0xc87   : > { %6896 = vmatpush3.bf16.msra.mxu0 %v7454_v7  ;;  %v6424_v7 = vld [vmem:[#allocation48] ss:$0 sm:$0xff] }
 0xc88   : > { %6909 = vmatprep.subr.bf16.mxu0 %v8586_v0 }
 0xd4d   : > { %v4027_v8 = vpop.f32.mrb[60].mxu0  ;;  %v4141_v9 = vpop.f32.mrb[56].mxu1 }
 0xd4e   : > { %v6867_v10 = vpop.f32.mrb[61].mxu0  ;;  %v6883_v11 = vpop.f32.mrb[57].mxu1  ;;  %v4148_v16 = vrot.slane %v4027_v8, 7  ;;  %v4152_v17 = vrot.slane %v4141_v9, 1 }
 0xd4f   : > { %v4030_v12 = vpop.f32.mrb[62].mxu0  ;;  %v4144_v13 = vpop.f32.mrb[58].mxu1 }
 0xd50   : > { %v6868_v14 = vpop.f32.mrb[63].mxu0  ;;  %v6884_v15 = vpop.f32.mrb[59].mxu1  ;;  %v4150_v21 = vsel %vm2214_vm4, 0.0, %v4148_v16  ;;  %v4154_v25 = vsel %vm2948_vm8, %v4152_v17, 0.0 }
 0xd55   : > { %v4084_v18 = vpop.f32.mrb[56].mxu0 }
 0xd56   : > { %v7052_v19 = vadd.f32 %v7051_v2, %v4084_v18  ;;  %v6875_v20 = vpop.f32.mrb[57].mxu0  ;;  %v4503_v2 = vld [vmem:[#allocation3] sm:$0xff] }
 0xd57   : > { %v4087_v22 = vpop.f32.mrb[58].mxu0  ;;  %v4504_v4 = vpack.c.bf16 %v4503_v2, %v4503_v2 }
 0xd58   : > { %v7053_v23 = vadd.f32 %v7052_v19, %v4150_v21  ;;  %v6876_v24 = vpop.f32.mrb[59].mxu0  ;;  %v7466_v22 = vld [vmem:[%s9965_s1 + $0x8] sm:$0xff]   ;;  %s9966_s1 = sld [smem:[#allocation112_spill]] }
 0xd5a   : > { %v7054_v27 = vadd.f32 %v7053_v23, %v4154_v25 }
 0xd5c   : > { %v4165_v29 = vmul.f32 %v7054_v27, %v6403_v26 }
 0xd5e   : > { %v4173_v30 = vadd.f32 %v6404_v28, %v4165_v29 }
 0xd60   : > { %v4174_v31 = vmax.f32 %v4173_v30, 0.0 }
 0xd62   : > { %v4175_v33 = vpack.c.bf16 %v4174_v31, %v4174_v31 }
 0xd64   : > { %6890 = vmatmul.mubr.msk.bf16.vlgmr.msra.gmra.mrb[60].mxu1 %vm2986_vm9, %v4175_v33  ;;  %6898 = vmatmul.mubr.msk.bf16.vlgmr.msra.gmra.mrb[64].mxu0 %vm2986_vm9, %v4175_v33 }
 0xd65   : > { %6902 = vmatpush3.bf16.msra.mxu1 %v7455_v32  ;;  %6905 = vmatprep.mubr.msk.bf16.mxu1 %vm8587_vm0, %v8586_v0 }
 0xd66   : > { %6903 = vmatprep.subr.bf16.mxu1 %v8586_v0  ;;  %6913 = vmatprep.mubr.msk.bf16.mxu0 %vm8587_vm0, %v8586_v0 }
 0xd67   : > { %6910 = vmatpush3.bf16.msra.mxu0 %v7457_v35  ;;  %v7468_v35 = vld [vmem:[#allocation51 + $0x8] sm:$0xff]  }
 0xd68   : > { %6911 = vmatprep.subr.bf16.mxu0 %v8586_v0 }
 0xd69   : > { %6904 = vmatpush3.bf16.msra.mxu1 %v7456_v34  ;;  %v7467_v34 = vld [vmem:[#allocation51] sm:$0xff]  }
 0xd6a   : > { %6917 = vmatprep.subr.bf16.mxu1 %v8586_v0 }
 0xd6b   : > { %6912 = vmatpush3.bf16.msra.mxu0 %v7459_v37 }
 0xd6c   : > { %6906 = vmatmul.mubr.msk.bf16.vlgmr.msra.gmra.mrb[64].mxu1 %vm2986_vm9, %v4175_v33  ;;  %6925 = vmatprep.subr.bf16.mxu0 %v8586_v0 }
 0xd6d   : > { %6921 = vmatprep.mubr.msk.bf16.mxu1 %vm8587_vm0, %v8586_v0  ;;  %6918 = vmatpush3.bf16.msra.mxu1 %v7458_v36 }
 0xd6e   : > { %6919 = vmatprep.subr.bf16.mxu1 %v8586_v0 }
 0xd71   : > { %6920 = vmatpush3.bf16.msra.mxu1 %v7460_v38 }
 0xd72   : > { %6931 = vmatprep.subr.bf16.mxu1 %v8586_v0 }
 0xe37   : > { %v4229_v39 = vpop.f32.mrb[60].mxu1  ;;  %v4286_v40 = vpop.f32.mrb[64].mxu0 }
 0xe38   : > { %v4350_v41 = vrot.slane %v4229_v39, 7  ;;  %v6891_v42 = vpop.f32.mrb[61].mxu1  ;;  %v6899_v43 = vpop.f32.mrb[65].mxu0 }
 0xe39   : > { %v4232_v44 = vpop.f32.mrb[62].mxu1  ;;  %v4289_v45 = vpop.f32.mrb[66].mxu0 }
 0xe3a   : > { %v4352_v46 = vsel %vm2214_vm4, 0.0, %v4350_v41  ;;  %v6892_v47 = vpop.f32.mrb[63].mxu1  ;;  %v6900_v48 = vpop.f32.mrb[67].mxu0 }
 0xe3b   : > { %v4357_v49 = vadd.f32 %v4352_v46, %v4286_v40 }
 0xe3f   : > { %v4343_v50 = vpop.f32.mrb[64].mxu1 }
 0xe40   : > { %v4354_v51 = vrot.slane %v4343_v50, 1  ;;  %v6907_v52 = vpop.f32.mrb[65].mxu1 }
 0xe41   : > { %v4346_v53 = vpop.f32.mrb[66].mxu1 }
 0xe42   : > { %v4356_v54 = vsel %vm2948_vm8, %v4354_v51, 0.0  ;;  %v6908_v56 = vpop.f32.mrb[67].mxu1 }
 0xe43   : > { %v4358_v57 = vadd.f32 %v4357_v49, %v4356_v54  ;;  %v6451_v54 = vld [vmem:[%s9966_s1] ss:$0 sm:$0xff]  ;;  %s9970_s1 = sld [smem:[#allocation120_spill]] }
 0xe44   : > { %v6452_v56 = vld [vmem:[%s9967_s2] ss:$0 sm:$0xff]  ;;  %s9969_s2 = sld [smem:[#allocation119_spill]] }
 0xe45   : > { %v4366_v59 = vmul.f32 %v6422_v55, %v4358_v57 }
 0xe47   : > { %v4374_v60 = vadd.f32 %v6423_v58, %v4366_v59 }
 0xe49   : > { %v4375_v61 = vmax.f32 %v4374_v60, 0.0  ;;  %v7469_v60 = vld [vmem:[#allocation51 + $0x10] sm:$0xff]  }
 0xe4b   : > { %v4376_v1 = vpack.c.bf16 %v4375_v61, %v4375_v61 }
 0xe4d   : > { %6914 = vmatmul.mubr.msk.bf16.vlgmr.msra.gmra.mrb[68].mxu0 %vm2986_vm9, %v4376_v1  ;;  %6922 = vmatmul.mubr.msk.bf16.vlgmr.msra.gmra.mrb[68].mxu1 %vm2986_vm9, %v4376_v1 }
 0xe4e   : > { %6926 = vmatpush3.bf16.msra.mxu0 %v7461_v62  ;;  %6932 = vmatpush3.bf16.msra.mxu1 %v7462_v63  ;;  %v7470_v62 = vld [vmem:[%s9968_s3] sm:$0xff]   ;;  %v7471_v63 = vld [vmem:[%s9968_s3 + $0x8] sm:$0xff]  }
 0xe4f   : > { %6927 = vmatprep.mubr.msk.bf16.mxu0 %vm8587_vm0, %v8586_v0  ;;  %6933 = vmatprep.mubr.msk.bf16.mxu1 %vm8587_vm0, %v8586_v0 }
 0xe50   : > { %6937 = vmatprep.subr.bf16.mxu0 %v8586_v0  ;;  %6943 = vmatprep.subr.bf16.mxu1 %v8586_v0 }
 0xe55   : > { %6928 = vmatmul.mubr.msk.bf16.vlgmr.msra.gmra.mrb[72].mxu0 %vm2617_vm7, %v4504_v4  ;;  %6934 = vmatmul.mubr.msk.bf16.vlgmr.msra.gmra.mrb[72].mxu1 %vm2617_vm7, %v4504_v4 }
 0xe56   : > { %6938 = vmatpush3.bf16.msra.mxu0 %v7463_v3  ;;  %6939 = vmatprep.mubr.msk.bf16.mxu0 %vm8587_vm0, %v8586_v0 }
 0xe57   : > { %6955 = vmatprep.subr.bf16.mxu0 %v8586_v0  ;;  %6945 = vmatprep.mubr.msk.bf16.mxu1 %vm8587_vm0, %v8586_v0 }
 0xe58   : > { %6944 = vmatpush3.bf16.msra.mxu1 %v7464_v5 }
 0xe59   : > { %6949 = vmatprep.subr.bf16.mxu1 %v8586_v0 }
 0xe5d   : > { %6940 = vmatmul.mubr.msk.bf16.vlgmr.msra.gmra.mrb[76].mxu0 %vm2617_vm7, %v4504_v4 }
 0xe5e   : > { %6957 = vmatprep.mubr.msk.bf16.mxu0 %vm8587_vm0, %v8586_v0  ;;  %6956 = vmatpush3.bf16.msra.mxu0 %v7465_v6 }
 0xe5f   : > { %6961 = vmatprep.subr.bf16.mxu0 %v8586_v0 }
 0xf20   : > { %v4437_v8 = vpop.f32.mrb[68].mxu0  ;;  %v4494_v9 = vpop.f32.mrb[68].mxu1 }
 0xf21   : > { %v4438_v10 = vadd.f32 %v6424_v7, %v4437_v8  ;;  %v4495_v11 = vadd.f32 %v6424_v7, %v4494_v9  ;;  %v6915_v12 = vpop.f32.mrb[69].mxu0  ;;  %v6923_v13 = vpop.f32.mrb[69].mxu1 }
 0xf22   : > { %v4440_v14 = vpop.f32.mrb[70].mxu0  ;;  %v4497_v15 = vpop.f32.mrb[70].mxu1 }
 0xf23   : > { %4500 = vst [vmem:[#allocation6] ss:$2 sm:$0xf] %v4438_v10  ;;  %4502 = vst [vmem:[#allocation6 + $0x1] ss:$2 sm:$0xf] %v4495_v11 }
 0xf24   : > { %v6916_v16 = vpop.f32.mrb[71].mxu0  ;;  %v6924_v17 = vpop.f32.mrb[71].mxu1 }
 0xf25   : > { %v6459_v17 = vld [vmem:[#allocation52] ss:$0 sm:$0xff] }
 0xf28   : > { %v4550_v18 = vpop.f32.mrb[72].mxu0 }
 0xf29   : > { %v6929_v19 = vpop.f32.mrb[73].mxu0  ;;  %v4655_v25 = vrot.slane %v4550_v18, 7 }
 0xf2a   : > { %v4553_v20 = vpop.f32.mrb[74].mxu0  ;;  %v4664_v21 = vld [vmem:[#allocation6] sm:$0xff] }
 0xf2b   : > { %v6930_v23 = vpop.f32.mrb[75].mxu0  ;;  %v4665_v24 = vpack.c.bf16 %v4664_v21, %v4664_v21  ;;  %v4657_v30 = vsel %vm2214_vm4, 0.0, %v4655_v25  ;;  %v6460_v20 = vld [vmem:[#allocation54] ss:$0 sm:$0xff] }
 0xf2c   : > { %v5134_v23 = vld [vmem:[%s9969_s2] sm:$0xf] }
 0xf2d   : > { %6946 = vmatmul.mubr.msk.bf16.vlgmr.msra.gmra.mrb[76].mxu1 %vm2617_vm7, %v4665_v24  ;;  %6958 = vmatmul.mubr.msk.bf16.vlgmr.msra.gmra.mrb[80].mxu0 %vm2617_vm7, %v4665_v24 }
 0xf2e   : > { %6950 = vmatpush3.bf16.msra.mxu1 %v7466_v22  ;;  %6951 = vmatprep.mubr.msk.bf16.mxu1 %vm8587_vm0, %v8586_v0 }
 0xf2f   : > { %6967 = vmatprep.subr.bf16.mxu1 %v8586_v0  ;;  %6963 = vmatprep.mubr.msk.bf16.mxu0 %vm8587_vm0, %v8586_v0 }
 0xf30   : > { %v4648_v26 = vpop.f32.mrb[76].mxu0  ;;  %6962 = vmatpush3.bf16.msra.mxu0 %v7467_v34  ;;  %v5297_v34 = vld [vmem:[%s9970_s1] sm:$0xf] }
 0xf31   : > { %v4659_v27 = vrot.slane %v4648_v26, 1  ;;  %v6941_v28 = vpop.f32.mrb[77].mxu0  ;;  %6973 = vmatprep.subr.bf16.mxu0 %v8586_v0 }
 0xf32   : > { %v4651_v29 = vpop.f32.mrb[78].mxu0 }
 0xf33   : > { %v4661_v31 = vsel %vm2223_vm5, %v4659_v27, 0.0  ;;  %v6942_v32 = vpop.f32.mrb[79].mxu0  ;;  %v5139_v27 = vsel %vm2260_vm3, %v5134_v23, 0  ;;  %v5131_v29 = vld [vmem:[#allocation2] sm:$0xff] }
 0xf34   : > { %v7055_v33 = vadd.f32 %v4661_v31, %v4657_v30  ;;  %v5132_v30 = vld [vmem:[#allocation2 + $0x8] sm:$0xff] }
 0xf35   : > { %6952 = vmatmul.mubr.msk.bf16.vlgmr.msra.gmra.mrb[72].mxu1 %vm2617_vm7, %v4665_v24  ;;  %v6469_v24 = vld [vmem:[%s9969_s2 + $0x4] sm:$0xf]  ;;  %v6471_v31 = vld [vmem:[%s9969_s2 + $0x8] sm:$0xf]  ;;  %v5133_v32 = vpack.c.bf16 %v5132_v30, %v5131_v29 }
 0xf36   : > { %6969 = vmatprep.mubr.msk.bf16.mxu1 %vm8587_vm0, %v8586_v0  ;;  %6968 = vmatpush3.bf16.msra.mxu1 %v7468_v35  ;;  %v5185_v28 = vsel %vm2260_vm3, %v6469_v24, 0  ;;  %v5302_v35 = vsel %vm2260_vm3, %v5297_v34, 0 }
 0xf37   : > { %6979 = vmatprep.subr.bf16.mxu1 %v8586_v0 }
0x1000   : > { %v4711_v36 = vpop.f32.mrb[76].mxu1  ;;  %v4809_v37 = vpop.f32.mrb[80].mxu0 }
0x1001   : > { %v6947_v38 = vpop.f32.mrb[77].mxu1  ;;  %v6959_v39 = vpop.f32.mrb[81].mxu0  ;;  %v4816_v44 = vrot.slane %v4711_v36, 7  ;;  %v4820_v45 = vrot.slane %v4809_v37, 1  ;;  %v6476_v36 = vld [vmem:[%s9970_s1 + $0x8] sm:$0xf] }
0x1002   : > { %v4714_v40 = vpop.f32.mrb[78].mxu1  ;;  %v4812_v41 = vpop.f32.mrb[82].mxu0  ;;  %v5394_v37 = vsel %vm2260_vm3, %v6476_v36, 0  ;;  %v6461_v38 = vld [vmem:[#allocation55] ss:$0 sm:$0xff] }
0x1003   : > { %v6948_v42 = vpop.f32.mrb[79].mxu1  ;;  %v6960_v43 = vpop.f32.mrb[83].mxu0  ;;  %v4818_v49 = vsel %vm2214_vm4, 0.0, %v4816_v44  ;;  %v4822_v53 = vsel %vm2223_vm5, %v4820_v45, 0.0 }
0x1008   : > { %v4760_v46 = vpop.f32.mrb[72].mxu1 }
0x1009   : > { %v7056_v47 = vadd.f32 %v7055_v33, %v4760_v46  ;;  %v6953_v48 = vpop.f32.mrb[73].mxu1  ;;  %v5231_v33 = vsel %vm2260_vm3, %v6471_v31, 0 }
0x100a   : > { %v4763_v50 = vpop.f32.mrb[74].mxu1 }
0x100b   : > { %v7057_v51 = vadd.f32 %v7056_v47, %v4818_v49  ;;  %v6954_v52 = vpop.f32.mrb[75].mxu1  ;;  %v6474_v50 = vld [vmem:[%s9970_s1 + $0x4] sm:$0xf]  ;;  %s9971_s1 = sld [smem:[#allocation123_spill]] }
0x100d   : > { %v7058_v55 = vadd.f32 %v7057_v51, %v4822_v53 }
0x100f   : > { %v4833_v57 = vmul.f32 %v7058_v55, %v6451_v54 }
0x1011   : > { %v4841_v58 = vadd.f32 %v6452_v56, %v4833_v57 }
0x1013   : > { %v4842_v59 = vmax.f32 %v4841_v58, 0.0 }
0x1015   : > { %v4843_v61 = vpack.c.bf16 %v4842_v59, %v4842_v59  ;;  %v5348_v59 = vsel %vm2260_vm3, %v6474_v50, 0  ;;  %v5662_v50 = vld [vmem:[%s8862_s17] sm:$0x7] }
0x1017   : > { %6964 = vmatmul.mubr.msk.bf16.vlgmr.msra.gmra.mrb[84].mxu0 %vm2617_vm7, %v4843_v61  ;;  %6970 = vmatmul.mubr.msk.bf16.vlgmr.msra.gmra.mrb[80].mxu1 %vm2617_vm7, %v4843_v61 }
0x1018   : > { %6974 = vmatpush3.bf16.msra.mxu0 %v7469_v60  ;;  %6975 = vmatprep.mubr.msk.bf16.mxu0 %vm8587_vm0, %v8586_v0 }
0x1019   : > { %6985 = vmatprep.subr.bf16.mxu0 %v8586_v0  ;;  %6981 = vmatprep.mubr.msk.bf16.mxu1 %vm8587_vm0, %v8586_v0 }
0x101a   : > { %6980 = vmatpush3.bf16.msra.mxu1 %v7470_v62 }
0x101b   : > { %6991 = vmatprep.subr.bf16.mxu1 %v8586_v0 }
0x101f   : > { %6976 = vmatmul.mubr.msk.bf16.vlgmr.msra.gmra.mrb[88].mxu0 %vm2617_vm7, %v4843_v61 }
0x1020   : > { %6987 = vmatprep.mubr.msk.bf16.mxu0 %vm8587_vm0, %v8586_v0  ;;  %6986 = vmatpush3.bf16.msra.mxu0 %v7471_v63 }
0x1021   : > { %6997 = vmatprep.subr.bf16.mxu0 %v8586_v0 }
0x10ea   : > { %v4889_v1 = vpop.f32.mrb[84].mxu0  ;;  %v4938_v2 = vpop.f32.mrb[80].mxu1 }
0x10eb   : > { %v4994_v3 = vrot.slane %v4889_v1, 7  ;;  %v6965_v4 = vpop.f32.mrb[85].mxu0  ;;  %v6971_v5 = vpop.f32.mrb[81].mxu1 }
0x10ec   : > { %v4892_v6 = vpop.f32.mrb[86].mxu0  ;;  %v4941_v7 = vpop.f32.mrb[82].mxu1 }
0x10ed   : > { %v4996_v8 = vsel %vm2214_vm4, 0.0, %v4994_v3  ;;  %v6966_v9 = vpop.f32.mrb[87].mxu0  ;;  %v6972_v10 = vpop.f32.mrb[83].mxu1 }
0x10ee   : > { %v5001_v11 = vadd.f32 %v4996_v8, %v4938_v2  ;;  %v5480_v9 = vld [vmem:[%s9971_s1] sm:$0xf]  ;;  %v6481_v10 = vld [vmem:[%s9971_s1 + $0x4] sm:$0xf] }
0x10f2   : > { %v4987_v12 = vpop.f32.mrb[88].mxu0 }
0x10f3   : > { %v4998_v13 = vrot.slane %v4987_v12, 1  ;;  %v6977_v14 = vpop.f32.mrb[89].mxu0  ;;  %v5531_v12 = vsel %vm2260_vm3, %v6481_v10, 0  ;;  %v6485_v10 = vld [vmem:[#allocation60] ss:$0 sm:$0xff] }
0x10f4   : > { %v4990_v15 = vpop.f32.mrb[90].mxu0 }
0x10f5   : > { %v5000_v16 = vsel %vm2223_vm5, %v4998_v13, 0.0  ;;  %v6978_v18 = vpop.f32.mrb[91].mxu0 }
0x10f6   : > { %v5002_v19 = vadd.f32 %v5001_v11, %v5000_v16  ;;  %v5485_v11 = vsel %vm2260_vm3, %v5480_v9, 0 }
0x10f8   : > { %v5010_v21 = vmul.f32 %v6459_v17, %v5002_v19 }
0x10fa   : > { %v5018_v22 = vadd.f32 %v6460_v20, %v5010_v21 }
0x10fc   : > { %v5019_v25 = vmax.f32 %v5018_v22, 0.0 }
0x10fe   : > { %v5020_v26 = vpack.c.bf16 %v5019_v25, %v5019_v25 }
0x1100   : > { %6982 = vmatmul.mubr.msk.bf16.vlgmr.msra.gmra.mrb[84].mxu1 %vm2617_vm7, %v5020_v26  ;;  %6988 = vmatmul.mubr.msk.bf16.vlgmr.msra.gmra.mrb[92].mxu0 %vm2617_vm7, %v5020_v26 }
0x1101   : > { %6992 = vmatpush3.bf16.msra.mxu1 %v5139_v27  ;;  %6998 = vmatpush3.bf16.msra.mxu0 %v5185_v28 }
0x1102   : > { %6993 = vmatprep.mubr.msk.bf16.mxu1 %vm8587_vm0, %v8586_v0  ;;  %6999 = vmatprep.mubr.msk.bf16.mxu0 %vm8587_vm0, %v8586_v0 }
0x1103   : > { %7003 = vmatprep.subr.bf16.mxu1 %v8586_v0  ;;  %7009 = vmatprep.subr.bf16.mxu0 %v8586_v0 }
0x1108   : > { %6994 = vmatmul.mubr.msk.bf16.vlgmr.msra.gmra.mrb[88].mxu1 %vm2256_vm6, %v5133_v32  ;;  %7000 = vmatmul.mubr.msk.bf16.vlgmr.msra.gmra.mrb[96].mxu0 %vm2256_vm6, %v5133_v32 }
0x1109   : > { %7004 = vmatpush3.bf16.msra.mxu1 %v5231_v33  ;;  %7005 = vmatprep.mubr.msk.bf16.mxu1 %vm8587_vm0, %v8586_v0 }
0x110a   : > { %7021 = vmatprep.subr.bf16.mxu1 %v8586_v0  ;;  %7011 = vmatprep.mubr.msk.bf16.mxu0 %vm8587_vm0, %v8586_v0 }
0x110b   : > { %7010 = vmatpush3.bf16.msra.mxu0 %v5302_v35  ;;  %v6478_v35 = vld [vmem:[#allocation57] ss:$0 sm:$0xff] }
0x110c   : > { %7015 = vmatprep.subr.bf16.mxu0 %v8586_v0 }
0x1110   : > { %7006 = vmatmul.mubr.msk.bf16.vlgmr.msra.gmra.mrb[92].mxu1 %vm2256_vm6, %v5133_v32 }
0x1111   : > { %7023 = vmatprep.mubr.msk.bf16.mxu1 %vm8587_vm0, %v8586_v0  ;;  %7022 = vmatpush3.bf16.msra.mxu1 %v5394_v37 }
0x1112   : > { %7027 = vmatprep.subr.bf16.mxu1 %v8586_v0 }
0x11d3   : > { %v5073_v39 = vpop.f32.mrb[84].mxu1  ;;  %v5122_v40 = vpop.f32.mrb[92].mxu0 }
0x11d4   : > { %v5074_v41 = vadd.f32 %v6461_v38, %v5073_v39  ;;  %v5123_v42 = vadd.f32 %v6461_v38, %v5122_v40  ;;  %v6983_v43 = vpop.f32.mrb[85].mxu1  ;;  %v6989_v44 = vpop.f32.mrb[93].mxu0  ;;  %v6479_v39 = vld [vmem:[#allocation58] ss:$0 sm:$0xff] }
0x11d5   : > { %v5076_v45 = vpop.f32.mrb[86].mxu1  ;;  %v5125_v46 = vpop.f32.mrb[94].mxu0 }
0x11d6   : > { %5128 = vst [vmem:[#allocation7] ss:$2 sm:$0xff] %v5074_v41  ;;  %5130 = vst [vmem:[#allocation7 + $0x1] ss:$2 sm:$0xff] %v5123_v42  ;;  %v6984_v47 = vpop.f32.mrb[87].mxu1  ;;  %v6990_v48 = vpop.f32.mrb[95].mxu0 }
0x11d7   : > { %v6483_v45 = vld [vmem:[%s9971_s1 + $0x8] sm:$0xf]  ;;  %s6247_s1 = sshll.u32 %s9973_s15, 2 }
0x11d8   : > { %s2065_s2 = scalar_lea.vmem %s8867_s25, %s6247_s1 }
0x11db   : > { %v5175_v49 = vpop.f32.mrb[88].mxu1 }
0x11dc   : > { %v6995_v51 = vpop.f32.mrb[89].mxu1  ;;  %v5276_v55 = vrot.slane %v5175_v49, 7  ;;  %v5577_v49 = vsel %vm2260_vm3, %v6483_v45, 0 }
0x11dd   : > { %v5178_v52 = vpop.f32.mrb[90].mxu1  ;;  %v5294_v53 = vld [vmem:[#allocation7] sm:$0xff]  ;;  %v5295_v54 = vld [vmem:[#allocation7 + $0x8] sm:$0xff]  ;;  %v8588_v51 = vmov 0  }
0x11de   : > { %v5277_v56 = vrot.slane %v5178_v52, 7  ;;  %v6996_v57 = vpop.f32.mrb[91].mxu1  ;;  %v5296_v58 = vpack.c.bf16 %v5295_v54, %v5294_v53  ;;  %v5281_v4 = vsel %vm2214_vm4, 0.0, %v5276_v55  ;;  %7400 = vset.pattern.permute.xlu0 %v8588_v51 }
0x11df   : > { %5665 = vperm.xlu0 %7400, %v5662_v50  }
0x11e0   : > { %7012 = vmatmul.mubr.msk.bf16.vlgmr.msra.gmra.mrb[100].mxu0 %vm2256_vm6, %v5296_v58  ;;  %7024 = vmatmul.mubr.msk.bf16.vlgmr.msra.gmra.mrb[96].mxu1 %vm2256_vm6, %v5296_v58  ;;  %v5278_v60 = vsel %vm2214_vm4, %v5276_v55, %v5277_v56 }
0x11e1   : > { %7016 = vmatpush3.bf16.msra.mxu0 %v5348_v59  ;;  %7017 = vmatprep.mubr.msk.bf16.mxu0 %vm8587_vm0, %v8586_v0 }
0x11e2   : > { %7033 = vmatprep.subr.bf16.mxu0 %v8586_v0  ;;  %7029 = vmatprep.mubr.msk.bf16.mxu1 %vm8587_vm0, %v8586_v0 }
0x11e3   : > { %v5267_v61 = vpop.f32.mrb[92].mxu1  ;;  %7028 = vmatpush3.bf16.msra.mxu1 %v5485_v11 }
0x11e4   : > { %v7007_v62 = vpop.f32.mrb[93].mxu1  ;;  %v5284_v1 = vrot.slane %v5267_v61, 1  ;;  %7039 = vmatprep.subr.bf16.mxu1 %v8586_v0 }
0x11e5   : > { %v5270_v63 = vpop.f32.mrb[94].mxu1 }
0x11e6   : > { %v5285_v2 = vrot.slane %v5270_v63, 1  ;;  %v7008_v3 = vpop.f32.mrb[95].mxu1 }
0x11e8   : > { %v5289_v5 = vsel %vm2223_vm5, %v5285_v2, 0.0  ;;  %7018 = vmatmul.mubr.msk.bf16.vlgmr.msra.gmra.mrb[96].mxu0 %vm2256_vm6, %v5296_v58  ;;  %v5286_v6 = vsel %vm2223_vm5, %v5284_v1, %v5285_v2 }
0x11e9   : > { %v7059_v7 = vadd.f32 %v5286_v6, %v5281_v4  ;;  %v7063_v8 = vadd.f32 %v5289_v5, %v5278_v60  ;;  %7035 = vmatprep.mubr.msk.bf16.mxu0 %vm8587_vm0, %v8586_v0  ;;  %7034 = vmatpush3.bf16.msra.mxu0 %v5531_v12 }
0x11ea   : > { %7045 = vmatprep.subr.bf16.mxu0 %v8586_v0 }
0x12b3   : > { %v5338_v13 = vpop.f32.mrb[100].mxu0  ;;  %v5430_v14 = vpop.f32.mrb[96].mxu1 }
0x12b4   : > { %v7013_v15 = vpop.f32.mrb[101].mxu0  ;;  %v7025_v16 = vpop.f32.mrb[97].mxu1  ;;  %v5439_v19 = vrot.slane %v5338_v13, 7  ;;  %v5447_v20 = vrot.slane %v5430_v14, 1  ;;  %v6486_v13 = vld [vmem:[%s8852_s14] ss:$0 sm:$0xff] }
0x12b5   : > { %v5341_v17 = vpop.f32.mrb[102].mxu0  ;;  %v5433_v18 = vpop.f32.mrb[98].mxu1 }
0x12b6   : > { %v5440_v21 = vrot.slane %v5341_v17, 7  ;;  %v5448_v22 = vrot.slane %v5433_v18, 1  ;;  %v7014_v23 = vpop.f32.mrb[103].mxu0  ;;  %v7026_v24 = vpop.f32.mrb[99].mxu1  ;;  %v5444_v30 = vsel %vm2214_vm4, 0.0, %v5439_v19 }
0x12b7   : > { %v5666_v23 = vpop.permute.xlu0 %5665 }
0x12b8   : > { %v5449_v25 = vsel %vm2223_vm5, %v5447_v20, %v5448_v22  ;;  %v5441_v26 = vsel %vm2214_vm4, %v5439_v19, %v5440_v21  ;;  %v5452_v38 = vsel %vm2223_vm5, %v5448_v22, 0.0  ;;  %v5660_v22 = vld [vmem:[#allocation61] sm:$0x3] }
0x12bb   : > { %v5384_v27 = vpop.f32.mrb[96].mxu0 }
0x12bc   : > { %v7060_v28 = vadd.f32 %v7059_v7, %v5384_v27  ;;  %v7019_v29 = vpop.f32.mrb[97].mxu0 }
0x12bd   : > { %v5387_v31 = vpop.f32.mrb[98].mxu0 }
0x12be   : > { %v7061_v32 = vadd.f32 %v7060_v28, %v5444_v30  ;;  %v7064_v33 = vadd.f32 %v7063_v8, %v5387_v31  ;;  %v7020_v34 = vpop.f32.mrb[99].mxu0 }
0x12c0   : > { %v7062_v36 = vadd.f32 %v7061_v32, %v5449_v25  ;;  %v7065_v37 = vadd.f32 %v7064_v33, %v5441_v26 }
0x12c2   : > { %v5466_v40 = vmul.f32 %v7062_v36, %v6478_v35  ;;  %v7066_v41 = vadd.f32 %v7065_v37, %v5452_v38 }
0x12c4   : > { %v5475_v42 = vadd.f32 %v6479_v39, %v5466_v40  ;;  %v5467_v43 = vmul.f32 %v7066_v41, %v6478_v35 }
0x12c6   : > { %v5476_v44 = vadd.f32 %v6479_v39, %v5467_v43  ;;  %v5477_v46 = vmax.f32 %v5475_v42, 0.0 }
0x12c8   : > { %v5478_v47 = vmax.f32 %v5476_v44, 0.0 }
0x12ca   : > { %v5479_v48 = vpack.c.bf16 %v5478_v47, %v5477_v46 }
0x12cc   : > { %7030 = vmatmul.mubr.msk.bf16.vlgmr.msra.gmra.mrb[100].mxu1 %vm2256_vm6, %v5479_v48  ;;  %7036 = vmatmul.mubr.msk.bf16.vlgmr.msra.gmra.mrb[104].mxu0 %vm2256_vm6, %v5479_v48 }
0x12cd   : > { %7040 = vmatpush3.bf16.msra.mxu1 %v5577_v49  ;;  %7041 = vmatprep.mubr.msk.bf16.mxu1 %vm8587_vm0, %v8586_v0 }
0x12ce   : > { %7047 = vmatprep.mubr.msk.bf16.mxu0 %vm8587_vm0, %v8586_v0 }
0x12d4   : > { %7042 = vmatmul.mubr.msk.bf16.vlgmr.msra.gmra.mrb[104].mxu1 %vm2256_vm6, %v5479_v48 }
0x139f   : > { %v5521_v52 = vpop.f32.mrb[100].mxu1  ;;  %v5567_v53 = vpop.f32.mrb[104].mxu0 }
0x13a0   : > { %v5622_v54 = vrot.slane %v5521_v52, 7  ;;  %v7031_v55 = vpop.f32.mrb[101].mxu1  ;;  %v7037_v56 = vpop.f32.mrb[105].mxu0 }
0x13a1   : > { %v5524_v57 = vpop.f32.mrb[102].mxu1  ;;  %v5570_v58 = vpop.f32.mrb[106].mxu0 }
0x13a2   : > { %v5627_v59 = vsel %vm2214_vm4, 0.0, %v5622_v54  ;;  %v5623_v60 = vrot.slane %v5524_v57, 7  ;;  %v7032_v61 = vpop.f32.mrb[103].mxu1  ;;  %v7038_v62 = vpop.f32.mrb[107].mxu0 }
0x13a3   : > { %v5636_v0 = vadd.f32 %v5627_v59, %v5567_v53 }
0x13a4   : > { %v5624_v63 = vsel %vm2214_vm4, %v5622_v54, %v5623_v60 }
0x13a5   : > { %v5637_v1 = vadd.f32 %v5624_v63, %v5570_v58 }
0x13a7   : > { %v5613_v2 = vpop.f32.mrb[104].mxu1 }
0x13a8   : > { %v7043_v3 = vpop.f32.mrb[105].mxu1  ;;  %v5630_v5 = vrot.slane %v5613_v2, 1 }
0x13a9   : > { %v5616_v4 = vpop.f32.mrb[106].mxu1 }
0x13aa   : > { %v5631_v6 = vrot.slane %v5616_v4, 1  ;;  %v7044_v7 = vpop.f32.mrb[107].mxu1 }
0x13ac   : > { %v5632_v8 = vsel %vm2223_vm5, %v5630_v5, %v5631_v6  ;;  %v5635_v9 = vsel %vm2223_vm5, %v5631_v6, 0.0 }
0x13ad   : > { %v5638_v11 = vadd.f32 %v5636_v0, %v5632_v8  ;;  %v5639_v12 = vadd.f32 %v5637_v1, %v5635_v9 }
0x13af   : > { %v5647_v14 = vmul.f32 %v6485_v10, %v5638_v11  ;;  %v5648_v15 = vmul.f32 %v6485_v10, %v5639_v12 }
0x13b1   : > { %v5657_v16 = vadd.f32 %v6486_v13, %v5648_v15  ;;  %v5656_v17 = vadd.f32 %v6486_v13, %v5647_v14 }
0x13b3   : > { %v5658_v18 = vmax.f32 %v5656_v17, 0.0  ;;  %v5659_v19 = vmax.f32 %v5657_v16, 0.0 }
0x13b5   : > { %v5661_v20 = vpack.c.bf16 %v5659_v19, %v5658_v18 }
0x13b7   : > { %v5672_v21 = vsel %vm2256_vm6, %v5661_v20, 0 }
0x13b8   : > { %7046 = vmatpush3.bf16.xpose.msra.mxu0 %v5672_v21 }
0x13bf   : > { %7048 = vmatmul.mubr.msk.bf16.vlgmr.msra.gmra.mrb[108].mxu0 %vm2256_vm6, %v5660_v22 }
0x1492   : > { %v5708_v24 = vpop.f32.mrb[108].mxu0 }
0x1493   : > { %v5709_v25 = vadd.f32 %v5708_v24, %v5666_v23  ;;  %v7049_v26 = vpop.f32.mrb[109].mxu0 }
0x1494   : > { %v5711_v27 = vpop.f32.mrb[110].mxu0 }
0x1495   : > { %5715 = vst.msk [vmem:[%s2065_s2] sm:$0x7] %vm5714_vm12, %v5709_v25  ;;  %v7050_v28 = vpop.f32.mrb[111].mxu0 }
0x1496 PF: > { %s138_s0 = sadd.s32 1, %s8490_s0  }
0x1497   : > { %p135_p3 = scmp.ge.s32.totalorder %s138_s0, 4  }
0x1499   :  { %137 = sbr.rel (!%p135_p3) target bundleno = 126 (0x7e), region = 508 }
0x14a0   :  { %5735 = vsyncpa [#allocation9], 1 }
0x14a1   :  { %5737 = vsyncpa [#allocation9 + $0x1], 1 }
0x14a2   :  { %5738 = vsyncpa [#allocation11], 1 }
0x14a3   :  { %5739 = vsyncpa [#allocation14], 1 }
0x14a4   :  { %5740 = vsyncpa [#allocation17], 1 }
0x14a5   :  { %5741 = vsyncpa [#allocation20], 1 }
0x14a6   :  { %5742 = vsyncpa [#allocation23], 1 }
0x14a7   :  { %5743 = vsyncpa [#allocation26], 1 }
0x14a8   :  { %5744 = vsyncpa [#allocation29], 1 }
0x14a9   :  { %5745 = vsyncpa [#allocation32], 1 }
0x14aa   :  { %5746 = vsyncpa [#allocation35], 1 }
0x14ab   :  { %5747 = vsyncpa [#allocation38], 1 }
0x14ac   :  { %5748 = vsyncpa [#allocation41], 1 }
0x14ad   :  { %5749 = vsyncpa [#allocation44], 1 }
0x14ae   :  { %5750 = vsyncpa [#allocation47], 1 }
0x14af   :  { %5751 = vsyncpa [#allocation50], 1 }
0x14b0   :  { %5752 = vsyncpa [#allocation53], 1 }
0x14b1   :  { %5753 = vsyncpa [#allocation56], 1 }
0x14b2   :  { %5754 = vsyncpa [#allocation59], 1 }
0x14b3   :  { %5755 = vsyncpa [#allocation62], 1 }

</bundles_post_ra>
